<compile_context>
chip_gen: v7x
topology: tpu7x:2x2x1
jax: 0.10.0
libtpu: 0.0.40
codegen_flags: <defaults>
</compile_context>

<pallas_src>
import functools

import jax
import jax.numpy as jnp
from jax.experimental import pallas as pl
from jax.experimental.pallas import tpu as pltpu


def _round_up(x, m):
    return (x + m - 1) // m * m


def _pick_tile(extent, align, cap):
    """Return (tile, padded_extent). Single full tile if it fits under cap."""
    full = _round_up(extent, align)
    if full <= cap:
        return full, full
    return cap, _round_up(extent, cap)


# ----------------------------- Pallas kernels ------------------------------

def _matmul_act_kernel(a_ref, b_ref, bias_ref, o_ref, acc_ref, *, pre_act, post_act):
    """post_act(pre_act(A) @ B + bias) with K-grid accumulation on the MXU."""
    @pl.when(pl.program_id(2) == 0)
    def _():
        acc_ref[...] = jnp.zeros_like(acc_ref)

    a = a_ref[...]
    if pre_act == "leaky":
        a = jnp.where(a > 0, a, 0.2 * a)
    elif pre_act == "relu":
        a = jnp.maximum(a, 0)
    acc_ref[...] += jnp.dot(a, b_ref[...], preferred_element_type=jnp.float32)

    @pl.when(pl.program_id(2) == pl.num_programs(2) - 1)
    def _():
        y = acc_ref[...] + bias_ref[...]
        if post_act == "leaky":
            y = jnp.where(y > 0, y, 0.2 * y)
        elif post_act == "tanh":
            y = jnp.tanh(y)
        o_ref[...] = y.astype(o_ref.dtype)


def matmul_act(a, b, bias, *, pre_act="none", post_act="none"):
    """Tiled, fused matmul: a:(M,K) f32, b:(K,N) f32, bias:(N,) -> (M,N) f32."""
    M, K = a.shape
    K2, N = b.shape
    assert K == K2
    TM, Mp = _pick_tile(M, 8, 1024)
    TN, Np = _pick_tile(N, 128, 256)
    TK, Kp = _pick_tile(K, 128, 2048)

    a_p = jnp.pad(a.astype(jnp.bfloat16), ((0, Mp - M), (0, Kp - K)))
    b_p = jnp.pad(b.astype(jnp.bfloat16), ((0, Kp - K), (0, Np - N)))
    bias_p = jnp.pad(bias.astype(jnp.float32).reshape(1, N), ((0, 0), (0, Np - N)))

    grid = (Mp // TM, Np // TN, Kp // TK)
    out = pl.pallas_call(
        functools.partial(_matmul_act_kernel, pre_act=pre_act, post_act=post_act),
        out_shape=jax.ShapeDtypeStruct((Mp, Np), jnp.float32),
        grid=grid,
        in_specs=[
            pl.BlockSpec((TM, TK), lambda i, j, k: (i, k)),
            pl.BlockSpec((TK, TN), lambda i, j, k: (k, j)),
            pl.BlockSpec((1, TN), lambda i, j, k: (0, j)),
        ],
        out_specs=pl.BlockSpec((TM, TN), lambda i, j, k: (i, j)),
        scratch_shapes=[pltpu.VMEM((TM, TN), jnp.float32)],
        compiler_params=pltpu.CompilerParams(
            dimension_semantics=("parallel", "parallel", "arbitrary"),
            vmem_limit_bytes=32 * 1024 * 1024,
        ),
    )(a_p, b_p, bias_p)
    return out[:M, :N]


def _bn_stats_kernel(x_ref, mean_ref, inv_ref, s_ref, s2_ref, *, count, eps):
    @pl.when(pl.program_id(0) == 0)
    def _():
        s_ref[...] = jnp.zeros_like(s_ref)
        s2_ref[...] = jnp.zeros_like(s2_ref)

    x = x_ref[...]
    s_ref[...] += jnp.sum(x, axis=0, keepdims=True)
    s2_ref[...] += jnp.sum(x * x, axis=0, keepdims=True)

    @pl.when(pl.program_id(0) == pl.num_programs(0) - 1)
    def _():
        mean = s_ref[...] / count
        var = s2_ref[...] / count - mean * mean
        var = jnp.maximum(var, 0.0)                 # guard against f32 cancellation
        mean_ref[...] = mean
        inv_ref[...] = jax.lax.rsqrt(var + eps)


def _bn_apply_kernel(x_ref, mean_ref, inv_ref, g_ref, b_ref, o_ref):
    o_ref[...] = (x_ref[...] - mean_ref[...]) * inv_ref[...] * g_ref[...] + b_ref[...]


def batchnorm2d(x_hwc, gamma, beta, eps=1e-5):
    """Training-mode BatchNorm2d over spatial dims; x: (H, W, C) channels-last."""
    H, W, C = x_hwc.shape
    L = H * W
    Cp = _round_up(C, 128)
    TL, Lp = _pick_tile(L, 8, 1024)

    xf = jnp.pad(x_hwc.reshape(L, C), ((0, Lp - L), (0, Cp - C)))
    g = jnp.pad(gamma.astype(jnp.float32).reshape(1, C), ((0, 0), (0, Cp - C)))
    b = jnp.pad(beta.astype(jnp.float32).reshape(1, C), ((0, 0), (0, Cp - C)))
    n_l = Lp // TL

    mean, inv = pl.pallas_call(
        functools.partial(_bn_stats_kernel, count=float(L), eps=eps),
        out_shape=(jax.ShapeDtypeStruct((1, Cp), jnp.float32),
                   jax.ShapeDtypeStruct((1, Cp), jnp.float32)),
        grid=(n_l,),
        in_specs=[pl.BlockSpec((TL, Cp), lambda i: (i, 0))],
        out_specs=(pl.BlockSpec((1, Cp), lambda i: (0, 0)),
                   pl.BlockSpec((1, Cp), lambda i: (0, 0))),
        scratch_shapes=[pltpu.VMEM((1, Cp), jnp.float32),
                        pltpu.VMEM((1, Cp), jnp.float32)],
        compiler_params=pltpu.CompilerParams(dimension_semantics=("arbitrary",)),
    )(xf)

    y = pl.pallas_call(
        _bn_apply_kernel,
        out_shape=jax.ShapeDtypeStruct((Lp, Cp), jnp.float32),
        grid=(n_l,),
        in_specs=[pl.BlockSpec((TL, Cp), lambda i: (i, 0)),
                  pl.BlockSpec((1, Cp), lambda i: (0, 0)),
                  pl.BlockSpec((1, Cp), lambda i: (0, 0)),
                  pl.BlockSpec((1, Cp), lambda i: (0, 0)),
                  pl.BlockSpec((1, Cp), lambda i: (0, 0))],
        out_specs=pl.BlockSpec((TL, Cp), lambda i: (i, 0)),
        compiler_params=pltpu.CompilerParams(dimension_semantics=("parallel",)),
    )(xf, mean, inv, g, b)
    return y[:L, :C].reshape(H, W, C)


# ------------------------------- conv glue ---------------------------------
# TODO(synk): the patch gather below is XLA glue (fused under jit); a fully
# in-kernel gather (BlockSpec index_map over the raw map) would cut the
# duplicated A-operand HBM traffic further.

def conv2d_k4s2p1(x_hwc, w, b=None, *, pre_act="none", post_act="none"):
    """x: (H, W, Cin) channels-last; w: (Cout, Cin, 4, 4) PyTorch Conv2d layout."""
    H, W, Cin = x_hwc.shape
    Cout = w.shape[0]
    Ho, Wo = H // 2, W // 2
    xp = jnp.pad(x_hwc, ((1, 1), (1, 1), (0, 0)))
    cols = [xp[i:i + 2 * Ho:2, j:j + 2 * Wo:2, :] for i in range(4) for j in range(4)]
    A = (jnp.stack(cols, axis=0).reshape(4, 4, Ho, Wo, Cin)
         .transpose(2, 3, 0, 1, 4).reshape(Ho * Wo, 16 * Cin))
    B = w.transpose(2, 3, 1, 0).reshape(16 * Cin, Cout)        # (ki,kj,cin) x cout
    bias = b if b is not None else jnp.zeros((Cout,), jnp.float32)
    y = matmul_act(A, B, bias, pre_act=pre_act, post_act=post_act)
    return y.reshape(Ho, Wo, Cout)


def _deconv_weight_phases(w):
    """PyTorch ConvTranspose2d weight (Cin,Cout,4,4) -> (9*Cin, 4*Cout) phase B."""
    Cin, Cout = w.shape[0], w.shape[1]
    # phase a (row parity): offset u-1 maps to kernel row ki
    #   a=0: x[m-1]->w[3] (u=0), x[m]->w[1] (u=1)
    #   a=1: x[m]->w[2]   (u=1), x[m+1]->w[0] (u=2)
    kmap = {0: {0: 3, 1: 1}, 1: {1: 2, 2: 0}}
    blocks = []
    for a in (0, 1):
        for b_ in (0, 1):
            Bab = jnp.zeros((3, 3, Cin, Cout), w.dtype)
            for u, ki in kmap[a].items():
                for v, kj in kmap[b_].items():
                    Bab = Bab.at[u, v].set(w[:, :, ki, kj])
            blocks.append(Bab.reshape(9 * Cin, Cout))
    return jnp.concatenate(blocks, axis=1)                      # phases on lane axis


def conv_transpose2d_k4s2p1(x_hwc, w, b=None, *, pre_act="none", post_act="none"):
    """x: (H, W, Cin); w: (Cin, Cout, 4, 4) PyTorch ConvTranspose2d layout.

    Sub-pixel phase decomposition: one matmul over shared 3x3 stride-1 patches,
    all 4 output phases stacked along the N (lane) axis, then de-interleaved.
    """
    H, W, Cin = x_hwc.shape
    Cout = w.shape[1]
    xp = jnp.pad(x_hwc, ((1, 1), (1, 1), (0, 0)))
    cols = [xp[u:u + H, v:v + W, :] for u in range(3) for v in range(3)]
    A = (jnp.stack(cols, axis=0).reshape(3, 3, H, W, Cin)
         .transpose(2, 3, 0, 1, 4).reshape(H * W, 9 * Cin))     # (u,v,cin) K-order
    B = _deconv_weight_phases(w)                                 # (9*Cin, 4*Cout)
    bias = b if b is not None else jnp.zeros((Cout,), jnp.float32)
    bias_all = jnp.tile(bias.astype(jnp.float32), 4)             # per-phase bias
    y = matmul_act(A, B, bias_all, pre_act=pre_act, post_act=post_act)
    y = y.reshape(H, W, 2, 2, Cout).transpose(0, 2, 1, 3, 4).reshape(2 * H, 2 * W, Cout)
    return y


# ------------------------- parameters (deterministic) -----------------------

def _rand(key, shape, scale=0.1):
    return scale * jax.random.normal(key, shape, jnp.float32)


def init_params(key, input_nc, output_nc, num_downs, latent_features, ngf):
    keys = iter(jax.random.split(key, 512))

    def nk():
        return next(keys)

    def lf_block(outer_nc, inner_nc):
        return {
            "kind": "lf", "outer_nc": outer_nc, "inner_nc": inner_nc,
            "w": _rand(nk(), (outer_nc, inner_nc + latent_features)),  # Linear weight
            "b": _rand(nk(), (outer_nc,)),
        }

    def skip_block(outer_nc, inner_nc, input_nc_, submodule,
                   outermost=False, innermost=False):
        # norm_layer == BatchNorm2d  ->  use_bias = False for the convs
        if input_nc_ is None:
            input_nc_ = outer_nc
        p = {"kind": "skip", "outermost": outermost, "innermost": innermost,
             "submodule": submodule,
             "downconv_w": _rand(nk(), (inner_nc, input_nc_, 4, 4))}
        if outermost:
            p["upconv_w"] = _rand(nk(), (inner_nc * 2, outer_nc, 4, 4))
            p["upconv_b"] = _rand(nk(), (outer_nc,))      # ConvTranspose default bias=True
        elif innermost:
            p["upconv_w"] = _rand(nk(), (inner_nc, outer_nc, 4, 4))
            p["upnorm_g"] = 1.0 + _rand(nk(), (outer_nc,))
            p["upnorm_b"] = _rand(nk(), (outer_nc,))
        else:
            p["downnorm_g"] = 1.0 + _rand(nk(), (inner_nc,))
            p["downnorm_b"] = _rand(nk(), (inner_nc,))
            p["upconv_w"] = _rand(nk(), (inner_nc * 2, outer_nc, 4, 4))
            p["upnorm_g"] = 1.0 + _rand(nk(), (outer_nc,))
            p["upnorm_b"] = _rand(nk(), (outer_nc,))
        return p

    blk = lf_block(ngf * 8, ngf * 8)
    blk = skip_block(ngf * 8, ngf * 8, None, blk, innermost=True)
    for _ in range(num_downs - 5):
        blk = skip_block(ngf * 8, ngf * 8, None, blk)
    blk = skip_block(ngf * 4, ngf * 8, None, blk)
    blk = skip_block(ngf * 2, ngf * 4, None, blk)
    blk = skip_block(ngf, ngf * 2, None, blk)
    blk = skip_block(output_nc, ngf, input_nc, blk, outermost=True)
    return blk


# -------------------------------- forward ----------------------------------

def _lf_forward(p, x):
    feat, latent = x                                   # feat: (1, 1, inner_nc)
    a = jnp.concatenate([feat.reshape(1, p["inner_nc"]), latent], axis=1)
    y = matmul_act(a, p["w"].T, p["b"], pre_act="none", post_act="leaky")
    return (y.reshape(1, 1, p["outer_nc"]), latent)


def block_forward(p, x):
    if p["kind"] == "lf":
        return _lf_forward(p, x)
    feat, latent = x                                   # feat: (H, W, C) channels-last
    if p["outermost"]:
        h = conv2d_k4s2p1(feat, p["downconv_w"])                        # downconv only
        h, _ = block_forward(p["submodule"], (h, latent))
        return conv_transpose2d_k4s2p1(h, p["upconv_w"], p["upconv_b"],
                                       pre_act="relu", post_act="tanh")
    if p["innermost"]:
        h = conv2d_k4s2p1(feat, p["downconv_w"], pre_act="leaky")       # downrelu+downconv
        h, latent2 = block_forward(p["submodule"], (h, latent))         # LF bottleneck
        y = conv_transpose2d_k4s2p1(h, p["upconv_w"], pre_act="relu")   # uprelu+upconv
        y = batchnorm2d(y, p["upnorm_g"], p["upnorm_b"])
        return (jnp.concatenate([feat, y], axis=-1), latent2)
    h = conv2d_k4s2p1(feat, p["downconv_w"], pre_act="leaky")
    h = batchnorm2d(h, p["downnorm_g"], p["downnorm_b"])
    h, latent2 = block_forward(p["submodule"], (h, latent))
    y = conv_transpose2d_k4s2p1(h, p["upconv_w"], pre_act="relu")
    y = batchnorm2d(y, p["upnorm_g"], p["upnorm_b"])
    return (jnp.concatenate([feat, y], axis=-1), latent2)


# --------------------------------- main -------------------------------------

if __name__ == "__main__":
    # Small config: ngf=8, num_downs=5 -> 32x32 input reduces to 1x1 at bottleneck.
    input_nc, output_nc, num_downs, latent_features, ngf = 3, 3, 5, 8, 8
    key = jax.random.PRNGKey(0)
    kp, ki, kl = jax.random.split(key, 3)
    params = init_params(kp, input_nc, output_nc, num_downs, latent_features, ngf)

    H = W = 2 ** num_downs
    img = jax.random.normal(ki, (1, input_nc, H, W), jnp.float32)
    latent = jax.random.normal(kl, (1, latent_features), jnp.float32)

    @jax.jit
    def forward(img_nchw, latent_vec):
        x = img_nchw[0].transpose(1, 2, 0)                    # NCHW -> HWC
        y = block_forward(params, (x, latent_vec))            # (H, W, output_nc)
        return y.transpose(2, 0, 1)[None]                     # -> (1, C, H, W)

    out = jax.block_until_ready(forward(img, latent))         # generator forward

    assert out.shape == (1, output_nc, H, W), out.shape
    assert bool(jnp.all(jnp.isfinite(out)))
    print("KERNEL_OK")
</pallas_src>

<mosaic_0001>
module attributes {stable_mosaic.version = 11 : i64} {
  func.func @_matmul_act_kernel(%arg0: i32, %arg1: i32, %arg2: i32, %arg3: memref<256x128xbf16, #tpu.memory_space<vmem>>, %arg4: memref<128x128xbf16, #tpu.memory_space<vmem>>, %arg5: memref<1x128xf32, #tpu.memory_space<vmem>>, %arg6: memref<256x128xf32, #tpu.memory_space<vmem>>, %arg7: memref<256x128xf32, #tpu.memory_space<vmem>>) attributes {dimension_semantics = [#tpu.dimension_semantics<parallel>, #tpu.dimension_semantics<parallel>, #tpu.dimension_semantics<arbitrary>], iteration_bounds = array<i64: 1, 1, 1>, scalar_prefetch = 0 : i64, scratch_operands = 1 : i64, tpu.core_type = #tpu.core_type<tc>, window_params = [{transform_indices = @transform_0, window_bounds = array<i64: 256, 128>}, {transform_indices = @transform_1, window_bounds = array<i64: 128, 128>}, {transform_indices = @transform_2, window_bounds = array<i64: 1, 128>}, {transform_indices = @transform_3, window_bounds = array<i64: 256, 128>}]} {
    %c0_i32 = arith.constant 0 : i32
    %0 = arith.cmpi eq, %arg2, %c0_i32 : i32
    %1 = arith.extui %0 : i1 to i32
    %c0_i32_0 = arith.constant 0 : i32
    %2 = arith.cmpi ne, %1, %c0_i32_0 : i32
    scf.if %2 {
      %cst_10 = arith.constant 0.000000e+00 : f32
      %12 = vector.broadcast %cst_10 : f32 to vector<256x128xf32>
      %c0_11 = arith.constant 0 : index
      %c0_12 = arith.constant 0 : index
      %13 = vector.load %arg7[%c0_11, %c0_12] : memref<256x128xf32, #tpu.memory_space<vmem>>, vector<256x128xf32>
      tpu.vector_store %arg7[%c0_11, %c0_12], %12 {strides = array<i32>} : memref<256x128xf32, #tpu.memory_space<vmem>>, vector<256x128xf32>,
    } else {
    }
    %c0 = arith.constant 0 : index
    %c0_1 = arith.constant 0 : index
    %3 = vector.load %arg3[%c0, %c0_1] : memref<256x128xbf16, #tpu.memory_space<vmem>>, vector<256x128xbf16>
    %c0_2 = arith.constant 0 : index
    %c0_3 = arith.constant 0 : index
    %4 = vector.load %arg7[%c0_2, %c0_3] : memref<256x128xf32, #tpu.memory_space<vmem>>, vector<256x128xf32>
    %c0_4 = arith.constant 0 : index
    %c0_5 = arith.constant 0 : index
    %5 = vector.load %arg4[%c0_4, %c0_5] : memref<128x128xbf16, #tpu.memory_space<vmem>>, vector<128x128xbf16>
    %cst = arith.constant dense<0.000000e+00> : vector<256x128xf32>
    %6 = tpu.matmul %3, %5, %cst {dimension_numbers = #tpu.dot_dimension_numbers<[1], [0], [0], [1], [0, 0, 1, 1], [], []>} : vector<256x128xbf16>, vector<128x128xbf16>, vector<256x128xf32> -> vector<256x128xf32>
    %7 = arith.addf %4, %6 : vector<256x128xf32>
    %c0_6 = arith.constant 0 : index
    %c0_7 = arith.constant 0 : index
    %8 = vector.load %arg7[%c0_6, %c0_7] : memref<256x128xf32, #tpu.memory_space<vmem>>, vector<256x128xf32>
    tpu.vector_store %arg7[%c0_6, %c0_7], %7 {strides = array<i32>} : memref<256x128xf32, #tpu.memory_space<vmem>>, vector<256x128xf32>,
    %c0_i32_8 = arith.constant 0 : i32
    %9 = arith.cmpi eq, %arg2, %c0_i32_8 : i32
    %10 = arith.extui %9 : i1 to i32
    %c0_i32_9 = arith.constant 0 : i32
    %11 = arith.cmpi ne, %10, %c0_i32_9 : i32
    scf.if %11 {
      %c0_10 = arith.constant 0 : index
      %c0_11 = arith.constant 0 : index
      %12 = vector.load %arg7[%c0_10, %c0_11] : memref<256x128xf32, #tpu.memory_space<vmem>>, vector<256x128xf32>
      %c0_12 = arith.constant 0 : index
      %c0_13 = arith.constant 0 : index
      %13 = vector.load %arg5[%c0_12, %c0_13] : memref<1x128xf32, #tpu.memory_space<vmem>>, vector<1x128xf32>
      %14 = vector.broadcast %13 : vector<1x128xf32> to vector<256x128xf32>
      %15 = arith.addf %12, %14 : vector<256x128xf32>
      %c0_14 = arith.constant 0 : index
      %c0_15 = arith.constant 0 : index
      %16 = vector.load %arg6[%c0_14, %c0_15] : memref<256x128xf32, #tpu.memory_space<vmem>>, vector<256x128xf32>
      tpu.vector_store %arg6[%c0_14, %c0_15], %15 {strides = array<i32>} : memref<256x128xf32, #tpu.memory_space<vmem>>, vector<256x128xf32>,
    } else {
    }
    return
  }
  func.func @transform_0(%arg0: i32, %arg1: i32, %arg2: i32) -> (i32, i32) {
    %c0_i32 = arith.constant 0 : i32
    return %arg0, %arg2 : i32, i32
  }
  func.func @transform_1(%arg0: i32, %arg1: i32, %arg2: i32) -> (i32, i32) {
    %c0_i32 = arith.constant 0 : i32
    return %arg2, %arg1 : i32, i32
  }
  func.func @transform_2(%arg0: i32, %arg1: i32, %arg2: i32) -> (i32, i32) {
    %c0_i32 = arith.constant 0 : i32
    %c0_i32_0 = arith.constant 0 : i32
    return %c0_i32, %arg1 : i32, i32
  }
  func.func @transform_3(%arg0: i32, %arg1: i32, %arg2: i32) -> (i32, i32) {
    %c0_i32 = arith.constant 0 : i32
    return %arg0, %arg1 : i32, i32
  }
}

module attributes {stable_mosaic.version = 11 : i64} {
  func.func @_matmul_act_kernel(%arg0: i32, %arg1: i32, %arg2: i32, %arg3: memref<64x128xbf16, #tpu.memory_space<vmem>>, %arg4: memref<128x128xbf16, #tpu.memory_space<vmem>>, %arg5: memref<1x128xf32, #tpu.memory_space<vmem>>, %arg6: memref<64x128xf32, #tpu.memory_space<vmem>>, %arg7: memref<64x128xf32, #tpu.memory_space<vmem>>) attributes {dimension_semantics = [#tpu.dimension_semantics<parallel>, #tpu.dimension_semantics<parallel>, #tpu.dimension_semantics<arbitrary>], iteration_bounds = array<i64: 1, 1, 1>, scalar_prefetch = 0 : i64, scratch_operands = 1 : i64, tpu.core_type = #tpu.core_type<tc>, window_params = [{transform_indices = @transform_0, window_bounds = array<i64: 64, 128>}, {transform_indices = @transform_1, window_bounds = array<i64: 128, 128>}, {transform_indices = @transform_2, window_bounds = array<i64: 1, 128>}, {transform_indices = @transform_3, window_bounds = array<i64: 64, 128>}]} {
    %c0_i32 = arith.constant 0 : i32
    %0 = arith.cmpi eq, %arg2, %c0_i32 : i32
    %1 = arith.extui %0 : i1 to i32
    %c0_i32_0 = arith.constant 0 : i32
    %2 = arith.cmpi ne, %1, %c0_i32_0 : i32
    scf.if %2 {
      %cst_12 = arith.constant 0.000000e+00 : f32
      %17 = vector.broadcast %cst_12 : f32 to vector<64x128xf32>
      %c0_13 = arith.constant 0 : index
      %c0_14 = arith.constant 0 : index
      %18 = vector.load %arg7[%c0_13, %c0_14] : memref<64x128xf32, #tpu.memory_space<vmem>>, vector<64x128xf32>
      tpu.vector_store %arg7[%c0_13, %c0_14], %17 {strides = array<i32>} : memref<64x128xf32, #tpu.memory_space<vmem>>, vector<64x128xf32>,
    } else {
    }
    %c0 = arith.constant 0 : index
    %c0_1 = arith.constant 0 : index
    %3 = vector.load %arg3[%c0, %c0_1] : memref<64x128xbf16, #tpu.memory_space<vmem>>, vector<64x128xbf16>
    %cst = arith.constant 0.000000e+00 : bf16
    %4 = vector.broadcast %cst : bf16 to vector<64x128xbf16>
    %5 = arith.cmpf ogt, %3, %4 : vector<64x128xbf16>
    %cst_2 = arith.constant 2.001950e-01 : bf16
    %6 = vector.broadcast %cst_2 : bf16 to vector<64x128xbf16>
    %7 = arith.mulf %6, %3 : vector<64x128xbf16>
    %8 = arith.select %5, %3, %7 : vector<64x128xi1>, vector<64x128xbf16>
    %c0_3 = arith.constant 0 : index
    %c0_4 = arith.constant 0 : index
    %9 = vector.load %arg7[%c0_3, %c0_4] : memref<64x128xf32, #tpu.memory_space<vmem>>, vector<64x128xf32>
    %c0_5 = arith.constant 0 : index
    %c0_6 = arith.constant 0 : index
    %10 = vector.load %arg4[%c0_5, %c0_6] : memref<128x128xbf16, #tpu.memory_space<vmem>>, vector<128x128xbf16>
    %cst_7 = arith.constant dense<0.000000e+00> : vector<64x128xf32>
    %11 = tpu.matmul %8, %10, %cst_7 {dimension_numbers = #tpu.dot_dimension_numbers<[1], [0], [0], [1], [0, 0, 1, 1], [], []>} : vector<64x128xbf16>, vector<128x128xbf16>, vector<64x128xf32> -> vector<64x128xf32>
    %12 = arith.addf %9, %11 : vector<64x128xf32>
    %c0_8 = arith.constant 0 : index
    %c0_9 = arith.constant 0 : index
    %13 = vector.load %arg7[%c0_8, %c0_9] : memref<64x128xf32, #tpu.memory_space<vmem>>, vector<64x128xf32>
    tpu.vector_store %arg7[%c0_8, %c0_9], %12 {strides = array<i32>} : memref<64x128xf32, #tpu.memory_space<vmem>>, vector<64x128xf32>,
    %c0_i32_10 = arith.constant 0 : i32
    %14 = arith.cmpi eq, %arg2, %c0_i32_10 : i32
    %15 = arith.extui %14 : i1 to i32
    %c0_i32_11 = arith.constant 0 : i32
    %16 = arith.cmpi ne, %15, %c0_i32_11 : i32
    scf.if %16 {
      %c0_12 = arith.constant 0 : index
      %c0_13 = arith.constant 0 : index
      %17 = vector.load %arg7[%c0_12, %c0_13] : memref<64x128xf32, #tpu.memory_space<vmem>>, vector<64x128xf32>
      %c0_14 = arith.constant 0 : index
      %c0_15 = arith.constant 0 : index
      %18 = vector.load %arg5[%c0_14, %c0_15] : memref<1x128xf32, #tpu.memory_space<vmem>>, vector<1x128xf32>
      %19 = vector.broadcast %18 : vector<1x128xf32> to vector<64x128xf32>
      %20 = arith.addf %17, %19 : vector<64x128xf32>
      %c0_16 = arith.constant 0 : index
      %c0_17 = arith.constant 0 : index
      %21 = vector.load %arg6[%c0_16, %c0_17] : memref<64x128xf32, #tpu.memory_space<vmem>>, vector<64x128xf32>
      tpu.vector_store %arg6[%c0_16, %c0_17], %20 {strides = array<i32>} : memref<64x128xf32, #tpu.memory_space<vmem>>, vector<64x128xf32>,
    } else {
    }
    return
  }
  func.func @transform_0(%arg0: i32, %arg1: i32, %arg2: i32) -> (i32, i32) {
    %c0_i32 = arith.constant 0 : i32
    return %arg0, %arg2 : i32, i32
  }
  func.func @transform_1(%arg0: i32, %arg1: i32, %arg2: i32) -> (i32, i32) {
    %c0_i32 = arith.constant 0 : i32
    return %arg2, %arg1 : i32, i32
  }
  func.func @transform_2(%arg0: i32, %arg1: i32, %arg2: i32) -> (i32, i32) {
    %c0_i32 = arith.constant 0 : i32
    %c0_i32_0 = arith.constant 0 : i32
    return %c0_i32, %arg1 : i32, i32
  }
  func.func @transform_3(%arg0: i32, %arg1: i32, %arg2: i32) -> (i32, i32) {
    %c0_i32 = arith.constant 0 : i32
    return %arg0, %arg1 : i32, i32
  }
}

module attributes {stable_mosaic.version = 11 : i64} {
  func.func @_bn_stats_kernel(%arg0: i32, %arg1: memref<64x128xf32, #tpu.memory_space<vmem>>, %arg2: memref<1x128xf32, #tpu.memory_space<vmem>>, %arg3: memref<1x128xf32, #tpu.memory_space<vmem>>, %arg4: memref<1x128xf32, #tpu.memory_space<vmem>>, %arg5: memref<1x128xf32, #tpu.memory_space<vmem>>) attributes {dimension_semantics = [#tpu.dimension_semantics<arbitrary>], iteration_bounds = array<i64: 1>, scalar_prefetch = 0 : i64, scratch_operands = 2 : i64, tpu.core_type = #tpu.core_type<tc>, window_params = [{transform_indices = @transform_0, window_bounds = array<i64: 64, 128>}, {pipeline_mode = #tpu.pipeline_mode<synchronous>, transform_indices = @transform_1, window_bounds = array<i64: 1, 128>}, {pipeline_mode = #tpu.pipeline_mode<synchronous>, transform_indices = @transform_2, window_bounds = array<i64: 1, 128>}]} {
    %c0_i32 = arith.constant 0 : i32
    %0 = arith.cmpi eq, %arg0, %c0_i32 : i32
    %1 = arith.extui %0 : i1 to i32
    %c0_i32_0 = arith.constant 0 : i32
    %2 = arith.cmpi ne, %1, %c0_i32_0 : i32
    scf.if %2 {
      %cst_13 = arith.constant 0.000000e+00 : f32
      %18 = vector.broadcast %cst_13 : f32 to vector<1x128xf32>
      %c0_14 = arith.constant 0 : index
      %c0_15 = arith.constant 0 : index
      %19 = vector.load %arg4[%c0_14, %c0_15] : memref<1x128xf32, #tpu.memory_space<vmem>>, vector<1x128xf32>
      tpu.vector_store %arg4[%c0_14, %c0_15], %18 {strides = array<i32>} : memref<1x128xf32, #tpu.memory_space<vmem>>, vector<1x128xf32>,
      %cst_16 = arith.constant 0.000000e+00 : f32
      %20 = vector.broadcast %cst_16 : f32 to vector<1x128xf32>
      %c0_17 = arith.constant 0 : index
      %c0_18 = arith.constant 0 : index
      %21 = vector.load %arg5[%c0_17, %c0_18] : memref<1x128xf32, #tpu.memory_space<vmem>>, vector<1x128xf32>
      tpu.vector_store %arg5[%c0_17, %c0_18], %20 {strides = array<i32>} : memref<1x128xf32, #tpu.memory_space<vmem>>, vector<1x128xf32>,
    } else {
    }
    %c0 = arith.constant 0 : index
    %c0_1 = arith.constant 0 : index
    %3 = vector.load %arg1[%c0, %c0_1] : memref<64x128xf32, #tpu.memory_space<vmem>>, vector<64x128xf32>
    %c0_2 = arith.constant 0 : index
    %c0_3 = arith.constant 0 : index
    %4 = vector.load %arg4[%c0_2, %c0_3] : memref<1x128xf32, #tpu.memory_space<vmem>>, vector<1x128xf32>
    %cst = arith.constant dense<0.000000e+00> : vector<128xf32>
    %5 = vector.multi_reduction <add>, %3, %cst [0] : vector<64x128xf32> to vector<128xf32>
    %6 = vector.shape_cast %5 : vector<128xf32> to vector<1x128xf32>
    %7 = arith.addf %4, %6 : vector<1x128xf32>
    %c0_4 = arith.constant 0 : index
    %c0_5 = arith.constant 0 : index
    %8 = vector.load %arg4[%c0_4, %c0_5] : memref<1x128xf32, #tpu.memory_space<vmem>>, vector<1x128xf32>
    tpu.vector_store %arg4[%c0_4, %c0_5], %7 {strides = array<i32>} : memref<1x128xf32, #tpu.memory_space<vmem>>, vector<1x128xf32>,
    %c0_6 = arith.constant 0 : index
    %c0_7 = arith.constant 0 : index
    %9 = vector.load %arg5[%c0_6, %c0_7] : memref<1x128xf32, #tpu.memory_space<vmem>>, vector<1x128xf32>
    %10 = arith.mulf %3, %3 : vector<64x128xf32>
    %cst_8 = arith.constant dense<0.000000e+00> : vector<128xf32>
    %11 = vector.multi_reduction <add>, %10, %cst_8 [0] : vector<64x128xf32> to vector<128xf32>
    %12 = vector.shape_cast %11 : vector<128xf32> to vector<1x128xf32>
    %13 = arith.addf %9, %12 : vector<1x128xf32>
    %c0_9 = arith.constant 0 : index
    %c0_10 = arith.constant 0 : index
    %14 = vector.load %arg5[%c0_9, %c0_10] : memref<1x128xf32, #tpu.memory_space<vmem>>, vector<1x128xf32>
    tpu.vector_store %arg5[%c0_9, %c0_10], %13 {strides = array<i32>} : memref<1x128xf32, #tpu.memory_space<vmem>>, vector<1x128xf32>,
    %c0_i32_11 = arith.constant 0 : i32
    %15 = arith.cmpi eq, %arg0, %c0_i32_11 : i32
    %16 = arith.extui %15 : i1 to i32
    %c0_i32_12 = arith.constant 0 : i32
    %17 = arith.cmpi ne, %16, %c0_i32_12 : i32
    scf.if %17 {
      %c0_13 = arith.constant 0 : index
      %c0_14 = arith.constant 0 : index
      %18 = vector.load %arg4[%c0_13, %c0_14] : memref<1x128xf32, #tpu.memory_space<vmem>>, vector<1x128xf32>
      %cst_15 = arith.constant 6.400000e+01 : f32
      %19 = vector.broadcast %cst_15 : f32 to vector<1x128xf32>
      %20 = arith.divf %18, %19 : vector<1x128xf32>
      %c0_16 = arith.constant 0 : index
      %c0_17 = arith.constant 0 : index
      %21 = vector.load %arg5[%c0_16, %c0_17] : memref<1x128xf32, #tpu.memory_space<vmem>>, vector<1x128xf32>
      %cst_18 = arith.constant 6.400000e+01 : f32
      %22 = vector.broadcast %cst_18 : f32 to vector<1x128xf32>
      %23 = arith.divf %21, %22 : vector<1x128xf32>
      %24 = arith.mulf %20, %20 : vector<1x128xf32>
      %25 = arith.subf %23, %24 : vector<1x128xf32>
      %cst_19 = arith.constant 0.000000e+00 : f32
      %26 = vector.broadcast %cst_19 : f32 to vector<1x128xf32>
      %27 = arith.maximumf %25, %26 : vector<1x128xf32>
      %c0_20 = arith.constant 0 : index
      %c0_21 = arith.constant 0 : index
      %28 = vector.load %arg2[%c0_20, %c0_21] : memref<1x128xf32, #tpu.memory_space<vmem>>, vector<1x128xf32>
      tpu.vector_store %arg2[%c0_20, %c0_21], %20 {strides = array<i32>} : memref<1x128xf32, #tpu.memory_space<vmem>>, vector<1x128xf32>,
      %cst_22 = arith.constant 9.99999974E-6 : f32
      %29 = vector.broadcast %cst_22 : f32 to vector<1x128xf32>
      %30 = arith.addf %27, %29 : vector<1x128xf32>
      %31 = math.rsqrt %30 : vector<1x128xf32>
      %c0_23 = arith.constant 0 : index
      %c0_24 = arith.constant 0 : index
      %32 = vector.load %arg3[%c0_23, %c0_24] : memref<1x128xf32, #tpu.memory_space<vmem>>, vector<1x128xf32>
      tpu.vector_store %arg3[%c0_23, %c0_24], %31 {strides = array<i32>} : memref<1x128xf32, #tpu.memory_space<vmem>>, vector<1x128xf32>,
    } else {
    }
    return
  }
  func.func @transform_0(%arg0: i32) -> (i32, i32) {
    %c0_i32 = arith.constant 0 : i32
    %c0_i32_0 = arith.constant 0 : i32
    return %arg0, %c0_i32 : i32, i32
  }
  func.func @transform_1(%arg0: i32) -> (i32, i32) {
    %c0_i32 = arith.constant 0 : i32
    %c0_i32_0 = arith.constant 0 : i32
    %c0_i32_1 = arith.constant 0 : i32
    return %c0_i32, %c0_i32_0 : i32, i32
  }
  func.func @transform_2(%arg0: i32) -> (i32, i32) {
    %c0_i32 = arith.constant 0 : i32
    %c0_i32_0 = arith.constant 0 : i32
    %c0_i32_1 = arith.constant 0 : i32
    return %c0_i32, %c0_i32_0 : i32, i32
  }
}

module attributes {stable_mosaic.version = 11 : i64} {
  func.func @_bn_apply_kernel(%arg0: i32, %arg1: memref<64x128xf32, #tpu.memory_space<vmem>>, %arg2: memref<1x128xf32, #tpu.memory_space<vmem>>, %arg3: memref<1x128xf32, #tpu.memory_space<vmem>>, %arg4: memref<1x128xf32, #tpu.memory_space<vmem>>, %arg5: memref<1x128xf32, #tpu.memory_space<vmem>>, %arg6: memref<64x128xf32, #tpu.memory_space<vmem>>) attributes {dimension_semantics = [#tpu.dimension_semantics<parallel>], iteration_bounds = array<i64: 1>, scalar_prefetch = 0 : i64, scratch_operands = 0 : i64, tpu.core_type = #tpu.core_type<tc>, window_params = [{transform_indices = @transform_0, window_bounds = array<i64: 64, 128>}, {pipeline_mode = #tpu.pipeline_mode<synchronous>, transform_indices = @transform_1, window_bounds = array<i64: 1, 128>}, {pipeline_mode = #tpu.pipeline_mode<synchronous>, transform_indices = @transform_2, window_bounds = array<i64: 1, 128>}, {pipeline_mode = #tpu.pipeline_mode<synchronous>, transform_indices = @transform_3, window_bounds = array<i64: 1, 128>}, {pipeline_mode = #tpu.pipeline_mode<synchronous>, transform_indices = @transform_4, window_bounds = array<i64: 1, 128>}, {transform_indices = @transform_5, window_bounds = array<i64: 64, 128>}]} {
    %c0 = arith.constant 0 : index
    %c0_0 = arith.constant 0 : index
    %0 = vector.load %arg1[%c0, %c0_0] : memref<64x128xf32, #tpu.memory_space<vmem>>, vector<64x128xf32>
    %c0_1 = arith.constant 0 : index
    %c0_2 = arith.constant 0 : index
    %1 = vector.load %arg2[%c0_1, %c0_2] : memref<1x128xf32, #tpu.memory_space<vmem>>, vector<1x128xf32>
    %2 = vector.broadcast %1 : vector<1x128xf32> to vector<64x128xf32>
    %3 = arith.subf %0, %2 : vector<64x128xf32>
    %c0_3 = arith.constant 0 : index
    %c0_4 = arith.constant 0 : index
    %4 = vector.load %arg3[%c0_3, %c0_4] : memref<1x128xf32, #tpu.memory_space<vmem>>, vector<1x128xf32>
    %5 = vector.broadcast %4 : vector<1x128xf32> to vector<64x128xf32>
    %6 = arith.mulf %3, %5 : vector<64x128xf32>
    %c0_5 = arith.constant 0 : index
    %c0_6 = arith.constant 0 : index
    %7 = vector.load %arg4[%c0_5, %c0_6] : memref<1x128xf32, #tpu.memory_space<vmem>>, vector<1x128xf32>
    %8 = vector.broadcast %7 : vector<1x128xf32> to vector<64x128xf32>
    %9 = arith.mulf %6, %8 : vector<64x128xf32>
    %c0_7 = arith.constant 0 : index
    %c0_8 = arith.constant 0 : index
    %10 = vector.load %arg5[%c0_7, %c0_8] : memref<1x128xf32, #tpu.memory_space<vmem>>, vector<1x128xf32>
    %11 = vector.broadcast %10 : vector<1x128xf32> to vector<64x128xf32>
    %12 = arith.addf %9, %11 : vector<64x128xf32>
    %c0_9 = arith.constant 0 : index
    %c0_10 = arith.constant 0 : index
    %13 = vector.load %arg6[%c0_9, %c0_10] : memref<64x128xf32, #tpu.memory_space<vmem>>, vector<64x128xf32>
    tpu.vector_store %arg6[%c0_9, %c0_10], %12 {strides = array<i32>} : memref<64x128xf32, #tpu.memory_space<vmem>>, vector<64x128xf32>,
    return
  }
  func.func @transform_0(%arg0: i32) -> (i32, i32) {
    %c0_i32 = arith.constant 0 : i32
    %c0_i32_0 = arith.constant 0 : i32
    return %arg0, %c0_i32 : i32, i32
  }
  func.func @transform_1(%arg0: i32) -> (i32, i32) {
    %c0_i32 = arith.constant 0 : i32
    %c0_i32_0 = arith.constant 0 : i32
    %c0_i32_1 = arith.constant 0 : i32
    return %c0_i32, %c0_i32_0 : i32, i32
  }
  func.func @transform_2(%arg0: i32) -> (i32, i32) {
    %c0_i32 = arith.constant 0 : i32
    %c0_i32_0 = arith.constant 0 : i32
    %c0_i32_1 = arith.constant 0 : i32
    return %c0_i32, %c0_i32_0 : i32, i32
  }
  func.func @transform_3(%arg0: i32) -> (i32, i32) {
    %c0_i32 = arith.constant 0 : i32
    %c0_i32_0 = arith.constant 0 : i32
    %c0_i32_1 = arith.constant 0 : i32
    return %c0_i32, %c0_i32_0 : i32, i32
  }
  func.func @transform_4(%arg0: i32) -> (i32, i32) {
    %c0_i32 = arith.constant 0 : i32
    %c0_i32_0 = arith.constant 0 : i32
    %c0_i32_1 = arith.constant 0 : i32
    return %c0_i32, %c0_i32_0 : i32, i32
  }
  func.func @transform_5(%arg0: i32) -> (i32, i32) {
    %c0_i32 = arith.constant 0 : i32
    %c0_i32_0 = arith.constant 0 : i32
    return %arg0, %c0_i32 : i32, i32
  }
}

module attributes {stable_mosaic.version = 11 : i64} {
  func.func @_matmul_act_kernel(%arg0: i32, %arg1: i32, %arg2: i32, %arg3: memref<16x256xbf16, #tpu.memory_space<vmem>>, %arg4: memref<256x128xbf16, #tpu.memory_space<vmem>>, %arg5: memref<1x128xf32, #tpu.memory_space<vmem>>, %arg6: memref<16x128xf32, #tpu.memory_space<vmem>>, %arg7: memref<16x128xf32, #tpu.memory_space<vmem>>) attributes {dimension_semantics = [#tpu.dimension_semantics<parallel>, #tpu.dimension_semantics<parallel>, #tpu.dimension_semantics<arbitrary>], iteration_bounds = array<i64: 1, 1, 1>, scalar_prefetch = 0 : i64, scratch_operands = 1 : i64, tpu.core_type = #tpu.core_type<tc>, window_params = [{transform_indices = @transform_0, window_bounds = array<i64: 16, 256>}, {transform_indices = @transform_1, window_bounds = array<i64: 256, 128>}, {transform_indices = @transform_2, window_bounds = array<i64: 1, 128>}, {transform_indices = @transform_3, window_bounds = array<i64: 16, 128>}]} {
    %c0_i32 = arith.constant 0 : i32
    %0 = arith.cmpi eq, %arg2, %c0_i32 : i32
    %1 = arith.extui %0 : i1 to i32
    %c0_i32_0 = arith.constant 0 : i32
    %2 = arith.cmpi ne, %1, %c0_i32_0 : i32
    scf.if %2 {
      %cst_12 = arith.constant 0.000000e+00 : f32
      %17 = vector.broadcast %cst_12 : f32 to vector<16x128xf32>
      %c0_13 = arith.constant 0 : index
      %c0_14 = arith.constant 0 : index
      %18 = vector.load %arg7[%c0_13, %c0_14] : memref<16x128xf32, #tpu.memory_space<vmem>>, vector<16x128xf32>
      tpu.vector_store %arg7[%c0_13, %c0_14], %17 {strides = array<i32>} : memref<16x128xf32, #tpu.memory_space<vmem>>, vector<16x128xf32>,
    } else {
    }
    %c0 = arith.constant 0 : index
    %c0_1 = arith.constant 0 : index
    %3 = vector.load %arg3[%c0, %c0_1] : memref<16x256xbf16, #tpu.memory_space<vmem>>, vector<16x256xbf16>
    %cst = arith.constant 0.000000e+00 : bf16
    %4 = vector.broadcast %cst : bf16 to vector<16x256xbf16>
    %5 = arith.cmpf ogt, %3, %4 : vector<16x256xbf16>
    %cst_2 = arith.constant 2.001950e-01 : bf16
    %6 = vector.broadcast %cst_2 : bf16 to vector<16x256xbf16>
    %7 = arith.mulf %6, %3 : vector<16x256xbf16>
    %8 = arith.select %5, %3, %7 : vector<16x256xi1>, vector<16x256xbf16>
    %c0_3 = arith.constant 0 : index
    %c0_4 = arith.constant 0 : index
    %9 = vector.load %arg7[%c0_3, %c0_4] : memref<16x128xf32, #tpu.memory_space<vmem>>, vector<16x128xf32>
    %c0_5 = arith.constant 0 : index
    %c0_6 = arith.constant 0 : index
    %10 = vector.load %arg4[%c0_5, %c0_6] : memref<256x128xbf16, #tpu.memory_space<vmem>>, vector<256x128xbf16>
    %cst_7 = arith.constant dense<0.000000e+00> : vector<16x128xf32>
    %11 = tpu.matmul %8, %10, %cst_7 {dimension_numbers = #tpu.dot_dimension_numbers<[1], [0], [0], [1], [0, 0, 1, 1], [], []>} : vector<16x256xbf16>, vector<256x128xbf16>, vector<16x128xf32> -> vector<16x128xf32>
    %12 = arith.addf %9, %11 : vector<16x128xf32>
    %c0_8 = arith.constant 0 : index
    %c0_9 = arith.constant 0 : index
    %13 = vector.load %arg7[%c0_8, %c0_9] : memref<16x128xf32, #tpu.memory_space<vmem>>, vector<16x128xf32>
    tpu.vector_store %arg7[%c0_8, %c0_9], %12 {strides = array<i32>} : memref<16x128xf32, #tpu.memory_space<vmem>>, vector<16x128xf32>,
    %c0_i32_10 = arith.constant 0 : i32
    %14 = arith.cmpi eq, %arg2, %c0_i32_10 : i32
    %15 = arith.extui %14 : i1 to i32
    %c0_i32_11 = arith.constant 0 : i32
    %16 = arith.cmpi ne, %15, %c0_i32_11 : i32
    scf.if %16 {
      %c0_12 = arith.constant 0 : index
      %c0_13 = arith.constant 0 : index
      %17 = vector.load %arg7[%c0_12, %c0_13] : memref<16x128xf32, #tpu.memory_space<vmem>>, vector<16x128xf32>
      %c0_14 = arith.constant 0 : index
      %c0_15 = arith.constant 0 : index
      %18 = vector.load %arg5[%c0_14, %c0_15] : memref<1x128xf32, #tpu.memory_space<vmem>>, vector<1x128xf32>
      %19 = vector.broadcast %18 : vector<1x128xf32> to vector<16x128xf32>
      %20 = arith.addf %17, %19 : vector<16x128xf32>
      %c0_16 = arith.constant 0 : index
      %c0_17 = arith.constant 0 : index
      %21 = vector.load %arg6[%c0_16, %c0_17] : memref<16x128xf32, #tpu.memory_space<vmem>>, vector<16x128xf32>
      tpu.vector_store %arg6[%c0_16, %c0_17], %20 {strides = array<i32>} : memref<16x128xf32, #tpu.memory_space<vmem>>, vector<16x128xf32>,
    } else {
    }
    return
  }
  func.func @transform_0(%arg0: i32, %arg1: i32, %arg2: i32) -> (i32, i32) {
    %c0_i32 = arith.constant 0 : i32
    return %arg0, %arg2 : i32, i32
  }
  func.func @transform_1(%arg0: i32, %arg1: i32, %arg2: i32) -> (i32, i32) {
    %c0_i32 = arith.constant 0 : i32
    return %arg2, %arg1 : i32, i32
  }
  func.func @transform_2(%arg0: i32, %arg1: i32, %arg2: i32) -> (i32, i32) {
    %c0_i32 = arith.constant 0 : i32
    %c0_i32_0 = arith.constant 0 : i32
    return %c0_i32, %arg1 : i32, i32
  }
  func.func @transform_3(%arg0: i32, %arg1: i32, %arg2: i32) -> (i32, i32) {
    %c0_i32 = arith.constant 0 : i32
    return %arg0, %arg1 : i32, i32
  }
}

module attributes {stable_mosaic.version = 11 : i64} {
  func.func @_bn_stats_kernel(%arg0: i32, %arg1: memref<16x128xf32, #tpu.memory_space<vmem>>, %arg2: memref<1x128xf32, #tpu.memory_space<vmem>>, %arg3: memref<1x128xf32, #tpu.memory_space<vmem>>, %arg4: memref<1x128xf32, #tpu.memory_space<vmem>>, %arg5: memref<1x128xf32, #tpu.memory_space<vmem>>) attributes {dimension_semantics = [#tpu.dimension_semantics<arbitrary>], iteration_bounds = array<i64: 1>, scalar_prefetch = 0 : i64, scratch_operands = 2 : i64, tpu.core_type = #tpu.core_type<tc>, window_params = [{transform_indices = @transform_0, window_bounds = array<i64: 16, 128>}, {pipeline_mode = #tpu.pipeline_mode<synchronous>, transform_indices = @transform_1, window_bounds = array<i64: 1, 128>}, {pipeline_mode = #tpu.pipeline_mode<synchronous>, transform_indices = @transform_2, window_bounds = array<i64: 1, 128>}]} {
    %c0_i32 = arith.constant 0 : i32
    %0 = arith.cmpi eq, %arg0, %c0_i32 : i32
    %1 = arith.extui %0 : i1 to i32
    %c0_i32_0 = arith.constant 0 : i32
    %2 = arith.cmpi ne, %1, %c0_i32_0 : i32
    scf.if %2 {
      %cst_13 = arith.constant 0.000000e+00 : f32
      %18 = vector.broadcast %cst_13 : f32 to vector<1x128xf32>
      %c0_14 = arith.constant 0 : index
      %c0_15 = arith.constant 0 : index
      %19 = vector.load %arg4[%c0_14, %c0_15] : memref<1x128xf32, #tpu.memory_space<vmem>>, vector<1x128xf32>
      tpu.vector_store %arg4[%c0_14, %c0_15], %18 {strides = array<i32>} : memref<1x128xf32, #tpu.memory_space<vmem>>, vector<1x128xf32>,
      %cst_16 = arith.constant 0.000000e+00 : f32
      %20 = vector.broadcast %cst_16 : f32 to vector<1x128xf32>
      %c0_17 = arith.constant 0 : index
      %c0_18 = arith.constant 0 : index
      %21 = vector.load %arg5[%c0_17, %c0_18] : memref<1x128xf32, #tpu.memory_space<vmem>>, vector<1x128xf32>
      tpu.vector_store %arg5[%c0_17, %c0_18], %20 {strides = array<i32>} : memref<1x128xf32, #tpu.memory_space<vmem>>, vector<1x128xf32>,
    } else {
    }
    %c0 = arith.constant 0 : index
    %c0_1 = arith.constant 0 : index
    %3 = vector.load %arg1[%c0, %c0_1] : memref<16x128xf32, #tpu.memory_space<vmem>>, vector<16x128xf32>
    %c0_2 = arith.constant 0 : index
    %c0_3 = arith.constant 0 : index
    %4 = vector.load %arg4[%c0_2, %c0_3] : memref<1x128xf32, #tpu.memory_space<vmem>>, vector<1x128xf32>
    %cst = arith.constant dense<0.000000e+00> : vector<128xf32>
    %5 = vector.multi_reduction <add>, %3, %cst [0] : vector<16x128xf32> to vector<128xf32>
    %6 = vector.shape_cast %5 : vector<128xf32> to vector<1x128xf32>
    %7 = arith.addf %4, %6 : vector<1x128xf32>
    %c0_4 = arith.constant 0 : index
    %c0_5 = arith.constant 0 : index
    %8 = vector.load %arg4[%c0_4, %c0_5] : memref<1x128xf32, #tpu.memory_space<vmem>>, vector<1x128xf32>
    tpu.vector_store %arg4[%c0_4, %c0_5], %7 {strides = array<i32>} : memref<1x128xf32, #tpu.memory_space<vmem>>, vector<1x128xf32>,
    %c0_6 = arith.constant 0 : index
    %c0_7 = arith.constant 0 : index
    %9 = vector.load %arg5[%c0_6, %c0_7] : memref<1x128xf32, #tpu.memory_space<vmem>>, vector<1x128xf32>
    %10 = arith.mulf %3, %3 : vector<16x128xf32>
    %cst_8 = arith.constant dense<0.000000e+00> : vector<128xf32>
    %11 = vector.multi_reduction <add>, %10, %cst_8 [0] : vector<16x128xf32> to vector<128xf32>
    %12 = vector.shape_cast %11 : vector<128xf32> to vector<1x128xf32>
    %13 = arith.addf %9, %12 : vector<1x128xf32>
    %c0_9 = arith.constant 0 : index
    %c0_10 = arith.constant 0 : index
    %14 = vector.load %arg5[%c0_9, %c0_10] : memref<1x128xf32, #tpu.memory_space<vmem>>, vector<1x128xf32>
    tpu.vector_store %arg5[%c0_9, %c0_10], %13 {strides = array<i32>} : memref<1x128xf32, #tpu.memory_space<vmem>>, vector<1x128xf32>,
    %c0_i32_11 = arith.constant 0 : i32
    %15 = arith.cmpi eq, %arg0, %c0_i32_11 : i32
    %16 = arith.extui %15 : i1 to i32
    %c0_i32_12 = arith.constant 0 : i32
    %17 = arith.cmpi ne, %16, %c0_i32_12 : i32
    scf.if %17 {
      %c0_13 = arith.constant 0 : index
      %c0_14 = arith.constant 0 : index
      %18 = vector.load %arg4[%c0_13, %c0_14] : memref<1x128xf32, #tpu.memory_space<vmem>>, vector<1x128xf32>
      %cst_15 = arith.constant 1.600000e+01 : f32
      %19 = vector.broadcast %cst_15 : f32 to vector<1x128xf32>
      %20 = arith.divf %18, %19 : vector<1x128xf32>
      %c0_16 = arith.constant 0 : index
      %c0_17 = arith.constant 0 : index
      %21 = vector.load %arg5[%c0_16, %c0_17] : memref<1x128xf32, #tpu.memory_space<vmem>>, vector<1x128xf32>
      %cst_18 = arith.constant 1.600000e+01 : f32
      %22 = vector.broadcast %cst_18 : f32 to vector<1x128xf32>
      %23 = arith.divf %21, %22 : vector<1x128xf32>
      %24 = arith.mulf %20, %20 : vector<1x128xf32>
      %25 = arith.subf %23, %24 : vector<1x128xf32>
      %cst_19 = arith.constant 0.000000e+00 : f32
      %26 = vector.broadcast %cst_19 : f32 to vector<1x128xf32>
      %27 = arith.maximumf %25, %26 : vector<1x128xf32>
      %c0_20 = arith.constant 0 : index
      %c0_21 = arith.constant 0 : index
      %28 = vector.load %arg2[%c0_20, %c0_21] : memref<1x128xf32, #tpu.memory_space<vmem>>, vector<1x128xf32>
      tpu.vector_store %arg2[%c0_20, %c0_21], %20 {strides = array<i32>} : memref<1x128xf32, #tpu.memory_space<vmem>>, vector<1x128xf32>,
      %cst_22 = arith.constant 9.99999974E-6 : f32
      %29 = vector.broadcast %cst_22 : f32 to vector<1x128xf32>
      %30 = arith.addf %27, %29 : vector<1x128xf32>
      %31 = math.rsqrt %30 : vector<1x128xf32>
      %c0_23 = arith.constant 0 : index
      %c0_24 = arith.constant 0 : index
      %32 = vector.load %arg3[%c0_23, %c0_24] : memref<1x128xf32, #tpu.memory_space<vmem>>, vector<1x128xf32>
      tpu.vector_store %arg3[%c0_23, %c0_24], %31 {strides = array<i32>} : memref<1x128xf32, #tpu.memory_space<vmem>>, vector<1x128xf32>,
    } else {
    }
    return
  }
  func.func @transform_0(%arg0: i32) -> (i32, i32) {
    %c0_i32 = arith.constant 0 : i32
    %c0_i32_0 = arith.constant 0 : i32
    return %arg0, %c0_i32 : i32, i32
  }
  func.func @transform_1(%arg0: i32) -> (i32, i32) {
    %c0_i32 = arith.constant 0 : i32
    %c0_i32_0 = arith.constant 0 : i32
    %c0_i32_1 = arith.constant 0 : i32
    return %c0_i32, %c0_i32_0 : i32, i32
  }
  func.func @transform_2(%arg0: i32) -> (i32, i32) {
    %c0_i32 = arith.constant 0 : i32
    %c0_i32_0 = arith.constant 0 : i32
    %c0_i32_1 = arith.constant 0 : i32
    return %c0_i32, %c0_i32_0 : i32, i32
  }
}

module attributes {stable_mosaic.version = 11 : i64} {
  func.func @_bn_apply_kernel(%arg0: i32, %arg1: memref<16x128xf32, #tpu.memory_space<vmem>>, %arg2: memref<1x128xf32, #tpu.memory_space<vmem>>, %arg3: memref<1x128xf32, #tpu.memory_space<vmem>>, %arg4: memref<1x128xf32, #tpu.memory_space<vmem>>, %arg5: memref<1x128xf32, #tpu.memory_space<vmem>>, %arg6: memref<16x128xf32, #tpu.memory_space<vmem>>) attributes {dimension_semantics = [#tpu.dimension_semantics<parallel>], iteration_bounds = array<i64: 1>, scalar_prefetch = 0 : i64, scratch_operands = 0 : i64, tpu.core_type = #tpu.core_type<tc>, window_params = [{transform_indices = @transform_0, window_bounds = array<i64: 16, 128>}, {pipeline_mode = #tpu.pipeline_mode<synchronous>, transform_indices = @transform_1, window_bounds = array<i64: 1, 128>}, {pipeline_mode = #tpu.pipeline_mode<synchronous>, transform_indices = @transform_2, window_bounds = array<i64: 1, 128>}, {pipeline_mode = #tpu.pipeline_mode<synchronous>, transform_indices = @transform_3, window_bounds = array<i64: 1, 128>}, {pipeline_mode = #tpu.pipeline_mode<synchronous>, transform_indices = @transform_4, window_bounds = array<i64: 1, 128>}, {transform_indices = @transform_5, window_bounds = array<i64: 16, 128>}]} {
    %c0 = arith.constant 0 : index
    %c0_0 = arith.constant 0 : index
    %0 = vector.load %arg1[%c0, %c0_0] : memref<16x128xf32, #tpu.memory_space<vmem>>, vector<16x128xf32>
    %c0_1 = arith.constant 0 : index
    %c0_2 = arith.constant 0 : index
    %1 = vector.load %arg2[%c0_1, %c0_2] : memref<1x128xf32, #tpu.memory_space<vmem>>, vector<1x128xf32>
    %2 = vector.broadcast %1 : vector<1x128xf32> to vector<16x128xf32>
    %3 = arith.subf %0, %2 : vector<16x128xf32>
    %c0_3 = arith.constant 0 : index
    %c0_4 = arith.constant 0 : index
    %4 = vector.load %arg3[%c0_3, %c0_4] : memref<1x128xf32, #tpu.memory_space<vmem>>, vector<1x128xf32>
    %5 = vector.broadcast %4 : vector<1x128xf32> to vector<16x128xf32>
    %6 = arith.mulf %3, %5 : vector<16x128xf32>
    %c0_5 = arith.constant 0 : index
    %c0_6 = arith.constant 0 : index
    %7 = vector.load %arg4[%c0_5, %c0_6] : memref<1x128xf32, #tpu.memory_space<vmem>>, vector<1x128xf32>
    %8 = vector.broadcast %7 : vector<1x128xf32> to vector<16x128xf32>
    %9 = arith.mulf %6, %8 : vector<16x128xf32>
    %c0_7 = arith.constant 0 : index
    %c0_8 = arith.constant 0 : index
    %10 = vector.load %arg5[%c0_7, %c0_8] : memref<1x128xf32, #tpu.memory_space<vmem>>, vector<1x128xf32>
    %11 = vector.broadcast %10 : vector<1x128xf32> to vector<16x128xf32>
    %12 = arith.addf %9, %11 : vector<16x128xf32>
    %c0_9 = arith.constant 0 : index
    %c0_10 = arith.constant 0 : index
    %13 = vector.load %arg6[%c0_9, %c0_10] : memref<16x128xf32, #tpu.memory_space<vmem>>, vector<16x128xf32>
    tpu.vector_store %arg6[%c0_9, %c0_10], %12 {strides = array<i32>} : memref<16x128xf32, #tpu.memory_space<vmem>>, vector<16x128xf32>,
    return
  }
  func.func @transform_0(%arg0: i32) -> (i32, i32) {
    %c0_i32 = arith.constant 0 : i32
    %c0_i32_0 = arith.constant 0 : i32
    return %arg0, %c0_i32 : i32, i32
  }
  func.func @transform_1(%arg0: i32) -> (i32, i32) {
    %c0_i32 = arith.constant 0 : i32
    %c0_i32_0 = arith.constant 0 : i32
    %c0_i32_1 = arith.constant 0 : i32
    return %c0_i32, %c0_i32_0 : i32, i32
  }
  func.func @transform_2(%arg0: i32) -> (i32, i32) {
    %c0_i32 = arith.constant 0 : i32
    %c0_i32_0 = arith.constant 0 : i32
    %c0_i32_1 = arith.constant 0 : i32
    return %c0_i32, %c0_i32_0 : i32, i32
  }
  func.func @transform_3(%arg0: i32) -> (i32, i32) {
    %c0_i32 = arith.constant 0 : i32
    %c0_i32_0 = arith.constant 0 : i32
    %c0_i32_1 = arith.constant 0 : i32
    return %c0_i32, %c0_i32_0 : i32, i32
  }
  func.func @transform_4(%arg0: i32) -> (i32, i32) {
    %c0_i32 = arith.constant 0 : i32
    %c0_i32_0 = arith.constant 0 : i32
    %c0_i32_1 = arith.constant 0 : i32
    return %c0_i32, %c0_i32_0 : i32, i32
  }
  func.func @transform_5(%arg0: i32) -> (i32, i32) {
    %c0_i32 = arith.constant 0 : i32
    %c0_i32_0 = arith.constant 0 : i32
    return %arg0, %c0_i32 : i32, i32
  }
}

module attributes {stable_mosaic.version = 11 : i64} {
  func.func @_bn_stats_kernel(%arg0: i32, %arg1: memref<8x128xf32, #tpu.memory_space<vmem>>, %arg2: memref<1x128xf32, #tpu.memory_space<vmem>>, %arg3: memref<1x128xf32, #tpu.memory_space<vmem>>, %arg4: memref<1x128xf32, #tpu.memory_space<vmem>>, %arg5: memref<1x128xf32, #tpu.memory_space<vmem>>) attributes {dimension_semantics = [#tpu.dimension_semantics<arbitrary>], iteration_bounds = array<i64: 1>, scalar_prefetch = 0 : i64, scratch_operands = 2 : i64, tpu.core_type = #tpu.core_type<tc>, window_params = [{transform_indices = @transform_0, window_bounds = array<i64: 8, 128>}, {pipeline_mode = #tpu.pipeline_mode<synchronous>, transform_indices = @transform_1, window_bounds = array<i64: 1, 128>}, {pipeline_mode = #tpu.pipeline_mode<synchronous>, transform_indices = @transform_2, window_bounds = array<i64: 1, 128>}]} {
    %c0_i32 = arith.constant 0 : i32
    %0 = arith.cmpi eq, %arg0, %c0_i32 : i32
    %1 = arith.extui %0 : i1 to i32
    %c0_i32_0 = arith.constant 0 : i32
    %2 = arith.cmpi ne, %1, %c0_i32_0 : i32
    scf.if %2 {
      %cst_13 = arith.constant 0.000000e+00 : f32
      %18 = vector.broadcast %cst_13 : f32 to vector<1x128xf32>
      %c0_14 = arith.constant 0 : index
      %c0_15 = arith.constant 0 : index
      %19 = vector.load %arg4[%c0_14, %c0_15] : memref<1x128xf32, #tpu.memory_space<vmem>>, vector<1x128xf32>
      tpu.vector_store %arg4[%c0_14, %c0_15], %18 {strides = array<i32>} : memref<1x128xf32, #tpu.memory_space<vmem>>, vector<1x128xf32>,
      %cst_16 = arith.constant 0.000000e+00 : f32
      %20 = vector.broadcast %cst_16 : f32 to vector<1x128xf32>
      %c0_17 = arith.constant 0 : index
      %c0_18 = arith.constant 0 : index
      %21 = vector.load %arg5[%c0_17, %c0_18] : memref<1x128xf32, #tpu.memory_space<vmem>>, vector<1x128xf32>
      tpu.vector_store %arg5[%c0_17, %c0_18], %20 {strides = array<i32>} : memref<1x128xf32, #tpu.memory_space<vmem>>, vector<1x128xf32>,
    } else {
    }
    %c0 = arith.constant 0 : index
    %c0_1 = arith.constant 0 : index
    %3 = vector.load %arg1[%c0, %c0_1] : memref<8x128xf32, #tpu.memory_space<vmem>>, vector<8x128xf32>
    %c0_2 = arith.constant 0 : index
    %c0_3 = arith.constant 0 : index
    %4 = vector.load %arg4[%c0_2, %c0_3] : memref<1x128xf32, #tpu.memory_space<vmem>>, vector<1x128xf32>
    %cst = arith.constant dense<0.000000e+00> : vector<128xf32>
    %5 = vector.multi_reduction <add>, %3, %cst [0] : vector<8x128xf32> to vector<128xf32>
    %6 = vector.shape_cast %5 : vector<128xf32> to vector<1x128xf32>
    %7 = arith.addf %4, %6 : vector<1x128xf32>
    %c0_4 = arith.constant 0 : index
    %c0_5 = arith.constant 0 : index
    %8 = vector.load %arg4[%c0_4, %c0_5] : memref<1x128xf32, #tpu.memory_space<vmem>>, vector<1x128xf32>
    tpu.vector_store %arg4[%c0_4, %c0_5], %7 {strides = array<i32>} : memref<1x128xf32, #tpu.memory_space<vmem>>, vector<1x128xf32>,
    %c0_6 = arith.constant 0 : index
    %c0_7 = arith.constant 0 : index
    %9 = vector.load %arg5[%c0_6, %c0_7] : memref<1x128xf32, #tpu.memory_space<vmem>>, vector<1x128xf32>
    %10 = arith.mulf %3, %3 : vector<8x128xf32>
    %cst_8 = arith.constant dense<0.000000e+00> : vector<128xf32>
    %11 = vector.multi_reduction <add>, %10, %cst_8 [0] : vector<8x128xf32> to vector<128xf32>
    %12 = vector.shape_cast %11 : vector<128xf32> to vector<1x128xf32>
    %13 = arith.addf %9, %12 : vector<1x128xf32>
    %c0_9 = arith.constant 0 : index
    %c0_10 = arith.constant 0 : index
    %14 = vector.load %arg5[%c0_9, %c0_10] : memref<1x128xf32, #tpu.memory_space<vmem>>, vector<1x128xf32>
    tpu.vector_store %arg5[%c0_9, %c0_10], %13 {strides = array<i32>} : memref<1x128xf32, #tpu.memory_space<vmem>>, vector<1x128xf32>,
    %c0_i32_11 = arith.constant 0 : i32
    %15 = arith.cmpi eq, %arg0, %c0_i32_11 : i32
    %16 = arith.extui %15 : i1 to i32
    %c0_i32_12 = arith.constant 0 : i32
    %17 = arith.cmpi ne, %16, %c0_i32_12 : i32
    scf.if %17 {
      %c0_13 = arith.constant 0 : index
      %c0_14 = arith.constant 0 : index
      %18 = vector.load %arg4[%c0_13, %c0_14] : memref<1x128xf32, #tpu.memory_space<vmem>>, vector<1x128xf32>
      %cst_15 = arith.constant 4.000000e+00 : f32
      %19 = vector.broadcast %cst_15 : f32 to vector<1x128xf32>
      %20 = arith.divf %18, %19 : vector<1x128xf32>
      %c0_16 = arith.constant 0 : index
      %c0_17 = arith.constant 0 : index
      %21 = vector.load %arg5[%c0_16, %c0_17] : memref<1x128xf32, #tpu.memory_space<vmem>>, vector<1x128xf32>
      %cst_18 = arith.constant 4.000000e+00 : f32
      %22 = vector.broadcast %cst_18 : f32 to vector<1x128xf32>
      %23 = arith.divf %21, %22 : vector<1x128xf32>
      %24 = arith.mulf %20, %20 : vector<1x128xf32>
      %25 = arith.subf %23, %24 : vector<1x128xf32>
      %cst_19 = arith.constant 0.000000e+00 : f32
      %26 = vector.broadcast %cst_19 : f32 to vector<1x128xf32>
      %27 = arith.maximumf %25, %26 : vector<1x128xf32>
      %c0_20 = arith.constant 0 : index
      %c0_21 = arith.constant 0 : index
      %28 = vector.load %arg2[%c0_20, %c0_21] : memref<1x128xf32, #tpu.memory_space<vmem>>, vector<1x128xf32>
      tpu.vector_store %arg2[%c0_20, %c0_21], %20 {strides = array<i32>} : memref<1x128xf32, #tpu.memory_space<vmem>>, vector<1x128xf32>,
      %cst_22 = arith.constant 9.99999974E-6 : f32
      %29 = vector.broadcast %cst_22 : f32 to vector<1x128xf32>
      %30 = arith.addf %27, %29 : vector<1x128xf32>
      %31 = math.rsqrt %30 : vector<1x128xf32>
      %c0_23 = arith.constant 0 : index
      %c0_24 = arith.constant 0 : index
      %32 = vector.load %arg3[%c0_23, %c0_24] : memref<1x128xf32, #tpu.memory_space<vmem>>, vector<1x128xf32>
      tpu.vector_store %arg3[%c0_23, %c0_24], %31 {strides = array<i32>} : memref<1x128xf32, #tpu.memory_space<vmem>>, vector<1x128xf32>,
    } else {
    }
    return
  }
  func.func @transform_0(%arg0: i32) -> (i32, i32) {
    %c0_i32 = arith.constant 0 : i32
    %c0_i32_0 = arith.constant 0 : i32
    return %arg0, %c0_i32 : i32, i32
  }
  func.func @transform_1(%arg0: i32) -> (i32, i32) {
    %c0_i32 = arith.constant 0 : i32
    %c0_i32_0 = arith.constant 0 : i32
    %c0_i32_1 = arith.constant 0 : i32
    return %c0_i32, %c0_i32_0 : i32, i32
  }
  func.func @transform_2(%arg0: i32) -> (i32, i32) {
    %c0_i32 = arith.constant 0 : i32
    %c0_i32_0 = arith.constant 0 : i32
    %c0_i32_1 = arith.constant 0 : i32
    return %c0_i32, %c0_i32_0 : i32, i32
  }
}

module attributes {stable_mosaic.version = 11 : i64} {
  func.func @_matmul_act_kernel(%arg0: i32, %arg1: i32, %arg2: i32, %arg3: memref<8x512xbf16, #tpu.memory_space<vmem>>, %arg4: memref<512x128xbf16, #tpu.memory_space<vmem>>, %arg5: memref<1x128xf32, #tpu.memory_space<vmem>>, %arg6: memref<8x128xf32, #tpu.memory_space<vmem>>, %arg7: memref<8x128xf32, #tpu.memory_space<vmem>>) attributes {dimension_semantics = [#tpu.dimension_semantics<parallel>, #tpu.dimension_semantics<parallel>, #tpu.dimension_semantics<arbitrary>], iteration_bounds = array<i64: 1, 1, 1>, scalar_prefetch = 0 : i64, scratch_operands = 1 : i64, tpu.core_type = #tpu.core_type<tc>, window_params = [{transform_indices = @transform_0, window_bounds = array<i64: 8, 512>}, {transform_indices = @transform_1, window_bounds = array<i64: 512, 128>}, {transform_indices = @transform_2, window_bounds = array<i64: 1, 128>}, {transform_indices = @transform_3, window_bounds = array<i64: 8, 128>}]} {
    %c0_i32 = arith.constant 0 : i32
    %0 = arith.cmpi eq, %arg2, %c0_i32 : i32
    %1 = arith.extui %0 : i1 to i32
    %c0_i32_0 = arith.constant 0 : i32
    %2 = arith.cmpi ne, %1, %c0_i32_0 : i32
    scf.if %2 {
      %cst_12 = arith.constant 0.000000e+00 : f32
      %17 = vector.broadcast %cst_12 : f32 to vector<8x128xf32>
      %c0_13 = arith.constant 0 : index
      %c0_14 = arith.constant 0 : index
      %18 = vector.load %arg7[%c0_13, %c0_14] : memref<8x128xf32, #tpu.memory_space<vmem>>, vector<8x128xf32>
      tpu.vector_store %arg7[%c0_13, %c0_14], %17 {strides = array<i32>} : memref<8x128xf32, #tpu.memory_space<vmem>>, vector<8x128xf32>,
    } else {
    }
    %c0 = arith.constant 0 : index
    %c0_1 = arith.constant 0 : index
    %3 = vector.load %arg3[%c0, %c0_1] : memref<8x512xbf16, #tpu.memory_space<vmem>>, vector<8x512xbf16>
    %cst = arith.constant 0.000000e+00 : bf16
    %4 = vector.broadcast %cst : bf16 to vector<8x512xbf16>
    %5 = arith.cmpf ogt, %3, %4 : vector<8x512xbf16>
    %cst_2 = arith.constant 2.001950e-01 : bf16
    %6 = vector.broadcast %cst_2 : bf16 to vector<8x512xbf16>
    %7 = arith.mulf %6, %3 : vector<8x512xbf16>
    %8 = arith.select %5, %3, %7 : vector<8x512xi1>, vector<8x512xbf16>
    %c0_3 = arith.constant 0 : index
    %c0_4 = arith.constant 0 : index
    %9 = vector.load %arg7[%c0_3, %c0_4] : memref<8x128xf32, #tpu.memory_space<vmem>>, vector<8x128xf32>
    %c0_5 = arith.constant 0 : index
    %c0_6 = arith.constant 0 : index
    %10 = vector.load %arg4[%c0_5, %c0_6] : memref<512x128xbf16, #tpu.memory_space<vmem>>, vector<512x128xbf16>
    %cst_7 = arith.constant dense<0.000000e+00> : vector<8x128xf32>
    %11 = tpu.matmul %8, %10, %cst_7 {dimension_numbers = #tpu.dot_dimension_numbers<[1], [0], [0], [1], [0, 0, 1, 1], [], []>} : vector<8x512xbf16>, vector<512x128xbf16>, vector<8x128xf32> -> vector<8x128xf32>
    %12 = arith.addf %9, %11 : vector<8x128xf32>
    %c0_8 = arith.constant 0 : index
    %c0_9 = arith.constant 0 : index
    %13 = vector.load %arg7[%c0_8, %c0_9] : memref<8x128xf32, #tpu.memory_space<vmem>>, vector<8x128xf32>
    tpu.vector_store %arg7[%c0_8, %c0_9], %12 {strides = array<i32>} : memref<8x128xf32, #tpu.memory_space<vmem>>, vector<8x128xf32>,
    %c0_i32_10 = arith.constant 0 : i32
    %14 = arith.cmpi eq, %arg2, %c0_i32_10 : i32
    %15 = arith.extui %14 : i1 to i32
    %c0_i32_11 = arith.constant 0 : i32
    %16 = arith.cmpi ne, %15, %c0_i32_11 : i32
    scf.if %16 {
      %c0_12 = arith.constant 0 : index
      %c0_13 = arith.constant 0 : index
      %17 = vector.load %arg7[%c0_12, %c0_13] : memref<8x128xf32, #tpu.memory_space<vmem>>, vector<8x128xf32>
      %c0_14 = arith.constant 0 : index
      %c0_15 = arith.constant 0 : index
      %18 = vector.load %arg5[%c0_14, %c0_15] : memref<1x128xf32, #tpu.memory_space<vmem>>, vector<1x128xf32>
      %19 = vector.broadcast %18 : vector<1x128xf32> to vector<8x128xf32>
      %20 = arith.addf %17, %19 : vector<8x128xf32>
      %c0_16 = arith.constant 0 : index
      %c0_17 = arith.constant 0 : index
      %21 = vector.load %arg6[%c0_16, %c0_17] : memref<8x128xf32, #tpu.memory_space<vmem>>, vector<8x128xf32>
      tpu.vector_store %arg6[%c0_16, %c0_17], %20 {strides = array<i32>} : memref<8x128xf32, #tpu.memory_space<vmem>>, vector<8x128xf32>,
    } else {
    }
    return
  }
  func.func @transform_0(%arg0: i32, %arg1: i32, %arg2: i32) -> (i32, i32) {
    %c0_i32 = arith.constant 0 : i32
    return %arg0, %arg2 : i32, i32
  }
  func.func @transform_1(%arg0: i32, %arg1: i32, %arg2: i32) -> (i32, i32) {
    %c0_i32 = arith.constant 0 : i32
    return %arg2, %arg1 : i32, i32
  }
  func.func @transform_2(%arg0: i32, %arg1: i32, %arg2: i32) -> (i32, i32) {
    %c0_i32 = arith.constant 0 : i32
    %c0_i32_0 = arith.constant 0 : i32
    return %c0_i32, %arg1 : i32, i32
  }
  func.func @transform_3(%arg0: i32, %arg1: i32, %arg2: i32) -> (i32, i32) {
    %c0_i32 = arith.constant 0 : i32
    return %arg0, %arg1 : i32, i32
  }
}

module attributes {stable_mosaic.version = 11 : i64} {
  func.func @_bn_apply_kernel(%arg0: i32, %arg1: memref<8x128xf32, #tpu.memory_space<vmem>>, %arg2: memref<1x128xf32, #tpu.memory_space<vmem>>, %arg3: memref<1x128xf32, #tpu.memory_space<vmem>>, %arg4: memref<1x128xf32, #tpu.memory_space<vmem>>, %arg5: memref<1x128xf32, #tpu.memory_space<vmem>>, %arg6: memref<8x128xf32, #tpu.memory_space<vmem>>) attributes {dimension_semantics = [#tpu.dimension_semantics<parallel>], iteration_bounds = array<i64: 1>, scalar_prefetch = 0 : i64, scratch_operands = 0 : i64, tpu.core_type = #tpu.core_type<tc>, window_params = [{transform_indices = @transform_0, window_bounds = array<i64: 8, 128>}, {pipeline_mode = #tpu.pipeline_mode<synchronous>, transform_indices = @transform_1, window_bounds = array<i64: 1, 128>}, {pipeline_mode = #tpu.pipeline_mode<synchronous>, transform_indices = @transform_2, window_bounds = array<i64: 1, 128>}, {pipeline_mode = #tpu.pipeline_mode<synchronous>, transform_indices = @transform_3, window_bounds = array<i64: 1, 128>}, {pipeline_mode = #tpu.pipeline_mode<synchronous>, transform_indices = @transform_4, window_bounds = array<i64: 1, 128>}, {transform_indices = @transform_5, window_bounds = array<i64: 8, 128>}]} {
    %c0 = arith.constant 0 : index
    %c0_0 = arith.constant 0 : index
    %0 = vector.load %arg1[%c0, %c0_0] : memref<8x128xf32, #tpu.memory_space<vmem>>, vector<8x128xf32>
    %c0_1 = arith.constant 0 : index
    %c0_2 = arith.constant 0 : index
    %1 = vector.load %arg2[%c0_1, %c0_2] : memref<1x128xf32, #tpu.memory_space<vmem>>, vector<1x128xf32>
    %2 = vector.broadcast %1 : vector<1x128xf32> to vector<8x128xf32>
    %3 = arith.subf %0, %2 : vector<8x128xf32>
    %c0_3 = arith.constant 0 : index
    %c0_4 = arith.constant 0 : index
    %4 = vector.load %arg3[%c0_3, %c0_4] : memref<1x128xf32, #tpu.memory_space<vmem>>, vector<1x128xf32>
    %5 = vector.broadcast %4 : vector<1x128xf32> to vector<8x128xf32>
    %6 = arith.mulf %3, %5 : vector<8x128xf32>
    %c0_5 = arith.constant 0 : index
    %c0_6 = arith.constant 0 : index
    %7 = vector.load %arg4[%c0_5, %c0_6] : memref<1x128xf32, #tpu.memory_space<vmem>>, vector<1x128xf32>
    %8 = vector.broadcast %7 : vector<1x128xf32> to vector<8x128xf32>
    %9 = arith.mulf %6, %8 : vector<8x128xf32>
    %c0_7 = arith.constant 0 : index
    %c0_8 = arith.constant 0 : index
    %10 = vector.load %arg5[%c0_7, %c0_8] : memref<1x128xf32, #tpu.memory_space<vmem>>, vector<1x128xf32>
    %11 = vector.broadcast %10 : vector<1x128xf32> to vector<8x128xf32>
    %12 = arith.addf %9, %11 : vector<8x128xf32>
    %c0_9 = arith.constant 0 : index
    %c0_10 = arith.constant 0 : index
    %13 = vector.load %arg6[%c0_9, %c0_10] : memref<8x128xf32, #tpu.memory_space<vmem>>, vector<8x128xf32>
    tpu.vector_store %arg6[%c0_9, %c0_10], %12 {strides = array<i32>} : memref<8x128xf32, #tpu.memory_space<vmem>>, vector<8x128xf32>,
    return
  }
  func.func @transform_0(%arg0: i32) -> (i32, i32) {
    %c0_i32 = arith.constant 0 : i32
    %c0_i32_0 = arith.constant 0 : i32
    return %arg0, %c0_i32 : i32, i32
  }
  func.func @transform_1(%arg0: i32) -> (i32, i32) {
    %c0_i32 = arith.constant 0 : i32
    %c0_i32_0 = arith.constant 0 : i32
    %c0_i32_1 = arith.constant 0 : i32
    return %c0_i32, %c0_i32_0 : i32, i32
  }
  func.func @transform_2(%arg0: i32) -> (i32, i32) {
    %c0_i32 = arith.constant 0 : i32
    %c0_i32_0 = arith.constant 0 : i32
    %c0_i32_1 = arith.constant 0 : i32
    return %c0_i32, %c0_i32_0 : i32, i32
  }
  func.func @transform_3(%arg0: i32) -> (i32, i32) {
    %c0_i32 = arith.constant 0 : i32
    %c0_i32_0 = arith.constant 0 : i32
    %c0_i32_1 = arith.constant 0 : i32
    return %c0_i32, %c0_i32_0 : i32, i32
  }
  func.func @transform_4(%arg0: i32) -> (i32, i32) {
    %c0_i32 = arith.constant 0 : i32
    %c0_i32_0 = arith.constant 0 : i32
    %c0_i32_1 = arith.constant 0 : i32
    return %c0_i32, %c0_i32_0 : i32, i32
  }
  func.func @transform_5(%arg0: i32) -> (i32, i32) {
    %c0_i32 = arith.constant 0 : i32
    %c0_i32_0 = arith.constant 0 : i32
    return %arg0, %c0_i32 : i32, i32
  }
}

module attributes {stable_mosaic.version = 11 : i64} {
  func.func @_matmul_act_kernel(%arg0: i32, %arg1: i32, %arg2: i32, %arg3: memref<8x1024xbf16, #tpu.memory_space<vmem>>, %arg4: memref<1024x128xbf16, #tpu.memory_space<vmem>>, %arg5: memref<1x128xf32, #tpu.memory_space<vmem>>, %arg6: memref<8x128xf32, #tpu.memory_space<vmem>>, %arg7: memref<8x128xf32, #tpu.memory_space<vmem>>) attributes {dimension_semantics = [#tpu.dimension_semantics<parallel>, #tpu.dimension_semantics<parallel>, #tpu.dimension_semantics<arbitrary>], iteration_bounds = array<i64: 1, 1, 1>, scalar_prefetch = 0 : i64, scratch_operands = 1 : i64, tpu.core_type = #tpu.core_type<tc>, window_params = [{transform_indices = @transform_0, window_bounds = array<i64: 8, 1024>}, {transform_indices = @transform_1, window_bounds = array<i64: 1024, 128>}, {transform_indices = @transform_2, window_bounds = array<i64: 1, 128>}, {transform_indices = @transform_3, window_bounds = array<i64: 8, 128>}]} {
    %c0_i32 = arith.constant 0 : i32
    %0 = arith.cmpi eq, %arg2, %c0_i32 : i32
    %1 = arith.extui %0 : i1 to i32
    %c0_i32_0 = arith.constant 0 : i32
    %2 = arith.cmpi ne, %1, %c0_i32_0 : i32
    scf.if %2 {
      %cst_12 = arith.constant 0.000000e+00 : f32
      %17 = vector.broadcast %cst_12 : f32 to vector<8x128xf32>
      %c0_13 = arith.constant 0 : index
      %c0_14 = arith.constant 0 : index
      %18 = vector.load %arg7[%c0_13, %c0_14] : memref<8x128xf32, #tpu.memory_space<vmem>>, vector<8x128xf32>
      tpu.vector_store %arg7[%c0_13, %c0_14], %17 {strides = array<i32>} : memref<8x128xf32, #tpu.memory_space<vmem>>, vector<8x128xf32>,
    } else {
    }
    %c0 = arith.constant 0 : index
    %c0_1 = arith.constant 0 : index
    %3 = vector.load %arg3[%c0, %c0_1] : memref<8x1024xbf16, #tpu.memory_space<vmem>>, vector<8x1024xbf16>
    %cst = arith.constant 0.000000e+00 : bf16
    %4 = vector.broadcast %cst : bf16 to vector<8x1024xbf16>
    %5 = arith.cmpf ogt, %3, %4 : vector<8x1024xbf16>
    %cst_2 = arith.constant 2.001950e-01 : bf16
    %6 = vector.broadcast %cst_2 : bf16 to vector<8x1024xbf16>
    %7 = arith.mulf %6, %3 : vector<8x1024xbf16>
    %8 = arith.select %5, %3, %7 : vector<8x1024xi1>, vector<8x1024xbf16>
    %c0_3 = arith.constant 0 : index
    %c0_4 = arith.constant 0 : index
    %9 = vector.load %arg7[%c0_3, %c0_4] : memref<8x128xf32, #tpu.memory_space<vmem>>, vector<8x128xf32>
    %c0_5 = arith.constant 0 : index
    %c0_6 = arith.constant 0 : index
    %10 = vector.load %arg4[%c0_5, %c0_6] : memref<1024x128xbf16, #tpu.memory_space<vmem>>, vector<1024x128xbf16>
    %cst_7 = arith.constant dense<0.000000e+00> : vector<8x128xf32>
    %11 = tpu.matmul %8, %10, %cst_7 {dimension_numbers = #tpu.dot_dimension_numbers<[1], [0], [0], [1], [0, 0, 1, 1], [], []>} : vector<8x1024xbf16>, vector<1024x128xbf16>, vector<8x128xf32> -> vector<8x128xf32>
    %12 = arith.addf %9, %11 : vector<8x128xf32>
    %c0_8 = arith.constant 0 : index
    %c0_9 = arith.constant 0 : index
    %13 = vector.load %arg7[%c0_8, %c0_9] : memref<8x128xf32, #tpu.memory_space<vmem>>, vector<8x128xf32>
    tpu.vector_store %arg7[%c0_8, %c0_9], %12 {strides = array<i32>} : memref<8x128xf32, #tpu.memory_space<vmem>>, vector<8x128xf32>,
    %c0_i32_10 = arith.constant 0 : i32
    %14 = arith.cmpi eq, %arg2, %c0_i32_10 : i32
    %15 = arith.extui %14 : i1 to i32
    %c0_i32_11 = arith.constant 0 : i32
    %16 = arith.cmpi ne, %15, %c0_i32_11 : i32
    scf.if %16 {
      %c0_12 = arith.constant 0 : index
      %c0_13 = arith.constant 0 : index
      %17 = vector.load %arg7[%c0_12, %c0_13] : memref<8x128xf32, #tpu.memory_space<vmem>>, vector<8x128xf32>
      %c0_14 = arith.constant 0 : index
      %c0_15 = arith.constant 0 : index
      %18 = vector.load %arg5[%c0_14, %c0_15] : memref<1x128xf32, #tpu.memory_space<vmem>>, vector<1x128xf32>
      %19 = vector.broadcast %18 : vector<1x128xf32> to vector<8x128xf32>
      %20 = arith.addf %17, %19 : vector<8x128xf32>
      %c0_16 = arith.constant 0 : index
      %c0_17 = arith.constant 0 : index
      %21 = vector.load %arg6[%c0_16, %c0_17] : memref<8x128xf32, #tpu.memory_space<vmem>>, vector<8x128xf32>
      tpu.vector_store %arg6[%c0_16, %c0_17], %20 {strides = array<i32>} : memref<8x128xf32, #tpu.memory_space<vmem>>, vector<8x128xf32>,
    } else {
    }
    return
  }
  func.func @transform_0(%arg0: i32, %arg1: i32, %arg2: i32) -> (i32, i32) {
    %c0_i32 = arith.constant 0 : i32
    return %arg0, %arg2 : i32, i32
  }
  func.func @transform_1(%arg0: i32, %arg1: i32, %arg2: i32) -> (i32, i32) {
    %c0_i32 = arith.constant 0 : i32
    return %arg2, %arg1 : i32, i32
  }
  func.func @transform_2(%arg0: i32, %arg1: i32, %arg2: i32) -> (i32, i32) {
    %c0_i32 = arith.constant 0 : i32
    %c0_i32_0 = arith.constant 0 : i32
    return %c0_i32, %arg1 : i32, i32
  }
  func.func @transform_3(%arg0: i32, %arg1: i32, %arg2: i32) -> (i32, i32) {
    %c0_i32 = arith.constant 0 : i32
    return %arg0, %arg1 : i32, i32
  }
}

module attributes {stable_mosaic.version = 11 : i64} {
  func.func @_matmul_act_kernel(%arg0: i32, %arg1: i32, %arg2: i32, %arg3: memref<8x128xbf16, #tpu.memory_space<vmem>>, %arg4: memref<128x128xbf16, #tpu.memory_space<vmem>>, %arg5: memref<1x128xf32, #tpu.memory_space<vmem>>, %arg6: memref<8x128xf32, #tpu.memory_space<vmem>>, %arg7: memref<8x128xf32, #tpu.memory_space<vmem>>) attributes {dimension_semantics = [#tpu.dimension_semantics<parallel>, #tpu.dimension_semantics<parallel>, #tpu.dimension_semantics<arbitrary>], iteration_bounds = array<i64: 1, 1, 1>, scalar_prefetch = 0 : i64, scratch_operands = 1 : i64, tpu.core_type = #tpu.core_type<tc>, window_params = [{transform_indices = @transform_0, window_bounds = array<i64: 8, 128>}, {transform_indices = @transform_1, window_bounds = array<i64: 128, 128>}, {transform_indices = @transform_2, window_bounds = array<i64: 1, 128>}, {transform_indices = @transform_3, window_bounds = array<i64: 8, 128>}]} {
    %c0_i32 = arith.constant 0 : i32
    %0 = arith.cmpi eq, %arg2, %c0_i32 : i32
    %1 = arith.extui %0 : i1 to i32
    %c0_i32_0 = arith.constant 0 : i32
    %2 = arith.cmpi ne, %1, %c0_i32_0 : i32
    scf.if %2 {
      %cst_10 = arith.constant 0.000000e+00 : f32
      %12 = vector.broadcast %cst_10 : f32 to vector<8x128xf32>
      %c0_11 = arith.constant 0 : index
      %c0_12 = arith.constant 0 : index
      %13 = vector.load %arg7[%c0_11, %c0_12] : memref<8x128xf32, #tpu.memory_space<vmem>>, vector<8x128xf32>
      tpu.vector_store %arg7[%c0_11, %c0_12], %12 {strides = array<i32>} : memref<8x128xf32, #tpu.memory_space<vmem>>, vector<8x128xf32>,
    } else {
    }
    %c0 = arith.constant 0 : index
    %c0_1 = arith.constant 0 : index
    %3 = vector.load %arg3[%c0, %c0_1] : memref<8x128xbf16, #tpu.memory_space<vmem>>, vector<8x128xbf16>
    %c0_2 = arith.constant 0 : index
    %c0_3 = arith.constant 0 : index
    %4 = vector.load %arg7[%c0_2, %c0_3] : memref<8x128xf32, #tpu.memory_space<vmem>>, vector<8x128xf32>
    %c0_4 = arith.constant 0 : index
    %c0_5 = arith.constant 0 : index
    %5 = vector.load %arg4[%c0_4, %c0_5] : memref<128x128xbf16, #tpu.memory_space<vmem>>, vector<128x128xbf16>
    %cst = arith.constant dense<0.000000e+00> : vector<8x128xf32>
    %6 = tpu.matmul %3, %5, %cst {dimension_numbers = #tpu.dot_dimension_numbers<[1], [0], [0], [1], [0, 0, 1, 1], [], []>} : vector<8x128xbf16>, vector<128x128xbf16>, vector<8x128xf32> -> vector<8x128xf32>
    %7 = arith.addf %4, %6 : vector<8x128xf32>
    %c0_6 = arith.constant 0 : index
    %c0_7 = arith.constant 0 : index
    %8 = vector.load %arg7[%c0_6, %c0_7] : memref<8x128xf32, #tpu.memory_space<vmem>>, vector<8x128xf32>
    tpu.vector_store %arg7[%c0_6, %c0_7], %7 {strides = array<i32>} : memref<8x128xf32, #tpu.memory_space<vmem>>, vector<8x128xf32>,
    %c0_i32_8 = arith.constant 0 : i32
    %9 = arith.cmpi eq, %arg2, %c0_i32_8 : i32
    %10 = arith.extui %9 : i1 to i32
    %c0_i32_9 = arith.constant 0 : i32
    %11 = arith.cmpi ne, %10, %c0_i32_9 : i32
    scf.if %11 {
      %c0_10 = arith.constant 0 : index
      %c0_11 = arith.constant 0 : index
      %12 = vector.load %arg7[%c0_10, %c0_11] : memref<8x128xf32, #tpu.memory_space<vmem>>, vector<8x128xf32>
      %c0_12 = arith.constant 0 : index
      %c0_13 = arith.constant 0 : index
      %13 = vector.load %arg5[%c0_12, %c0_13] : memref<1x128xf32, #tpu.memory_space<vmem>>, vector<1x128xf32>
      %14 = vector.broadcast %13 : vector<1x128xf32> to vector<8x128xf32>
      %15 = arith.addf %12, %14 : vector<8x128xf32>
      %cst_14 = arith.constant 0.000000e+00 : f32
      %16 = vector.broadcast %cst_14 : f32 to vector<8x128xf32>
      %17 = arith.cmpf ogt, %15, %16 : vector<8x128xf32>
      %cst_15 = arith.constant 2.000000e-01 : f32
      %18 = vector.broadcast %cst_15 : f32 to vector<8x128xf32>
      %19 = arith.mulf %18, %15 : vector<8x128xf32>
      %20 = arith.select %17, %15, %19 : vector<8x128xi1>, vector<8x128xf32>
      %c0_16 = arith.constant 0 : index
      %c0_17 = arith.constant 0 : index
      %21 = vector.load %arg6[%c0_16, %c0_17] : memref<8x128xf32, #tpu.memory_space<vmem>>, vector<8x128xf32>
      tpu.vector_store %arg6[%c0_16, %c0_17], %20 {strides = array<i32>} : memref<8x128xf32, #tpu.memory_space<vmem>>, vector<8x128xf32>,
    } else {
    }
    return
  }
  func.func @transform_0(%arg0: i32, %arg1: i32, %arg2: i32) -> (i32, i32) {
    %c0_i32 = arith.constant 0 : i32
    return %arg0, %arg2 : i32, i32
  }
  func.func @transform_1(%arg0: i32, %arg1: i32, %arg2: i32) -> (i32, i32) {
    %c0_i32 = arith.constant 0 : i32
    return %arg2, %arg1 : i32, i32
  }
  func.func @transform_2(%arg0: i32, %arg1: i32, %arg2: i32) -> (i32, i32) {
    %c0_i32 = arith.constant 0 : i32
    %c0_i32_0 = arith.constant 0 : i32
    return %c0_i32, %arg1 : i32, i32
  }
  func.func @transform_3(%arg0: i32, %arg1: i32, %arg2: i32) -> (i32, i32) {
    %c0_i32 = arith.constant 0 : i32
    return %arg0, %arg1 : i32, i32
  }
}

module attributes {stable_mosaic.version = 11 : i64} {
  func.func @_matmul_act_kernel(%arg0: i32, %arg1: i32, %arg2: i32, %arg3: memref<8x640xbf16, #tpu.memory_space<vmem>>, %arg4: memref<640x256xbf16, #tpu.memory_space<vmem>>, %arg5: memref<1x256xf32, #tpu.memory_space<vmem>>, %arg6: memref<8x256xf32, #tpu.memory_space<vmem>>, %arg7: memref<8x256xf32, #tpu.memory_space<vmem>>) attributes {dimension_semantics = [#tpu.dimension_semantics<parallel>, #tpu.dimension_semantics<parallel>, #tpu.dimension_semantics<arbitrary>], iteration_bounds = array<i64: 1, 1, 1>, scalar_prefetch = 0 : i64, scratch_operands = 1 : i64, tpu.core_type = #tpu.core_type<tc>, window_params = [{transform_indices = @transform_0, window_bounds = array<i64: 8, 640>}, {transform_indices = @transform_1, window_bounds = array<i64: 640, 256>}, {transform_indices = @transform_2, window_bounds = array<i64: 1, 256>}, {transform_indices = @transform_3, window_bounds = array<i64: 8, 256>}]} {
    %c0_i32 = arith.constant 0 : i32
    %0 = arith.cmpi eq, %arg2, %c0_i32 : i32
    %1 = arith.extui %0 : i1 to i32
    %c0_i32_0 = arith.constant 0 : i32
    %2 = arith.cmpi ne, %1, %c0_i32_0 : i32
    scf.if %2 {
      %cst_11 = arith.constant 0.000000e+00 : f32
      %14 = vector.broadcast %cst_11 : f32 to vector<8x256xf32>
      %c0_12 = arith.constant 0 : index
      %c0_13 = arith.constant 0 : index
      %15 = vector.load %arg7[%c0_12, %c0_13] : memref<8x256xf32, #tpu.memory_space<vmem>>, vector<8x256xf32>
      tpu.vector_store %arg7[%c0_12, %c0_13], %14 {strides = array<i32>} : memref<8x256xf32, #tpu.memory_space<vmem>>, vector<8x256xf32>,
    } else {
    }
    %c0 = arith.constant 0 : index
    %c0_1 = arith.constant 0 : index
    %3 = vector.load %arg3[%c0, %c0_1] : memref<8x640xbf16, #tpu.memory_space<vmem>>, vector<8x640xbf16>
    %cst = arith.constant 0.000000e+00 : bf16
    %4 = vector.broadcast %cst : bf16 to vector<8x640xbf16>
    %5 = arith.maximumf %3, %4 : vector<8x640xbf16>
    %c0_2 = arith.constant 0 : index
    %c0_3 = arith.constant 0 : index
    %6 = vector.load %arg7[%c0_2, %c0_3] : memref<8x256xf32, #tpu.memory_space<vmem>>, vector<8x256xf32>
    %c0_4 = arith.constant 0 : index
    %c0_5 = arith.constant 0 : index
    %7 = vector.load %arg4[%c0_4, %c0_5] : memref<640x256xbf16, #tpu.memory_space<vmem>>, vector<640x256xbf16>
    %cst_6 = arith.constant dense<0.000000e+00> : vector<8x256xf32>
    %8 = tpu.matmul %5, %7, %cst_6 {dimension_numbers = #tpu.dot_dimension_numbers<[1], [0], [0], [1], [0, 0, 1, 1], [], []>} : vector<8x640xbf16>, vector<640x256xbf16>, vector<8x256xf32> -> vector<8x256xf32>
    %9 = arith.addf %6, %8 : vector<8x256xf32>
    %c0_7 = arith.constant 0 : index
    %c0_8 = arith.constant 0 : index
    %10 = vector.load %arg7[%c0_7, %c0_8] : memref<8x256xf32, #tpu.memory_space<vmem>>, vector<8x256xf32>
    tpu.vector_store %arg7[%c0_7, %c0_8], %9 {strides = array<i32>} : memref<8x256xf32, #tpu.memory_space<vmem>>, vector<8x256xf32>,
    %c0_i32_9 = arith.constant 0 : i32
    %11 = arith.cmpi eq, %arg2, %c0_i32_9 : i32
    %12 = arith.extui %11 : i1 to i32
    %c0_i32_10 = arith.constant 0 : i32
    %13 = arith.cmpi ne, %12, %c0_i32_10 : i32
    scf.if %13 {
      %c0_11 = arith.constant 0 : index
      %c0_12 = arith.constant 0 : index
      %14 = vector.load %arg7[%c0_11, %c0_12] : memref<8x256xf32, #tpu.memory_space<vmem>>, vector<8x256xf32>
      %c0_13 = arith.constant 0 : index
      %c0_14 = arith.constant 0 : index
      %15 = vector.load %arg5[%c0_13, %c0_14] : memref<1x256xf32, #tpu.memory_space<vmem>>, vector<1x256xf32>
      %16 = vector.broadcast %15 : vector<1x256xf32> to vector<8x256xf32>
      %17 = arith.addf %14, %16 : vector<8x256xf32>
      %c0_15 = arith.constant 0 : index
      %c0_16 = arith.constant 0 : index
      %18 = vector.load %arg6[%c0_15, %c0_16] : memref<8x256xf32, #tpu.memory_space<vmem>>, vector<8x256xf32>
      tpu.vector_store %arg6[%c0_15, %c0_16], %17 {strides = array<i32>} : memref<8x256xf32, #tpu.memory_space<vmem>>, vector<8x256xf32>,
    } else {
    }
    return
  }
  func.func @transform_0(%arg0: i32, %arg1: i32, %arg2: i32) -> (i32, i32) {
    %c0_i32 = arith.constant 0 : i32
    return %arg0, %arg2 : i32, i32
  }
  func.func @transform_1(%arg0: i32, %arg1: i32, %arg2: i32) -> (i32, i32) {
    %c0_i32 = arith.constant 0 : i32
    return %arg2, %arg1 : i32, i32
  }
  func.func @transform_2(%arg0: i32, %arg1: i32, %arg2: i32) -> (i32, i32) {
    %c0_i32 = arith.constant 0 : i32
    %c0_i32_0 = arith.constant 0 : i32
    return %c0_i32, %arg1 : i32, i32
  }
  func.func @transform_3(%arg0: i32, %arg1: i32, %arg2: i32) -> (i32, i32) {
    %c0_i32 = arith.constant 0 : i32
    return %arg0, %arg1 : i32, i32
  }
}

module attributes {stable_mosaic.version = 11 : i64} {
  func.func @_matmul_act_kernel(%arg0: i32, %arg1: i32, %arg2: i32, %arg3: memref<8x1152xbf16, #tpu.memory_space<vmem>>, %arg4: memref<1152x128xbf16, #tpu.memory_space<vmem>>, %arg5: memref<1x128xf32, #tpu.memory_space<vmem>>, %arg6: memref<8x128xf32, #tpu.memory_space<vmem>>, %arg7: memref<8x128xf32, #tpu.memory_space<vmem>>) attributes {dimension_semantics = [#tpu.dimension_semantics<parallel>, #tpu.dimension_semantics<parallel>, #tpu.dimension_semantics<arbitrary>], iteration_bounds = array<i64: 1, 1, 1>, scalar_prefetch = 0 : i64, scratch_operands = 1 : i64, tpu.core_type = #tpu.core_type<tc>, window_params = [{transform_indices = @transform_0, window_bounds = array<i64: 8, 1152>}, {transform_indices = @transform_1, window_bounds = array<i64: 1152, 128>}, {transform_indices = @transform_2, window_bounds = array<i64: 1, 128>}, {transform_indices = @transform_3, window_bounds = array<i64: 8, 128>}]} {
    %c0_i32 = arith.constant 0 : i32
    %0 = arith.cmpi eq, %arg2, %c0_i32 : i32
    %1 = arith.extui %0 : i1 to i32
    %c0_i32_0 = arith.constant 0 : i32
    %2 = arith.cmpi ne, %1, %c0_i32_0 : i32
    scf.if %2 {
      %cst_11 = arith.constant 0.000000e+00 : f32
      %14 = vector.broadcast %cst_11 : f32 to vector<8x128xf32>
      %c0_12 = arith.constant 0 : index
      %c0_13 = arith.constant 0 : index
      %15 = vector.load %arg7[%c0_12, %c0_13] : memref<8x128xf32, #tpu.memory_space<vmem>>, vector<8x128xf32>
      tpu.vector_store %arg7[%c0_12, %c0_13], %14 {strides = array<i32>} : memref<8x128xf32, #tpu.memory_space<vmem>>, vector<8x128xf32>,
    } else {
    }
    %c0 = arith.constant 0 : index
    %c0_1 = arith.constant 0 : index
    %3 = vector.load %arg3[%c0, %c0_1] : memref<8x1152xbf16, #tpu.memory_space<vmem>>, vector<8x1152xbf16>
    %cst = arith.constant 0.000000e+00 : bf16
    %4 = vector.broadcast %cst : bf16 to vector<8x1152xbf16>
    %5 = arith.maximumf %3, %4 : vector<8x1152xbf16>
    %c0_2 = arith.constant 0 : index
    %c0_3 = arith.constant 0 : index
    %6 = vector.load %arg7[%c0_2, %c0_3] : memref<8x128xf32, #tpu.memory_space<vmem>>, vector<8x128xf32>
    %c0_4 = arith.constant 0 : index
    %c0_5 = arith.constant 0 : index
    %7 = vector.load %arg4[%c0_4, %c0_5] : memref<1152x128xbf16, #tpu.memory_space<vmem>>, vector<1152x128xbf16>
    %cst_6 = arith.constant dense<0.000000e+00> : vector<8x128xf32>
    %8 = tpu.matmul %5, %7, %cst_6 {dimension_numbers = #tpu.dot_dimension_numbers<[1], [0], [0], [1], [0, 0, 1, 1], [], []>} : vector<8x1152xbf16>, vector<1152x128xbf16>, vector<8x128xf32> -> vector<8x128xf32>
    %9 = arith.addf %6, %8 : vector<8x128xf32>
    %c0_7 = arith.constant 0 : index
    %c0_8 = arith.constant 0 : index
    %10 = vector.load %arg7[%c0_7, %c0_8] : memref<8x128xf32, #tpu.memory_space<vmem>>, vector<8x128xf32>
    tpu.vector_store %arg7[%c0_7, %c0_8], %9 {strides = array<i32>} : memref<8x128xf32, #tpu.memory_space<vmem>>, vector<8x128xf32>,
    %c0_i32_9 = arith.constant 0 : i32
    %11 = arith.cmpi eq, %arg2, %c0_i32_9 : i32
    %12 = arith.extui %11 : i1 to i32
    %c0_i32_10 = arith.constant 0 : i32
    %13 = arith.cmpi ne, %12, %c0_i32_10 : i32
    scf.if %13 {
      %c0_11 = arith.constant 0 : index
      %c0_12 = arith.constant 0 : index
      %14 = vector.load %arg7[%c0_11, %c0_12] : memref<8x128xf32, #tpu.memory_space<vmem>>, vector<8x128xf32>
      %c0_13 = arith.constant 0 : index
      %c0_14 = arith.constant 0 : index
      %15 = vector.load %arg5[%c0_13, %c0_14] : memref<1x128xf32, #tpu.memory_space<vmem>>, vector<1x128xf32>
      %16 = vector.broadcast %15 : vector<1x128xf32> to vector<8x128xf32>
      %17 = arith.addf %14, %16 : vector<8x128xf32>
      %c0_15 = arith.constant 0 : index
      %c0_16 = arith.constant 0 : index
      %18 = vector.load %arg6[%c0_15, %c0_16] : memref<8x128xf32, #tpu.memory_space<vmem>>, vector<8x128xf32>
      tpu.vector_store %arg6[%c0_15, %c0_16], %17 {strides = array<i32>} : memref<8x128xf32, #tpu.memory_space<vmem>>, vector<8x128xf32>,
    } else {
    }
    return
  }
  func.func @transform_0(%arg0: i32, %arg1: i32, %arg2: i32) -> (i32, i32) {
    %c0_i32 = arith.constant 0 : i32
    return %arg0, %arg2 : i32, i32
  }
  func.func @transform_1(%arg0: i32, %arg1: i32, %arg2: i32) -> (i32, i32) {
    %c0_i32 = arith.constant 0 : i32
    return %arg2, %arg1 : i32, i32
  }
  func.func @transform_2(%arg0: i32, %arg1: i32, %arg2: i32) -> (i32, i32) {
    %c0_i32 = arith.constant 0 : i32
    %c0_i32_0 = arith.constant 0 : i32
    return %c0_i32, %arg1 : i32, i32
  }
  func.func @transform_3(%arg0: i32, %arg1: i32, %arg2: i32) -> (i32, i32) {
    %c0_i32 = arith.constant 0 : i32
    return %arg0, %arg1 : i32, i32
  }
}

module attributes {stable_mosaic.version = 11 : i64} {
  func.func @_matmul_act_kernel(%arg0: i32, %arg1: i32, %arg2: i32, %arg3: memref<16x640xbf16, #tpu.memory_space<vmem>>, %arg4: memref<640x128xbf16, #tpu.memory_space<vmem>>, %arg5: memref<1x128xf32, #tpu.memory_space<vmem>>, %arg6: memref<16x128xf32, #tpu.memory_space<vmem>>, %arg7: memref<16x128xf32, #tpu.memory_space<vmem>>) attributes {dimension_semantics = [#tpu.dimension_semantics<parallel>, #tpu.dimension_semantics<parallel>, #tpu.dimension_semantics<arbitrary>], iteration_bounds = array<i64: 1, 1, 1>, scalar_prefetch = 0 : i64, scratch_operands = 1 : i64, tpu.core_type = #tpu.core_type<tc>, window_params = [{transform_indices = @transform_0, window_bounds = array<i64: 16, 640>}, {transform_indices = @transform_1, window_bounds = array<i64: 640, 128>}, {transform_indices = @transform_2, window_bounds = array<i64: 1, 128>}, {transform_indices = @transform_3, window_bounds = array<i64: 16, 128>}]} {
    %c0_i32 = arith.constant 0 : i32
    %0 = arith.cmpi eq, %arg2, %c0_i32 : i32
    %1 = arith.extui %0 : i1 to i32
    %c0_i32_0 = arith.constant 0 : i32
    %2 = arith.cmpi ne, %1, %c0_i32_0 : i32
    scf.if %2 {
      %cst_11 = arith.constant 0.000000e+00 : f32
      %14 = vector.broadcast %cst_11 : f32 to vector<16x128xf32>
      %c0_12 = arith.constant 0 : index
      %c0_13 = arith.constant 0 : index
      %15 = vector.load %arg7[%c0_12, %c0_13] : memref<16x128xf32, #tpu.memory_space<vmem>>, vector<16x128xf32>
      tpu.vector_store %arg7[%c0_12, %c0_13], %14 {strides = array<i32>} : memref<16x128xf32, #tpu.memory_space<vmem>>, vector<16x128xf32>,
    } else {
    }
    %c0 = arith.constant 0 : index
    %c0_1 = arith.constant 0 : index
    %3 = vector.load %arg3[%c0, %c0_1] : memref<16x640xbf16, #tpu.memory_space<vmem>>, vector<16x640xbf16>
    %cst = arith.constant 0.000000e+00 : bf16
    %4 = vector.broadcast %cst : bf16 to vector<16x640xbf16>
    %5 = arith.maximumf %3, %4 : vector<16x640xbf16>
    %c0_2 = arith.constant 0 : index
    %c0_3 = arith.constant 0 : index
    %6 = vector.load %arg7[%c0_2, %c0_3] : memref<16x128xf32, #tpu.memory_space<vmem>>, vector<16x128xf32>
    %c0_4 = arith.constant 0 : index
    %c0_5 = arith.constant 0 : index
    %7 = vector.load %arg4[%c0_4, %c0_5] : memref<640x128xbf16, #tpu.memory_space<vmem>>, vector<640x128xbf16>
    %cst_6 = arith.constant dense<0.000000e+00> : vector<16x128xf32>
    %8 = tpu.matmul %5, %7, %cst_6 {dimension_numbers = #tpu.dot_dimension_numbers<[1], [0], [0], [1], [0, 0, 1, 1], [], []>} : vector<16x640xbf16>, vector<640x128xbf16>, vector<16x128xf32> -> vector<16x128xf32>
    %9 = arith.addf %6, %8 : vector<16x128xf32>
    %c0_7 = arith.constant 0 : index
    %c0_8 = arith.constant 0 : index
    %10 = vector.load %arg7[%c0_7, %c0_8] : memref<16x128xf32, #tpu.memory_space<vmem>>, vector<16x128xf32>
    tpu.vector_store %arg7[%c0_7, %c0_8], %9 {strides = array<i32>} : memref<16x128xf32, #tpu.memory_space<vmem>>, vector<16x128xf32>,
    %c0_i32_9 = arith.constant 0 : i32
    %11 = arith.cmpi eq, %arg2, %c0_i32_9 : i32
    %12 = arith.extui %11 : i1 to i32
    %c0_i32_10 = arith.constant 0 : i32
    %13 = arith.cmpi ne, %12, %c0_i32_10 : i32
    scf.if %13 {
      %c0_11 = arith.constant 0 : index
      %c0_12 = arith.constant 0 : index
      %14 = vector.load %arg7[%c0_11, %c0_12] : memref<16x128xf32, #tpu.memory_space<vmem>>, vector<16x128xf32>
      %c0_13 = arith.constant 0 : index
      %c0_14 = arith.constant 0 : index
      %15 = vector.load %arg5[%c0_13, %c0_14] : memref<1x128xf32, #tpu.memory_space<vmem>>, vector<1x128xf32>
      %16 = vector.broadcast %15 : vector<1x128xf32> to vector<16x128xf32>
      %17 = arith.addf %14, %16 : vector<16x128xf32>
      %c0_15 = arith.constant 0 : index
      %c0_16 = arith.constant 0 : index
      %18 = vector.load %arg6[%c0_15, %c0_16] : memref<16x128xf32, #tpu.memory_space<vmem>>, vector<16x128xf32>
      tpu.vector_store %arg6[%c0_15, %c0_16], %17 {strides = array<i32>} : memref<16x128xf32, #tpu.memory_space<vmem>>, vector<16x128xf32>,
    } else {
    }
    return
  }
  func.func @transform_0(%arg0: i32, %arg1: i32, %arg2: i32) -> (i32, i32) {
    %c0_i32 = arith.constant 0 : i32
    return %arg0, %arg2 : i32, i32
  }
  func.func @transform_1(%arg0: i32, %arg1: i32, %arg2: i32) -> (i32, i32) {
    %c0_i32 = arith.constant 0 : i32
    return %arg2, %arg1 : i32, i32
  }
  func.func @transform_2(%arg0: i32, %arg1: i32, %arg2: i32) -> (i32, i32) {
    %c0_i32 = arith.constant 0 : i32
    %c0_i32_0 = arith.constant 0 : i32
    return %c0_i32, %arg1 : i32, i32
  }
  func.func @transform_3(%arg0: i32, %arg1: i32, %arg2: i32) -> (i32, i32) {
    %c0_i32 = arith.constant 0 : i32
    return %arg0, %arg1 : i32, i32
  }
}

module attributes {stable_mosaic.version = 11 : i64} {
  func.func @_matmul_act_kernel(%arg0: i32, %arg1: i32, %arg2: i32, %arg3: memref<64x384xbf16, #tpu.memory_space<vmem>>, %arg4: memref<384x128xbf16, #tpu.memory_space<vmem>>, %arg5: memref<1x128xf32, #tpu.memory_space<vmem>>, %arg6: memref<64x128xf32, #tpu.memory_space<vmem>>, %arg7: memref<64x128xf32, #tpu.memory_space<vmem>>) attributes {dimension_semantics = [#tpu.dimension_semantics<parallel>, #tpu.dimension_semantics<parallel>, #tpu.dimension_semantics<arbitrary>], iteration_bounds = array<i64: 1, 1, 1>, scalar_prefetch = 0 : i64, scratch_operands = 1 : i64, tpu.core_type = #tpu.core_type<tc>, window_params = [{transform_indices = @transform_0, window_bounds = array<i64: 64, 384>}, {transform_indices = @transform_1, window_bounds = array<i64: 384, 128>}, {transform_indices = @transform_2, window_bounds = array<i64: 1, 128>}, {transform_indices = @transform_3, window_bounds = array<i64: 64, 128>}]} {
    %c0_i32 = arith.constant 0 : i32
    %0 = arith.cmpi eq, %arg2, %c0_i32 : i32
    %1 = arith.extui %0 : i1 to i32
    %c0_i32_0 = arith.constant 0 : i32
    %2 = arith.cmpi ne, %1, %c0_i32_0 : i32
    scf.if %2 {
      %cst_11 = arith.constant 0.000000e+00 : f32
      %14 = vector.broadcast %cst_11 : f32 to vector<64x128xf32>
      %c0_12 = arith.constant 0 : index
      %c0_13 = arith.constant 0 : index
      %15 = vector.load %arg7[%c0_12, %c0_13] : memref<64x128xf32, #tpu.memory_space<vmem>>, vector<64x128xf32>
      tpu.vector_store %arg7[%c0_12, %c0_13], %14 {strides = array<i32>} : memref<64x128xf32, #tpu.memory_space<vmem>>, vector<64x128xf32>,
    } else {
    }
    %c0 = arith.constant 0 : index
    %c0_1 = arith.constant 0 : index
    %3 = vector.load %arg3[%c0, %c0_1] : memref<64x384xbf16, #tpu.memory_space<vmem>>, vector<64x384xbf16>
    %cst = arith.constant 0.000000e+00 : bf16
    %4 = vector.broadcast %cst : bf16 to vector<64x384xbf16>
    %5 = arith.maximumf %3, %4 : vector<64x384xbf16>
    %c0_2 = arith.constant 0 : index
    %c0_3 = arith.constant 0 : index
    %6 = vector.load %arg7[%c0_2, %c0_3] : memref<64x128xf32, #tpu.memory_space<vmem>>, vector<64x128xf32>
    %c0_4 = arith.constant 0 : index
    %c0_5 = arith.constant 0 : index
    %7 = vector.load %arg4[%c0_4, %c0_5] : memref<384x128xbf16, #tpu.memory_space<vmem>>, vector<384x128xbf16>
    %cst_6 = arith.constant dense<0.000000e+00> : vector<64x128xf32>
    %8 = tpu.matmul %5, %7, %cst_6 {dimension_numbers = #tpu.dot_dimension_numbers<[1], [0], [0], [1], [0, 0, 1, 1], [], []>} : vector<64x384xbf16>, vector<384x128xbf16>, vector<64x128xf32> -> vector<64x128xf32>
    %9 = arith.addf %6, %8 : vector<64x128xf32>
    %c0_7 = arith.constant 0 : index
    %c0_8 = arith.constant 0 : index
    %10 = vector.load %arg7[%c0_7, %c0_8] : memref<64x128xf32, #tpu.memory_space<vmem>>, vector<64x128xf32>
    tpu.vector_store %arg7[%c0_7, %c0_8], %9 {strides = array<i32>} : memref<64x128xf32, #tpu.memory_space<vmem>>, vector<64x128xf32>,
    %c0_i32_9 = arith.constant 0 : i32
    %11 = arith.cmpi eq, %arg2, %c0_i32_9 : i32
    %12 = arith.extui %11 : i1 to i32
    %c0_i32_10 = arith.constant 0 : i32
    %13 = arith.cmpi ne, %12, %c0_i32_10 : i32
    scf.if %13 {
      %c0_11 = arith.constant 0 : index
      %c0_12 = arith.constant 0 : index
      %14 = vector.load %arg7[%c0_11, %c0_12] : memref<64x128xf32, #tpu.memory_space<vmem>>, vector<64x128xf32>
      %c0_13 = arith.constant 0 : index
      %c0_14 = arith.constant 0 : index
      %15 = vector.load %arg5[%c0_13, %c0_14] : memref<1x128xf32, #tpu.memory_space<vmem>>, vector<1x128xf32>
      %16 = vector.broadcast %15 : vector<1x128xf32> to vector<64x128xf32>
      %17 = arith.addf %14, %16 : vector<64x128xf32>
      %c0_15 = arith.constant 0 : index
      %c0_16 = arith.constant 0 : index
      %18 = vector.load %arg6[%c0_15, %c0_16] : memref<64x128xf32, #tpu.memory_space<vmem>>, vector<64x128xf32>
      tpu.vector_store %arg6[%c0_15, %c0_16], %17 {strides = array<i32>} : memref<64x128xf32, #tpu.memory_space<vmem>>, vector<64x128xf32>,
    } else {
    }
    return
  }
  func.func @transform_0(%arg0: i32, %arg1: i32, %arg2: i32) -> (i32, i32) {
    %c0_i32 = arith.constant 0 : i32
    return %arg0, %arg2 : i32, i32
  }
  func.func @transform_1(%arg0: i32, %arg1: i32, %arg2: i32) -> (i32, i32) {
    %c0_i32 = arith.constant 0 : i32
    return %arg2, %arg1 : i32, i32
  }
  func.func @transform_2(%arg0: i32, %arg1: i32, %arg2: i32) -> (i32, i32) {
    %c0_i32 = arith.constant 0 : i32
    %c0_i32_0 = arith.constant 0 : i32
    return %c0_i32, %arg1 : i32, i32
  }
  func.func @transform_3(%arg0: i32, %arg1: i32, %arg2: i32) -> (i32, i32) {
    %c0_i32 = arith.constant 0 : i32
    return %arg0, %arg1 : i32, i32
  }
}

module attributes {stable_mosaic.version = 11 : i64} {
  func.func @_bn_stats_kernel(%arg0: i32, %arg1: memref<256x128xf32, #tpu.memory_space<vmem>>, %arg2: memref<1x128xf32, #tpu.memory_space<vmem>>, %arg3: memref<1x128xf32, #tpu.memory_space<vmem>>, %arg4: memref<1x128xf32, #tpu.memory_space<vmem>>, %arg5: memref<1x128xf32, #tpu.memory_space<vmem>>) attributes {dimension_semantics = [#tpu.dimension_semantics<arbitrary>], iteration_bounds = array<i64: 1>, scalar_prefetch = 0 : i64, scratch_operands = 2 : i64, tpu.core_type = #tpu.core_type<tc>, window_params = [{transform_indices = @transform_0, window_bounds = array<i64: 256, 128>}, {pipeline_mode = #tpu.pipeline_mode<synchronous>, transform_indices = @transform_1, window_bounds = array<i64: 1, 128>}, {pipeline_mode = #tpu.pipeline_mode<synchronous>, transform_indices = @transform_2, window_bounds = array<i64: 1, 128>}]} {
    %c0_i32 = arith.constant 0 : i32
    %0 = arith.cmpi eq, %arg0, %c0_i32 : i32
    %1 = arith.extui %0 : i1 to i32
    %c0_i32_0 = arith.constant 0 : i32
    %2 = arith.cmpi ne, %1, %c0_i32_0 : i32
    scf.if %2 {
      %cst_13 = arith.constant 0.000000e+00 : f32
      %18 = vector.broadcast %cst_13 : f32 to vector<1x128xf32>
      %c0_14 = arith.constant 0 : index
      %c0_15 = arith.constant 0 : index
      %19 = vector.load %arg4[%c0_14, %c0_15] : memref<1x128xf32, #tpu.memory_space<vmem>>, vector<1x128xf32>
      tpu.vector_store %arg4[%c0_14, %c0_15], %18 {strides = array<i32>} : memref<1x128xf32, #tpu.memory_space<vmem>>, vector<1x128xf32>,
      %cst_16 = arith.constant 0.000000e+00 : f32
      %20 = vector.broadcast %cst_16 : f32 to vector<1x128xf32>
      %c0_17 = arith.constant 0 : index
      %c0_18 = arith.constant 0 : index
      %21 = vector.load %arg5[%c0_17, %c0_18] : memref<1x128xf32, #tpu.memory_space<vmem>>, vector<1x128xf32>
      tpu.vector_store %arg5[%c0_17, %c0_18], %20 {strides = array<i32>} : memref<1x128xf32, #tpu.memory_space<vmem>>, vector<1x128xf32>,
    } else {
    }
    %c0 = arith.constant 0 : index
    %c0_1 = arith.constant 0 : index
    %3 = vector.load %arg1[%c0, %c0_1] : memref<256x128xf32, #tpu.memory_space<vmem>>, vector<256x128xf32>
    %c0_2 = arith.constant 0 : index
    %c0_3 = arith.constant 0 : index
    %4 = vector.load %arg4[%c0_2, %c0_3] : memref<1x128xf32, #tpu.memory_space<vmem>>, vector<1x128xf32>
    %cst = arith.constant dense<0.000000e+00> : vector<128xf32>
    %5 = vector.multi_reduction <add>, %3, %cst [0] : vector<256x128xf32> to vector<128xf32>
    %6 = vector.shape_cast %5 : vector<128xf32> to vector<1x128xf32>
    %7 = arith.addf %4, %6 : vector<1x128xf32>
    %c0_4 = arith.constant 0 : index
    %c0_5 = arith.constant 0 : index
    %8 = vector.load %arg4[%c0_4, %c0_5] : memref<1x128xf32, #tpu.memory_space<vmem>>, vector<1x128xf32>
    tpu.vector_store %arg4[%c0_4, %c0_5], %7 {strides = array<i32>} : memref<1x128xf32, #tpu.memory_space<vmem>>, vector<1x128xf32>,
    %c0_6 = arith.constant 0 : index
    %c0_7 = arith.constant 0 : index
    %9 = vector.load %arg5[%c0_6, %c0_7] : memref<1x128xf32, #tpu.memory_space<vmem>>, vector<1x128xf32>
    %10 = arith.mulf %3, %3 : vector<256x128xf32>
    %cst_8 = arith.constant dense<0.000000e+00> : vector<128xf32>
    %11 = vector.multi_reduction <add>, %10, %cst_8 [0] : vector<256x128xf32> to vector<128xf32>
    %12 = vector.shape_cast %11 : vector<128xf32> to vector<1x128xf32>
    %13 = arith.addf %9, %12 : vector<1x128xf32>
    %c0_9 = arith.constant 0 : index
    %c0_10 = arith.constant 0 : index
    %14 = vector.load %arg5[%c0_9, %c0_10] : memref<1x128xf32, #tpu.memory_space<vmem>>, vector<1x128xf32>
    tpu.vector_store %arg5[%c0_9, %c0_10], %13 {strides = array<i32>} : memref<1x128xf32, #tpu.memory_space<vmem>>, vector<1x128xf32>,
    %c0_i32_11 = arith.constant 0 : i32
    %15 = arith.cmpi eq, %arg0, %c0_i32_11 : i32
    %16 = arith.extui %15 : i1 to i32
    %c0_i32_12 = arith.constant 0 : i32
    %17 = arith.cmpi ne, %16, %c0_i32_12 : i32
    scf.if %17 {
      %c0_13 = arith.constant 0 : index
      %c0_14 = arith.constant 0 : index
      %18 = vector.load %arg4[%c0_13, %c0_14] : memref<1x128xf32, #tpu.memory_space<vmem>>, vector<1x128xf32>
      %cst_15 = arith.constant 2.560000e+02 : f32
      %19 = vector.broadcast %cst_15 : f32 to vector<1x128xf32>
      %20 = arith.divf %18, %19 : vector<1x128xf32>
      %c0_16 = arith.constant 0 : index
      %c0_17 = arith.constant 0 : index
      %21 = vector.load %arg5[%c0_16, %c0_17] : memref<1x128xf32, #tpu.memory_space<vmem>>, vector<1x128xf32>
      %cst_18 = arith.constant 2.560000e+02 : f32
      %22 = vector.broadcast %cst_18 : f32 to vector<1x128xf32>
      %23 = arith.divf %21, %22 : vector<1x128xf32>
      %24 = arith.mulf %20, %20 : vector<1x128xf32>
      %25 = arith.subf %23, %24 : vector<1x128xf32>
      %cst_19 = arith.constant 0.000000e+00 : f32
      %26 = vector.broadcast %cst_19 : f32 to vector<1x128xf32>
      %27 = arith.maximumf %25, %26 : vector<1x128xf32>
      %c0_20 = arith.constant 0 : index
      %c0_21 = arith.constant 0 : index
      %28 = vector.load %arg2[%c0_20, %c0_21] : memref<1x128xf32, #tpu.memory_space<vmem>>, vector<1x128xf32>
      tpu.vector_store %arg2[%c0_20, %c0_21], %20 {strides = array<i32>} : memref<1x128xf32, #tpu.memory_space<vmem>>, vector<1x128xf32>,
      %cst_22 = arith.constant 9.99999974E-6 : f32
      %29 = vector.broadcast %cst_22 : f32 to vector<1x128xf32>
      %30 = arith.addf %27, %29 : vector<1x128xf32>
      %31 = math.rsqrt %30 : vector<1x128xf32>
      %c0_23 = arith.constant 0 : index
      %c0_24 = arith.constant 0 : index
      %32 = vector.load %arg3[%c0_23, %c0_24] : memref<1x128xf32, #tpu.memory_space<vmem>>, vector<1x128xf32>
      tpu.vector_store %arg3[%c0_23, %c0_24], %31 {strides = array<i32>} : memref<1x128xf32, #tpu.memory_space<vmem>>, vector<1x128xf32>,
    } else {
    }
    return
  }
  func.func @transform_0(%arg0: i32) -> (i32, i32) {
    %c0_i32 = arith.constant 0 : i32
    %c0_i32_0 = arith.constant 0 : i32
    return %arg0, %c0_i32 : i32, i32
  }
  func.func @transform_1(%arg0: i32) -> (i32, i32) {
    %c0_i32 = arith.constant 0 : i32
    %c0_i32_0 = arith.constant 0 : i32
    %c0_i32_1 = arith.constant 0 : i32
    return %c0_i32, %c0_i32_0 : i32, i32
  }
  func.func @transform_2(%arg0: i32) -> (i32, i32) {
    %c0_i32 = arith.constant 0 : i32
    %c0_i32_0 = arith.constant 0 : i32
    %c0_i32_1 = arith.constant 0 : i32
    return %c0_i32, %c0_i32_0 : i32, i32
  }
}

module attributes {stable_mosaic.version = 11 : i64} {
  func.func @_bn_apply_kernel(%arg0: i32, %arg1: memref<256x128xf32, #tpu.memory_space<vmem>>, %arg2: memref<1x128xf32, #tpu.memory_space<vmem>>, %arg3: memref<1x128xf32, #tpu.memory_space<vmem>>, %arg4: memref<1x128xf32, #tpu.memory_space<vmem>>, %arg5: memref<1x128xf32, #tpu.memory_space<vmem>>, %arg6: memref<256x128xf32, #tpu.memory_space<vmem>>) attributes {dimension_semantics = [#tpu.dimension_semantics<parallel>], iteration_bounds = array<i64: 1>, scalar_prefetch = 0 : i64, scratch_operands = 0 : i64, tpu.core_type = #tpu.core_type<tc>, window_params = [{transform_indices = @transform_0, window_bounds = array<i64: 256, 128>}, {pipeline_mode = #tpu.pipeline_mode<synchronous>, transform_indices = @transform_1, window_bounds = array<i64: 1, 128>}, {pipeline_mode = #tpu.pipeline_mode<synchronous>, transform_indices = @transform_2, window_bounds = array<i64: 1, 128>}, {pipeline_mode = #tpu.pipeline_mode<synchronous>, transform_indices = @transform_3, window_bounds = array<i64: 1, 128>}, {pipeline_mode = #tpu.pipeline_mode<synchronous>, transform_indices = @transform_4, window_bounds = array<i64: 1, 128>}, {transform_indices = @transform_5, window_bounds = array<i64: 256, 128>}]} {
    %c0 = arith.constant 0 : index
    %c0_0 = arith.constant 0 : index
    %0 = vector.load %arg1[%c0, %c0_0] : memref<256x128xf32, #tpu.memory_space<vmem>>, vector<256x128xf32>
    %c0_1 = arith.constant 0 : index
    %c0_2 = arith.constant 0 : index
    %1 = vector.load %arg2[%c0_1, %c0_2] : memref<1x128xf32, #tpu.memory_space<vmem>>, vector<1x128xf32>
    %2 = vector.broadcast %1 : vector<1x128xf32> to vector<256x128xf32>
    %3 = arith.subf %0, %2 : vector<256x128xf32>
    %c0_3 = arith.constant 0 : index
    %c0_4 = arith.constant 0 : index
    %4 = vector.load %arg3[%c0_3, %c0_4] : memref<1x128xf32, #tpu.memory_space<vmem>>, vector<1x128xf32>
    %5 = vector.broadcast %4 : vector<1x128xf32> to vector<256x128xf32>
    %6 = arith.mulf %3, %5 : vector<256x128xf32>
    %c0_5 = arith.constant 0 : index
    %c0_6 = arith.constant 0 : index
    %7 = vector.load %arg4[%c0_5, %c0_6] : memref<1x128xf32, #tpu.memory_space<vmem>>, vector<1x128xf32>
    %8 = vector.broadcast %7 : vector<1x128xf32> to vector<256x128xf32>
    %9 = arith.mulf %6, %8 : vector<256x128xf32>
    %c0_7 = arith.constant 0 : index
    %c0_8 = arith.constant 0 : index
    %10 = vector.load %arg5[%c0_7, %c0_8] : memref<1x128xf32, #tpu.memory_space<vmem>>, vector<1x128xf32>
    %11 = vector.broadcast %10 : vector<1x128xf32> to vector<256x128xf32>
    %12 = arith.addf %9, %11 : vector<256x128xf32>
    %c0_9 = arith.constant 0 : index
    %c0_10 = arith.constant 0 : index
    %13 = vector.load %arg6[%c0_9, %c0_10] : memref<256x128xf32, #tpu.memory_space<vmem>>, vector<256x128xf32>
    tpu.vector_store %arg6[%c0_9, %c0_10], %12 {strides = array<i32>} : memref<256x128xf32, #tpu.memory_space<vmem>>, vector<256x128xf32>,
    return
  }
  func.func @transform_0(%arg0: i32) -> (i32, i32) {
    %c0_i32 = arith.constant 0 : i32
    %c0_i32_0 = arith.constant 0 : i32
    return %arg0, %c0_i32 : i32, i32
  }
  func.func @transform_1(%arg0: i32) -> (i32, i32) {
    %c0_i32 = arith.constant 0 : i32
    %c0_i32_0 = arith.constant 0 : i32
    %c0_i32_1 = arith.constant 0 : i32
    return %c0_i32, %c0_i32_0 : i32, i32
  }
  func.func @transform_2(%arg0: i32) -> (i32, i32) {
    %c0_i32 = arith.constant 0 : i32
    %c0_i32_0 = arith.constant 0 : i32
    %c0_i32_1 = arith.constant 0 : i32
    return %c0_i32, %c0_i32_0 : i32, i32
  }
  func.func @transform_3(%arg0: i32) -> (i32, i32) {
    %c0_i32 = arith.constant 0 : i32
    %c0_i32_0 = arith.constant 0 : i32
    %c0_i32_1 = arith.constant 0 : i32
    return %c0_i32, %c0_i32_0 : i32, i32
  }
  func.func @transform_4(%arg0: i32) -> (i32, i32) {
    %c0_i32 = arith.constant 0 : i32
    %c0_i32_0 = arith.constant 0 : i32
    %c0_i32_1 = arith.constant 0 : i32
    return %c0_i32, %c0_i32_0 : i32, i32
  }
  func.func @transform_5(%arg0: i32) -> (i32, i32) {
    %c0_i32 = arith.constant 0 : i32
    %c0_i32_0 = arith.constant 0 : i32
    return %arg0, %c0_i32 : i32, i32
  }
}

module attributes {stable_mosaic.version = 11 : i64} {
  func.func @_matmul_act_kernel(%arg0: i32, %arg1: i32, %arg2: i32, %arg3: memref<256x256xbf16, #tpu.memory_space<vmem>>, %arg4: memref<256x128xbf16, #tpu.memory_space<vmem>>, %arg5: memref<1x128xf32, #tpu.memory_space<vmem>>, %arg6: memref<256x128xf32, #tpu.memory_space<vmem>>, %arg7: memref<256x128xf32, #tpu.memory_space<vmem>>) attributes {dimension_semantics = [#tpu.dimension_semantics<parallel>, #tpu.dimension_semantics<parallel>, #tpu.dimension_semantics<arbitrary>], iteration_bounds = array<i64: 1, 1, 1>, scalar_prefetch = 0 : i64, scratch_operands = 1 : i64, tpu.core_type = #tpu.core_type<tc>, window_params = [{transform_indices = @transform_0, window_bounds = array<i64: 256, 256>}, {transform_indices = @transform_1, window_bounds = array<i64: 256, 128>}, {transform_indices = @transform_2, window_bounds = array<i64: 1, 128>}, {transform_indices = @transform_3, window_bounds = array<i64: 256, 128>}]} {
    %c0_i32 = arith.constant 0 : i32
    %0 = arith.cmpi eq, %arg2, %c0_i32 : i32
    %1 = arith.extui %0 : i1 to i32
    %c0_i32_0 = arith.constant 0 : i32
    %2 = arith.cmpi ne, %1, %c0_i32_0 : i32
    scf.if %2 {
      %cst_11 = arith.constant 0.000000e+00 : f32
      %14 = vector.broadcast %cst_11 : f32 to vector<256x128xf32>
      %c0_12 = arith.constant 0 : index
      %c0_13 = arith.constant 0 : index
      %15 = vector.load %arg7[%c0_12, %c0_13] : memref<256x128xf32, #tpu.memory_space<vmem>>, vector<256x128xf32>
      tpu.vector_store %arg7[%c0_12, %c0_13], %14 {strides = array<i32>} : memref<256x128xf32, #tpu.memory_space<vmem>>, vector<256x128xf32>,
    } else {
    }
    %c0 = arith.constant 0 : index
    %c0_1 = arith.constant 0 : index
    %3 = vector.load %arg3[%c0, %c0_1] : memref<256x256xbf16, #tpu.memory_space<vmem>>, vector<256x256xbf16>
    %cst = arith.constant 0.000000e+00 : bf16
    %4 = vector.broadcast %cst : bf16 to vector<256x256xbf16>
    %5 = arith.maximumf %3, %4 : vector<256x256xbf16>
    %c0_2 = arith.constant 0 : index
    %c0_3 = arith.constant 0 : index
    %6 = vector.load %arg7[%c0_2, %c0_3] : memref<256x128xf32, #tpu.memory_space<vmem>>, vector<256x128xf32>
    %c0_4 = arith.constant 0 : index
    %c0_5 = arith.constant 0 : index
    %7 = vector.load %arg4[%c0_4, %c0_5] : memref<256x128xbf16, #tpu.memory_space<vmem>>, vector<256x128xbf16>
    %cst_6 = arith.constant dense<0.000000e+00> : vector<256x128xf32>
    %8 = tpu.matmul %5, %7, %cst_6 {dimension_numbers = #tpu.dot_dimension_numbers<[1], [0], [0], [1], [0, 0, 1, 1], [], []>} : vector<256x256xbf16>, vector<256x128xbf16>, vector<256x128xf32> -> vector<256x128xf32>
    %9 = arith.addf %6, %8 : vector<256x128xf32>
    %c0_7 = arith.constant 0 : index
    %c0_8 = arith.constant 0 : index
    %10 = vector.load %arg7[%c0_7, %c0_8] : memref<256x128xf32, #tpu.memory_space<vmem>>, vector<256x128xf32>
    tpu.vector_store %arg7[%c0_7, %c0_8], %9 {strides = array<i32>} : memref<256x128xf32, #tpu.memory_space<vmem>>, vector<256x128xf32>,
    %c0_i32_9 = arith.constant 0 : i32
    %11 = arith.cmpi eq, %arg2, %c0_i32_9 : i32
    %12 = arith.extui %11 : i1 to i32
    %c0_i32_10 = arith.constant 0 : i32
    %13 = arith.cmpi ne, %12, %c0_i32_10 : i32
    scf.if %13 {
      %c0_11 = arith.constant 0 : index
      %c0_12 = arith.constant 0 : index
      %14 = vector.load %arg7[%c0_11, %c0_12] : memref<256x128xf32, #tpu.memory_space<vmem>>, vector<256x128xf32>
      %c0_13 = arith.constant 0 : index
      %c0_14 = arith.constant 0 : index
      %15 = vector.load %arg5[%c0_13, %c0_14] : memref<1x128xf32, #tpu.memory_space<vmem>>, vector<1x128xf32>
      %16 = vector.broadcast %15 : vector<1x128xf32> to vector<256x128xf32>
      %17 = arith.addf %14, %16 : vector<256x128xf32>
      %18 = math.tanh %17 : vector<256x128xf32>
      %c0_15 = arith.constant 0 : index
      %c0_16 = arith.constant 0 : index
      %19 = vector.load %arg6[%c0_15, %c0_16] : memref<256x128xf32, #tpu.memory_space<vmem>>, vector<256x128xf32>
      tpu.vector_store %arg6[%c0_15, %c0_16], %18 {strides = array<i32>} : memref<256x128xf32, #tpu.memory_space<vmem>>, vector<256x128xf32>,
    } else {
    }
    return
  }
  func.func @transform_0(%arg0: i32, %arg1: i32, %arg2: i32) -> (i32, i32) {
    %c0_i32 = arith.constant 0 : i32
    return %arg0, %arg2 : i32, i32
  }
  func.func @transform_1(%arg0: i32, %arg1: i32, %arg2: i32) -> (i32, i32) {
    %c0_i32 = arith.constant 0 : i32
    return %arg2, %arg1 : i32, i32
  }
  func.func @transform_2(%arg0: i32, %arg1: i32, %arg2: i32) -> (i32, i32) {
    %c0_i32 = arith.constant 0 : i32
    %c0_i32_0 = arith.constant 0 : i32
    return %c0_i32, %arg1 : i32, i32
  }
  func.func @transform_3(%arg0: i32, %arg1: i32, %arg2: i32) -> (i32, i32) {
    %c0_i32 = arith.constant 0 : i32
    return %arg0, %arg1 : i32, i32
  }
}

</mosaic_0001>

<bundles_post_ra>
// kernel: forward.25
= control target key start
LH: loop header
LB: loop body
LE: loop exit
PB: predicated region body
PF: predicated region fallthrough
CT: control target
= control target key end

     0   :  { %s972_s1 = inlined_call_operand.vmem [shape: bf16[128,128], index: 1, kind: input, shape index: {}]   ;;  %s973_s0 = inlined_call_operand.vmem [shape: bf16[256,128], index: 0, kind: input, shape index: {}]   ;;  %s974_s2 = inlined_call_operand.vmem [shape: f32[1,128], index: 2, kind: input, shape index: {}]   ;;  %s975_s3 = inlined_call_operand.vmem [shape: f32[256,128], index: 3, kind: output, shape index: {}]  }
   0x1   :  { %v723_v0 = vld [vmem:[%s972_s1] sm:$0xff]   ;;  %v724_v1 = vld [vmem:[%s972_s1 + $0x8] sm:$0xff]   ;;  %v725_v2 = vld [vmem:[%s972_s1 + $0x10] sm:$0xff]  }
   0x2   :  { %659 = vmatprep.subr.bf16.mxu0 %v723_v0  ;;  %707 = vmatprep.subr.bf16.mxu1 %v723_v0  ;;  %v726_v3 = vld [vmem:[%s972_s1 + $0x18] sm:$0xff]   ;;  %v731_v4 = vld [vmem:[%s973_s0] sm:$0xff]   ;;  %v728_v7 = vld [vmem:[%s972_s1 + $0x28] sm:$0xff]  }
   0x3   :  { %660 = vmatpush3.bf16.msra.mxu0 %v723_v0  ;;  %715 = vmatpush3.bf16.msra.mxu1 %v723_v0  ;;  %v732_v5 = vld [vmem:[%s973_s0 + $0x40] sm:$0xff]   ;;  %v729_v8 = vld [vmem:[%s972_s1 + $0x30] sm:$0xff]   ;;  %v730_v9 = vld [vmem:[%s972_s1 + $0x38] sm:$0xff]  }
   0x4   :  { %661 = vmatprep.subr.bf16.mxu0 %v724_v1  ;;  %708 = vmatprep.subr.bf16.mxu1 %v724_v1  ;;  %v727_v6 = vld [vmem:[%s972_s1 + $0x20] sm:$0xff]   ;;  %v733_v10 = vld [vmem:[%s973_s0 + $0x8] sm:$0xff]   ;;  %v735_v12 = vld [vmem:[%s973_s0 + $0x10] sm:$0xff]  }
   0x5   :  { %675 = vmatprep.mubr.bf16.mxu0 %v731_v4  ;;  %691 = vmatprep.mubr.bf16.mxu1 %v732_v5  ;;  %v734_v11 = vld [vmem:[%s973_s0 + $0x48] sm:$0xff]   ;;  %v736_v13 = vld [vmem:[%s973_s0 + $0x50] sm:$0xff]   ;;  %v737_v14 = vld [vmem:[%s973_s0 + $0x18] sm:$0xff]  }
   0x6   :  { %v738_v15 = vld [vmem:[%s973_s0 + $0x58] sm:$0xff]   ;;  %v739_v16 = vld [vmem:[%s973_s0 + $0x20] sm:$0xff]   ;;  %v741_v18 = vld [vmem:[%s973_s0 + $0x28] sm:$0xff]  }
   0x7   :  { %662 = vmatpush3.bf16.msra.mxu0 %v724_v1  ;;  %716 = vmatpush3.bf16.msra.mxu1 %v724_v1  ;;  %v740_v17 = vld [vmem:[%s973_s0 + $0x60] sm:$0xff]   ;;  %v742_v19 = vld [vmem:[%s973_s0 + $0x68] sm:$0xff]   ;;  %v743_v20 = vld [vmem:[%s973_s0 + $0x30] sm:$0xff]  }
   0x8   :  { %663 = vmatprep.subr.bf16.mxu0 %v725_v2  ;;  %709 = vmatprep.subr.bf16.mxu1 %v725_v2  ;;  %v744_v21 = vld [vmem:[%s973_s0 + $0x70] sm:$0xff]   ;;  %v745_v22 = vld [vmem:[%s973_s0 + $0x38] sm:$0xff]   ;;  %v842_v24 = vld [vmem:[%s974_s2] ss:$0 sm:$0xff] }
   0x9   :  { %v746_v23 = vld [vmem:[%s973_s0 + $0x78] sm:$0xff]  }
   0xb   :  { %664 = vmatpush3.bf16.msra.mxu0 %v725_v2  ;;  %717 = vmatpush3.bf16.msra.mxu1 %v725_v2 }
   0xc   :  { %665 = vmatprep.subr.bf16.mxu0 %v726_v3  ;;  %710 = vmatprep.subr.bf16.mxu1 %v726_v3 }
   0xf   :  { %666 = vmatpush3.bf16.msra.mxu0 %v726_v3  ;;  %718 = vmatpush3.bf16.msra.mxu1 %v726_v3 }
  0x10   :  { %667 = vmatprep.subr.bf16.mxu0 %v727_v6  ;;  %711 = vmatprep.subr.bf16.mxu1 %v727_v6 }
  0x13   :  { %668 = vmatpush3.bf16.msra.mxu0 %v727_v6  ;;  %719 = vmatpush3.bf16.msra.mxu1 %v727_v6 }
  0x14   :  { %669 = vmatprep.subr.bf16.mxu0 %v728_v7  ;;  %712 = vmatprep.subr.bf16.mxu1 %v728_v7 }
  0x17   :  { %670 = vmatpush3.bf16.msra.mxu0 %v728_v7  ;;  %720 = vmatpush3.bf16.msra.mxu1 %v728_v7 }
  0x18   :  { %671 = vmatprep.subr.bf16.mxu0 %v729_v8  ;;  %713 = vmatprep.subr.bf16.mxu1 %v729_v8 }
  0x1b   :  { %672 = vmatpush3.bf16.msra.mxu0 %v729_v8  ;;  %721 = vmatpush3.bf16.msra.mxu1 %v729_v8 }
  0x1c   :  { %673 = vmatprep.subr.bf16.mxu0 %v730_v9  ;;  %714 = vmatprep.subr.bf16.mxu1 %v730_v9 }
  0x1f   :  { %674 = vmatpush3.bf16.msra.mxu0 %v730_v9  ;;  %722 = vmatpush3.bf16.msra.mxu1 %v730_v9 }
  0x22   :  { %676 = vmatmul.mubr.bf16.vlgmr.msra.gmra.mrb[0].mxu0 %v733_v10  ;;  %692 = vmatmul.mubr.bf16.vlgmr.msra.gmra.mrb[0].mxu1 %v734_v11 }
  0x23   :  { %679 = vmatprep.mubr.bf16.mxu0 %v735_v12  ;;  %695 = vmatprep.mubr.bf16.mxu1 %v736_v13 }
  0x2a   :  { %680 = vmatmul.mubr.bf16.gmra.mrb[4].mxu0 %v737_v14  ;;  %696 = vmatmul.mubr.bf16.gmra.mrb[4].mxu1 %v738_v15 }
  0x2b   :  { %683 = vmatprep.mubr.bf16.mxu0 %v739_v16  ;;  %699 = vmatprep.mubr.bf16.mxu1 %v740_v17 }
  0x32   :  { %684 = vmatmul.mubr.bf16.gmra.mrb[8].mxu0 %v741_v18  ;;  %700 = vmatmul.mubr.bf16.gmra.mrb[8].mxu1 %v742_v19 }
  0x33   :  { %687 = vmatprep.mubr.bf16.mxu0 %v743_v20  ;;  %703 = vmatprep.mubr.bf16.mxu1 %v744_v21 }
  0x3a   :  { %688 = vmatmul.mubr.bf16.gmra.mrb[12].mxu0 %v745_v22  ;;  %704 = vmatmul.mubr.bf16.gmra.mrb[12].mxu1 %v746_v23 }
  0xf5   :  { %v677_v25 = vpop.f32.mrb[0].mxu0  ;;  %v693_v26 = vpop.f32.mrb[0].mxu1 }
  0xf6   :  { %v544_v27 = vadd.f32 %v677_v25, %v842_v24  ;;  %v560_v28 = vadd.f32 %v693_v26, %v842_v24  ;;  %v309_v29 = vpop.f32.mrb[1].mxu0  ;;  %v373_v30 = vpop.f32.mrb[1].mxu1 }
  0xf7   :  { %v542_v31 = vadd.f32 %v842_v24, %v309_v29  ;;  %v558_v32 = vadd.f32 %v842_v24, %v373_v30  ;;  %v678_v33 = vpop.f32.mrb[2].mxu0  ;;  %v694_v34 = vpop.f32.mrb[2].mxu1 }
  0xf8   :  { %576 = vst [vmem:[%s975_s3 + $0x10] sm:$0xff] %v544_v27  ;;  %592 = vst [vmem:[%s975_s3 + $0x90] sm:$0xff] %v560_v28  ;;  %v545_v35 = vadd.f32 %v678_v33, %v842_v24  ;;  %v561_v36 = vadd.f32 %v694_v34, %v842_v24  ;;  %v312_v37 = vpop.f32.mrb[3].mxu0  ;;  %v376_v38 = vpop.f32.mrb[3].mxu1 }
  0xf9   :  { %574 = vst [vmem:[%s975_s3] sm:$0xff] %v542_v31  ;;  %590 = vst [vmem:[%s975_s3 + $0x80] sm:$0xff] %v558_v32  ;;  %v543_v39 = vadd.f32 %v842_v24, %v312_v37  ;;  %v559_v40 = vadd.f32 %v842_v24, %v376_v38 }
  0xfa   :  { %577 = vst [vmem:[%s975_s3 + $0x18] sm:$0xff] %v545_v35  ;;  %593 = vst [vmem:[%s975_s3 + $0x98] sm:$0xff] %v561_v36 }
  0xfb   :  { %575 = vst [vmem:[%s975_s3 + $0x8] sm:$0xff] %v543_v39  ;;  %591 = vst [vmem:[%s975_s3 + $0x88] sm:$0xff] %v559_v40 }
  0xfd   :  { %v681_v41 = vpop.f32.mrb[4].mxu0  ;;  %v697_v42 = vpop.f32.mrb[4].mxu1 }
  0xfe   :  { %v548_v43 = vadd.f32 %v681_v41, %v842_v24  ;;  %v564_v44 = vadd.f32 %v697_v42, %v842_v24  ;;  %v325_v45 = vpop.f32.mrb[5].mxu0  ;;  %v389_v46 = vpop.f32.mrb[5].mxu1 }
  0xff   :  { %v546_v47 = vadd.f32 %v842_v24, %v325_v45  ;;  %v562_v48 = vadd.f32 %v842_v24, %v389_v46  ;;  %v682_v49 = vpop.f32.mrb[6].mxu0  ;;  %v698_v50 = vpop.f32.mrb[6].mxu1 }
 0x100   :  { %580 = vst [vmem:[%s975_s3 + $0x30] sm:$0xff] %v548_v43  ;;  %596 = vst [vmem:[%s975_s3 + $0xb0] sm:$0xff] %v564_v44  ;;  %v549_v51 = vadd.f32 %v682_v49, %v842_v24  ;;  %v565_v52 = vadd.f32 %v698_v50, %v842_v24  ;;  %v328_v53 = vpop.f32.mrb[7].mxu0  ;;  %v392_v54 = vpop.f32.mrb[7].mxu1 }
 0x101   :  { %578 = vst [vmem:[%s975_s3 + $0x20] sm:$0xff] %v546_v47  ;;  %594 = vst [vmem:[%s975_s3 + $0xa0] sm:$0xff] %v562_v48  ;;  %v547_v55 = vadd.f32 %v842_v24, %v328_v53  ;;  %v563_v56 = vadd.f32 %v842_v24, %v392_v54 }
 0x102   :  { %581 = vst [vmem:[%s975_s3 + $0x38] sm:$0xff] %v549_v51  ;;  %597 = vst [vmem:[%s975_s3 + $0xb8] sm:$0xff] %v565_v52 }
 0x103   :  { %579 = vst [vmem:[%s975_s3 + $0x28] sm:$0xff] %v547_v55  ;;  %595 = vst [vmem:[%s975_s3 + $0xa8] sm:$0xff] %v563_v56 }
 0x105   :  { %v685_v57 = vpop.f32.mrb[8].mxu0  ;;  %v701_v58 = vpop.f32.mrb[8].mxu1 }
 0x106   :  { %v552_v59 = vadd.f32 %v685_v57, %v842_v24  ;;  %v568_v60 = vadd.f32 %v701_v58, %v842_v24  ;;  %v341_v61 = vpop.f32.mrb[9].mxu0  ;;  %v405_v62 = vpop.f32.mrb[9].mxu1 }
 0x107   :  { %v550_v63 = vadd.f32 %v842_v24, %v341_v61  ;;  %v566_v0 = vadd.f32 %v842_v24, %v405_v62  ;;  %v686_v1 = vpop.f32.mrb[10].mxu0  ;;  %v702_v2 = vpop.f32.mrb[10].mxu1 }
 0x108   :  { %584 = vst [vmem:[%s975_s3 + $0x50] sm:$0xff] %v552_v59  ;;  %600 = vst [vmem:[%s975_s3 + $0xd0] sm:$0xff] %v568_v60  ;;  %v553_v3 = vadd.f32 %v686_v1, %v842_v24  ;;  %v569_v4 = vadd.f32 %v702_v2, %v842_v24  ;;  %v344_v5 = vpop.f32.mrb[11].mxu0  ;;  %v408_v6 = vpop.f32.mrb[11].mxu1 }
 0x109   :  { %582 = vst [vmem:[%s975_s3 + $0x40] sm:$0xff] %v550_v63  ;;  %598 = vst [vmem:[%s975_s3 + $0xc0] sm:$0xff] %v566_v0  ;;  %v551_v7 = vadd.f32 %v842_v24, %v344_v5  ;;  %v567_v8 = vadd.f32 %v842_v24, %v408_v6 }
 0x10a   :  { %585 = vst [vmem:[%s975_s3 + $0x58] sm:$0xff] %v553_v3  ;;  %601 = vst [vmem:[%s975_s3 + $0xd8] sm:$0xff] %v569_v4 }
 0x10b   :  { %583 = vst [vmem:[%s975_s3 + $0x48] sm:$0xff] %v551_v7  ;;  %599 = vst [vmem:[%s975_s3 + $0xc8] sm:$0xff] %v567_v8 }
 0x10d   :  { %v689_v9 = vpop.f32.mrb[12].mxu0  ;;  %v705_v10 = vpop.f32.mrb[12].mxu1 }
 0x10e   :  { %v556_v11 = vadd.f32 %v689_v9, %v842_v24  ;;  %v572_v12 = vadd.f32 %v705_v10, %v842_v24  ;;  %v357_v13 = vpop.f32.mrb[13].mxu0  ;;  %v421_v14 = vpop.f32.mrb[13].mxu1 }
 0x10f   :  { %v554_v15 = vadd.f32 %v842_v24, %v357_v13  ;;  %v570_v16 = vadd.f32 %v842_v24, %v421_v14  ;;  %v690_v17 = vpop.f32.mrb[14].mxu0  ;;  %v706_v18 = vpop.f32.mrb[14].mxu1 }
 0x110   :  { %588 = vst [vmem:[%s975_s3 + $0x70] sm:$0xff] %v556_v11  ;;  %604 = vst [vmem:[%s975_s3 + $0xf0] sm:$0xff] %v572_v12  ;;  %v557_v19 = vadd.f32 %v690_v17, %v842_v24  ;;  %v573_v20 = vadd.f32 %v706_v18, %v842_v24  ;;  %v360_v21 = vpop.f32.mrb[15].mxu0  ;;  %v424_v22 = vpop.f32.mrb[15].mxu1 }
 0x111   :  { %586 = vst [vmem:[%s975_s3 + $0x60] sm:$0xff] %v554_v15  ;;  %602 = vst [vmem:[%s975_s3 + $0xe0] sm:$0xff] %v570_v16  ;;  %v555_v23 = vadd.f32 %v842_v24, %v360_v21  ;;  %v571_v25 = vadd.f32 %v842_v24, %v424_v22 }
 0x112   :  { %589 = vst [vmem:[%s975_s3 + $0x78] sm:$0xff] %v557_v19  ;;  %605 = vst [vmem:[%s975_s3 + $0xf8] sm:$0xff] %v573_v20 }
 0x113   :  { %587 = vst [vmem:[%s975_s3 + $0x68] sm:$0xff] %v555_v23  ;;  %603 = vst [vmem:[%s975_s3 + $0xe8] sm:$0xff] %v571_v25 }

// kernel: forward.26
= control target key start
LH: loop header
LB: loop body
LE: loop exit
PB: predicated region body
PF: predicated region fallthrough
CT: control target
= control target key end

     0   :  { %s443_s1 = inlined_call_operand.vmem [shape: bf16[128,128], index: 1, kind: input, shape index: {}]   ;;  %s444_s0 = inlined_call_operand.vmem [shape: bf16[64,128], index: 0, kind: input, shape index: {}]   ;;  %s445_s2 = inlined_call_operand.vmem [shape: f32[1,128], index: 2, kind: input, shape index: {}]   ;;  %s446_s3 = inlined_call_operand.vmem [shape: f32[64,128], index: 3, kind: output, shape index: {}]  }
   0x1   :  { %v340_v0 = vld [vmem:[%s443_s1] sm:$0xff]   ;;  %v341_v1 = vld [vmem:[%s443_s1 + $0x8] sm:$0xff]   ;;  %v342_v2 = vld [vmem:[%s443_s1 + $0x10] sm:$0xff]  }
   0x2   :  { %300 = vmatprep.subr.bf16.mxu0 %v340_v0  ;;  %324 = vmatprep.subr.bf16.mxu1 %v340_v0  ;;  %v343_v3 = vld [vmem:[%s443_s1 + $0x18] sm:$0xff]   ;;  %v28_v4 = vld [vmem:[%s444_s0] sm:$0xf]  ;;  %v29_v5 = vld [vmem:[%s444_s0 + $0x4] sm:$0xf] }
   0x3   :  { %301 = vmatpush3.bf16.msra.mxu0 %v340_v0  ;;  %332 = vmatpush3.bf16.msra.mxu1 %v340_v0  ;;  %v32_v6 = vld [vmem:[%s444_s0 + $0x10] sm:$0xf]  ;;  %vm36_vm0 = vcmp.gt.bf16.partialorder %v28_v4, 0  ;;  %vm37_vm1 = vcmp.gt.bf16.partialorder %v29_v5, 0  ;;  %v44_v7 = vmul.bf16 1045249613, %v28_v4 }
   0x4   :  { %302 = vmatprep.subr.bf16.mxu0 %v341_v1  ;;  %325 = vmatprep.subr.bf16.mxu1 %v341_v1  ;;  %v45_v8 = vmul.bf16 1045249613, %v29_v5  ;;  %v33_v9 = vld [vmem:[%s444_s0 + $0x14] sm:$0xf]  ;;  %vm40_vm2 = vcmp.gt.bf16.partialorder %v32_v6, 0  ;;  %v344_v14 = vld [vmem:[%s443_s1 + $0x20] sm:$0xff]  }
   0x5   :  { %v48_v10 = vmul.bf16 1045249613, %v32_v6  ;;  %v52_v11 = vsel %vm36_vm0, %v28_v4, %v44_v7  ;;  %vm41_vm3 = vcmp.gt.bf16.partialorder %v33_v9, 0  ;;  %v49_v13 = vmul.bf16 1045249613, %v33_v9  ;;  %v345_v19 = vld [vmem:[%s443_s1 + $0x28] sm:$0xff]  }
   0x6   :  { %v53_v12 = vsel %vm37_vm1, %v29_v5, %v45_v8  ;;  %v346_v20 = vld [vmem:[%s443_s1 + $0x30] sm:$0xff]   ;;  %v30_v21 = vld [vmem:[%s444_s0 + $0x8] sm:$0xf]  ;;  %v31_v22 = vld [vmem:[%s444_s0 + $0xc] sm:$0xf] }
   0x7   :  { %303 = vmatpush3.bf16.msra.mxu0 %v341_v1  ;;  %333 = vmatpush3.bf16.msra.mxu1 %v341_v1  ;;  %v275_v15 = vcombine.low %v52_v11, %v53_v12  ;;  %v56_v16 = vsel %vm40_vm2, %v32_v6, %v48_v10  ;;  %v57_v17 = vsel %vm41_vm3, %v33_v9, %v49_v13  ;;  %v34_v23 = vld [vmem:[%s444_s0 + $0x18] sm:$0xf]  ;;  %v35_v24 = vld [vmem:[%s444_s0 + $0x1c] sm:$0xf]  ;;  %vm38_vm4 = vcmp.gt.bf16.partialorder %v30_v21, 0 }
   0x8   :  { %304 = vmatprep.subr.bf16.mxu0 %v342_v2  ;;  %326 = vmatprep.subr.bf16.mxu1 %v342_v2  ;;  %v277_v18 = vcombine.low %v56_v16, %v57_v17  ;;  %v46_v25 = vmul.bf16 1045249613, %v30_v21  ;;  %v47_v26 = vmul.bf16 1045249613, %v31_v22  ;;  %v50_v27 = vmul.bf16 1045249613, %v34_v23 }
   0x9   :  { %316 = vmatprep.mubr.bf16.mxu0 %v275_v15  ;;  %v51_v28 = vmul.bf16 1045249613, %v35_v24  ;;  %v347_v29 = vld [vmem:[%s443_s1 + $0x38] sm:$0xff]   ;;  %vm39_vm5 = vcmp.gt.bf16.partialorder %v31_v22, 0  ;;  %vm42_vm6 = vcmp.gt.bf16.partialorder %v34_v23, 0  ;;  %vm43_vm7 = vcmp.gt.bf16.partialorder %v35_v24, 0 }
   0xa   :  { %320 = vmatprep.mubr.bf16.mxu1 %v277_v18  ;;  %v54_v30 = vsel %vm38_vm4, %v30_v21, %v46_v25  ;;  %v55_v31 = vsel %vm39_vm5, %v31_v22, %v47_v26  ;;  %v58_v32 = vsel %vm42_vm6, %v34_v23, %v50_v27  ;;  %v287_v36 = vld [vmem:[%s445_s2] ss:$0 sm:$0xff] }
   0xb   :  { %305 = vmatpush3.bf16.msra.mxu0 %v342_v2  ;;  %334 = vmatpush3.bf16.msra.mxu1 %v342_v2  ;;  %v59_v33 = vsel %vm43_vm7, %v35_v24, %v51_v28  ;;  %v276_v34 = vcombine.low %v54_v30, %v55_v31 }
   0xc   :  { %306 = vmatprep.subr.bf16.mxu0 %v343_v3  ;;  %327 = vmatprep.subr.bf16.mxu1 %v343_v3  ;;  %v278_v35 = vcombine.low %v58_v32, %v59_v33 }
   0xf   :  { %307 = vmatpush3.bf16.msra.mxu0 %v343_v3  ;;  %335 = vmatpush3.bf16.msra.mxu1 %v343_v3 }
  0x10   :  { %308 = vmatprep.subr.bf16.mxu0 %v344_v14  ;;  %328 = vmatprep.subr.bf16.mxu1 %v344_v14 }
  0x13   :  { %309 = vmatpush3.bf16.msra.mxu0 %v344_v14  ;;  %336 = vmatpush3.bf16.msra.mxu1 %v344_v14 }
  0x14   :  { %310 = vmatprep.subr.bf16.mxu0 %v345_v19  ;;  %329 = vmatprep.subr.bf16.mxu1 %v345_v19 }
  0x17   :  { %311 = vmatpush3.bf16.msra.mxu0 %v345_v19  ;;  %337 = vmatpush3.bf16.msra.mxu1 %v345_v19 }
  0x18   :  { %312 = vmatprep.subr.bf16.mxu0 %v346_v20  ;;  %330 = vmatprep.subr.bf16.mxu1 %v346_v20 }
  0x1b   :  { %313 = vmatpush3.bf16.msra.mxu0 %v346_v20  ;;  %338 = vmatpush3.bf16.msra.mxu1 %v346_v20 }
  0x1c   :  { %314 = vmatprep.subr.bf16.mxu0 %v347_v29  ;;  %331 = vmatprep.subr.bf16.mxu1 %v347_v29 }
  0x1f   :  { %315 = vmatpush3.bf16.msra.mxu0 %v347_v29  ;;  %339 = vmatpush3.bf16.msra.mxu1 %v347_v29 }
  0x22   :  { %317 = vmatmul.mubr.bf16.vlgmr.msra.gmra.mrb[0].mxu0 %v276_v34  ;;  %321 = vmatmul.mubr.bf16.vlgmr.msra.gmra.mrb[0].mxu1 %v278_v35 }
  0xf5   :  { %v318_v37 = vpop.f32.mrb[0].mxu0  ;;  %v322_v38 = vpop.f32.mrb[0].mxu1 }
  0xf6   :  { %v257_v39 = vadd.f32 %v318_v37, %v287_v36  ;;  %v261_v40 = vadd.f32 %v322_v38, %v287_v36  ;;  %v190_v41 = vpop.f32.mrb[1].mxu0  ;;  %v206_v42 = vpop.f32.mrb[1].mxu1 }
  0xf7   :  { %v255_v43 = vadd.f32 %v287_v36, %v190_v41  ;;  %v259_v44 = vadd.f32 %v287_v36, %v206_v42  ;;  %v319_v45 = vpop.f32.mrb[2].mxu0  ;;  %v323_v46 = vpop.f32.mrb[2].mxu1 }
  0xf8   :  { %265 = vst [vmem:[%s446_s3 + $0x10] sm:$0xff] %v257_v39  ;;  %269 = vst [vmem:[%s446_s3 + $0x30] sm:$0xff] %v261_v40  ;;  %v258_v47 = vadd.f32 %v319_v45, %v287_v36  ;;  %v262_v48 = vadd.f32 %v323_v46, %v287_v36  ;;  %v193_v49 = vpop.f32.mrb[3].mxu0  ;;  %v209_v50 = vpop.f32.mrb[3].mxu1 }
  0xf9   :  { %263 = vst [vmem:[%s446_s3] sm:$0xff] %v255_v43  ;;  %267 = vst [vmem:[%s446_s3 + $0x20] sm:$0xff] %v259_v44  ;;  %v256_v51 = vadd.f32 %v287_v36, %v193_v49  ;;  %v260_v52 = vadd.f32 %v287_v36, %v209_v50 }
  0xfa   :  { %266 = vst [vmem:[%s446_s3 + $0x18] sm:$0xff] %v258_v47  ;;  %270 = vst [vmem:[%s446_s3 + $0x38] sm:$0xff] %v262_v48 }
  0xfb   :  { %264 = vst [vmem:[%s446_s3 + $0x8] sm:$0xff] %v256_v51  ;;  %268 = vst [vmem:[%s446_s3 + $0x28] sm:$0xff] %v260_v52 }

// kernel: forward.27
= control target key start
LH: loop header
LB: loop body
LE: loop exit
PB: predicated region body
PF: predicated region fallthrough
CT: control target
= control target key end

     0   :  { %v90_v0 = vmov 0.0   ;;  %s136_s0 = inlined_call_operand.vmem [shape: f32[64,128], index: 0, kind: input, shape index: {}]   ;;  %s137_s1 = inlined_call_operand.vmem [shape: f32[1,128], index: 1, kind: output, shape index: {0}]   ;;  %s138_s2 = inlined_call_operand.vmem [shape: f32[1,128], index: 2, kind: output, shape index: {1}]  }
   0x1   :  { %14 = vst [vmem:[#allocation2] sm:$0x1] %v90_v0  ;;  %15 = vst [vmem:[#allocation3] sm:$0x1] %v90_v0  ;;  %v16_v1 = vld [vmem:[%s136_s0] sm:$0xff]  ;;  %v17_v2 = vld [vmem:[%s136_s0 + $0x8] sm:$0xff] }
   0x2   :  { %v18_v3 = vld [vmem:[%s136_s0 + $0x10] sm:$0xff]  ;;  %v19_v4 = vld [vmem:[%s136_s0 + $0x18] sm:$0xff]  ;;  %v25_v5 = vadd.f32 %v17_v2, %v16_v1  ;;  %v41_v6 = vmul.f32 %v16_v1, %v16_v1  ;;  %v42_v7 = vmul.f32 %v17_v2, %v17_v2  ;;  %v20_v9 = vld [vmem:[%s136_s0 + $0x20] sm:$0xff] }
   0x3   :  { %v43_v8 = vmul.f32 %v18_v3, %v18_v3  ;;  %v44_v11 = vmul.f32 %v19_v4, %v19_v4  ;;  %v21_v13 = vld [vmem:[%s136_s0 + $0x28] sm:$0xff]  ;;  %v45_v15 = vmul.f32 %v20_v9, %v20_v9  ;;  %v22_v17 = vld [vmem:[%s136_s0 + $0x30] sm:$0xff]  ;;  %v23_v21 = vld [vmem:[%s136_s0 + $0x38] sm:$0xff] }
   0x4   :  { %v26_v10 = vadd.f32 %v25_v5, %v18_v3  ;;  %v49_v12 = vadd.f32 %v42_v7, %v41_v6  ;;  %v46_v19 = vmul.f32 %v21_v13, %v21_v13  ;;  %v47_v23 = vmul.f32 %v22_v17, %v22_v17 }
   0x5   :  { %v48_v26 = vmul.f32 %v23_v21, %v23_v21 }
   0x6   :  { %v27_v14 = vadd.f32 %v26_v10, %v19_v4  ;;  %v50_v16 = vadd.f32 %v49_v12, %v43_v8 }
   0x8   :  { %v28_v18 = vadd.f32 %v27_v14, %v20_v9  ;;  %v51_v20 = vadd.f32 %v50_v16, %v44_v11  ;;  %v24_v40 = vld [vmem:[#allocation2] sm:$0x1]  ;;  %v40_v43 = vld [vmem:[#allocation3] sm:$0x1] }
   0xa   :  { %v29_v22 = vadd.f32 %v28_v18, %v21_v13  ;;  %v52_v24 = vadd.f32 %v51_v20, %v45_v15 }
   0xc   :  { %v30_v25 = vadd.f32 %v29_v22, %v22_v17  ;;  %v53_v27 = vadd.f32 %v52_v24, %v46_v19 }
   0xe   :  { %v31_v28 = vadd.f32 %v30_v25, %v23_v21  ;;  %v54_v29 = vadd.f32 %v53_v27, %v47_v23 }
  0x10   :  { %v32_v30 = vrot.slane %v31_v28, 4  ;;  %v55_v31 = vadd.f32 %v54_v29, %v48_v26 }
  0x12   :  { %v33_v32 = vadd.f32 %v32_v30, %v31_v28  ;;  %v56_v33 = vrot.slane %v55_v31, 4 }
  0x14   :  { %v34_v34 = vrot.slane %v33_v32, 2  ;;  %v57_v35 = vadd.f32 %v56_v33, %v55_v31 }
  0x16   :  { %v35_v36 = vadd.f32 %v34_v34, %v33_v32  ;;  %v58_v37 = vrot.slane %v57_v35, 2 }
  0x18   :  { %v36_v38 = vrot.slane %v35_v36, 1  ;;  %v59_v39 = vadd.f32 %v58_v37, %v57_v35 }
  0x1a   :  { %v37_v41 = vadd.f32 %v36_v38, %v35_v36  ;;  %v60_v42 = vrot.slane %v59_v39, 1 }
  0x1c   :  { %v38_v44 = vadd.f32 %v37_v41, %v24_v40  ;;  %v61_v45 = vadd.f32 %v60_v42, %v59_v39 }
  0x1e   :  { %39 = vst [vmem:[#allocation2] sm:$0x1] %v38_v44  ;;  %v62_v46 = vadd.f32 %v61_v45, %v40_v43 }
  0x20   :  { %63 = vst [vmem:[#allocation3] sm:$0x1] %v62_v46 }
  0x25   :  { %v67_v47 = vld [vmem:[#allocation2] sm:$0x1] }
  0x26   :  { %v69_v48 = vmul.f32 0.015625, %v67_v47 }
  0x27   :  { %v70_v49 = vld [vmem:[#allocation3] sm:$0x1] }
  0x28   :  { %v71_v50 = vmul.f32 0.015625, %v70_v49  ;;  %v72_v51 = vmul.f32 %v69_v48, %v69_v48  ;;  %75 = vst [vmem:[%s137_s1] sm:$0x1] %v69_v48 }
  0x2a   :  { %v73_v52 = vsub.f32 %v71_v50, %v72_v51 }
  0x2c   :  { %v74_v53 = vmax.f32 %v73_v52, 0.0 }
  0x2e   :  { %v76_v54 = vadd.f32 1e-05, %v74_v53 }
  0x30   :  { %88 = vrsqrt.f32 %v76_v54 }
  0x3a   :  { %v89_v55 = vpop.eup %88 }
  0x3b   :  { %78 = vst [vmem:[%s138_s2] sm:$0x1] %v89_v55 }

// kernel: forward.28
= control target key start
LH: loop header
LB: loop body
LE: loop exit
PB: predicated region body
PF: predicated region fallthrough
CT: control target
= control target key end

     0   :  { %s194_s0 = inlined_call_operand.vmem [shape: f32[64,128], index: 0, kind: input, shape index: {}]   ;;  %s195_s1 = inlined_call_operand.vmem [shape: f32[1,128], index: 1, kind: input, shape index: {}]   ;;  %s196_s2 = inlined_call_operand.vmem [shape: f32[1,128], index: 2, kind: input, shape index: {}]   ;;  %s197_s3 = inlined_call_operand.vmem [shape: f32[1,128], index: 3, kind: input, shape index: {}]   ;;  %s198_s4 = inlined_call_operand.vmem [shape: f32[1,128], index: 4, kind: input, shape index: {}]   ;;  %s199_s5 = inlined_call_operand.vmem [shape: f32[64,128], index: 5, kind: output, shape index: {}]  }
   0x1   :  { %v20_v0 = vld [vmem:[%s194_s0] sm:$0xff]  ;;  %v21_v5 = vld [vmem:[%s194_s0 + $0x8] sm:$0xff]  ;;  %v22_v7 = vld [vmem:[%s194_s0 + $0x10] sm:$0xff] }
   0x2   :  { %v100_v1 = vld [vmem:[%s195_s1] ss:$0 sm:$0xff]  ;;  %v23_v8 = vld [vmem:[%s194_s0 + $0x18] sm:$0xff]  ;;  %v25_v14 = vld [vmem:[%s194_s0 + $0x28] sm:$0xff] }
   0x3   :  { %v101_v2 = vld [vmem:[%s196_s2] ss:$0 sm:$0xff]  ;;  %v35_v3 = vsub.f32 %v20_v0, %v100_v1  ;;  %v36_v6 = vsub.f32 %v21_v5, %v100_v1  ;;  %v37_v11 = vsub.f32 %v22_v7, %v100_v1  ;;  %v38_v12 = vsub.f32 %v23_v8, %v100_v1  ;;  %v26_v15 = vld [vmem:[%s194_s0 + $0x30] sm:$0xff]  ;;  %v27_v16 = vld [vmem:[%s194_s0 + $0x38] sm:$0xff] }
   0x4   :  { %v102_v4 = vld [vmem:[%s197_s3] ss:$0 sm:$0xff]  ;;  %v40_v19 = vsub.f32 %v25_v14, %v100_v1  ;;  %v41_v20 = vsub.f32 %v26_v15, %v100_v1  ;;  %v42_v21 = vsub.f32 %v27_v16, %v100_v1 }
   0x5   :  { %v24_v9 = vld [vmem:[%s194_s0 + $0x20] sm:$0xff]  ;;  %v50_v10 = vmul.f32 %v101_v2, %v35_v3  ;;  %v51_v18 = vmul.f32 %v101_v2, %v36_v6  ;;  %v52_v23 = vmul.f32 %v101_v2, %v37_v11  ;;  %v53_v24 = vmul.f32 %v101_v2, %v38_v12 }
   0x6   :  { %v39_v13 = vsub.f32 %v24_v9, %v100_v1  ;;  %v103_v17 = vld [vmem:[%s198_s4] ss:$0 sm:$0xff]  ;;  %v55_v27 = vmul.f32 %v101_v2, %v40_v19  ;;  %v56_v28 = vmul.f32 %v101_v2, %v41_v20  ;;  %v57_v29 = vmul.f32 %v101_v2, %v42_v21 }
   0x7   :  { %v65_v22 = vmul.f32 %v102_v4, %v50_v10  ;;  %v66_v26 = vmul.f32 %v102_v4, %v51_v18  ;;  %v67_v31 = vmul.f32 %v102_v4, %v52_v23  ;;  %v68_v32 = vmul.f32 %v102_v4, %v53_v24 }
   0x8   :  { %v54_v25 = vmul.f32 %v101_v2, %v39_v13  ;;  %v70_v35 = vmul.f32 %v102_v4, %v55_v27  ;;  %v71_v36 = vmul.f32 %v102_v4, %v56_v28  ;;  %v72_v37 = vmul.f32 %v102_v4, %v57_v29 }
   0x9   :  { %v80_v30 = vadd.f32 %v103_v17, %v65_v22  ;;  %v81_v34 = vadd.f32 %v103_v17, %v66_v26  ;;  %v82_v38 = vadd.f32 %v103_v17, %v67_v31  ;;  %v83_v39 = vadd.f32 %v103_v17, %v68_v32 }
   0xa   :  { %v69_v33 = vmul.f32 %v102_v4, %v54_v25  ;;  %v85_v41 = vadd.f32 %v103_v17, %v70_v35  ;;  %v86_v42 = vadd.f32 %v103_v17, %v71_v36  ;;  %v87_v43 = vadd.f32 %v103_v17, %v72_v37 }
   0xb   :  { %88 = vst [vmem:[%s199_s5] sm:$0xff] %v80_v30  ;;  %89 = vst [vmem:[%s199_s5 + $0x8] sm:$0xff] %v81_v34 }
   0xc   :  { %v84_v40 = vadd.f32 %v103_v17, %v69_v33  ;;  %90 = vst [vmem:[%s199_s5 + $0x10] sm:$0xff] %v82_v38  ;;  %91 = vst [vmem:[%s199_s5 + $0x18] sm:$0xff] %v83_v39 }
   0xd   :  { %93 = vst [vmem:[%s199_s5 + $0x28] sm:$0xff] %v85_v41  ;;  %94 = vst [vmem:[%s199_s5 + $0x30] sm:$0xff] %v86_v42 }
   0xe   :  { %92 = vst [vmem:[%s199_s5 + $0x20] sm:$0xff] %v84_v40  ;;  %95 = vst [vmem:[%s199_s5 + $0x38] sm:$0xff] %v87_v43 }

// kernel: forward.29
= control target key start
LH: loop header
LB: loop body
LE: loop exit
PB: predicated region body
PF: predicated region fallthrough
CT: control target
= control target key end

     0   :  { %s375_s1 = inlined_call_operand.vmem [shape: bf16[256,128], index: 1, kind: input, shape index: {}]   ;;  %s376_s0 = inlined_call_operand.vmem [shape: bf16[16,256], index: 0, kind: input, shape index: {}]   ;;  %s377_s2 = inlined_call_operand.vmem [shape: f32[1,128], index: 2, kind: input, shape index: {}]   ;;  %s378_s3 = inlined_call_operand.vmem [shape: f32[16,128], index: 3, kind: output, shape index: {}]  }
   0x1   :  { %v276_v0 = vld [vmem:[%s375_s1 + $0x40] sm:$0xff]   ;;  %v278_v2 = vld [vmem:[%s375_s1 + $0x48] sm:$0xff]   ;;  %v280_v4 = vld [vmem:[%s375_s1 + $0x50] sm:$0xff]  }
   0x2   :  { %v277_v1 = vld [vmem:[%s375_s1] sm:$0xff]   ;;  %254 = vmatprep.subr.bf16.mxu0 %v276_v0  ;;  %v279_v3 = vld [vmem:[%s375_s1 + $0x8] sm:$0xff]   ;;  %v281_v5 = vld [vmem:[%s375_s1 + $0x10] sm:$0xff]  }
   0x3   :  { %255 = vmatpush3.bf16.msra.mxu0 %v277_v1  ;;  %v282_v6 = vld [vmem:[%s375_s1 + $0x58] sm:$0xff]   ;;  %v284_v8 = vld [vmem:[%s375_s1 + $0x60] sm:$0xff]   ;;  %v286_v10 = vld [vmem:[%s375_s1 + $0x68] sm:$0xff]  }
   0x4   :  { %256 = vmatprep.subr.bf16.mxu0 %v278_v2  ;;  %v283_v7 = vld [vmem:[%s375_s1 + $0x18] sm:$0xff]   ;;  %v285_v9 = vld [vmem:[%s375_s1 + $0x20] sm:$0xff]   ;;  %v23_v12 = vld [vmem:[%s376_s0 + $0x8] sm:$0xff] }
   0x5   :  { %v22_v11 = vld [vmem:[%s376_s0] sm:$0xff]  ;;  %vm25_vm1 = vcmp.gt.bf16.partialorder %v23_v12, 0  ;;  %v27_v14 = vmul.bf16 1045249613, %v23_v12  ;;  %v287_v15 = vld [vmem:[%s375_s1 + $0x28] sm:$0xff]   ;;  %v288_v18 = vld [vmem:[%s375_s1 + $0x70] sm:$0xff]  }
   0x6   :  { %vm24_vm0 = vcmp.gt.bf16.partialorder %v22_v11, 0  ;;  %v26_v13 = vmul.bf16 1045249613, %v22_v11  ;;  %v289_v20 = vld [vmem:[%s375_s1 + $0x30] sm:$0xff]   ;;  %v290_v21 = vld [vmem:[%s375_s1 + $0x78] sm:$0xff]  }
   0x7   :  { %257 = vmatpush3.bf16.msra.mxu0 %v279_v3  ;;  %v29_v17 = vsel %vm25_vm1, %v23_v12, %v27_v14  ;;  %v291_v22 = vld [vmem:[%s375_s1 + $0x38] sm:$0xff]   ;;  %v253_v26 = vld [vmem:[%s377_s2] ss:$0 sm:$0xff] }
   0x8   :  { %258 = vmatprep.subr.bf16.mxu0 %v280_v4  ;;  %v28_v16 = vsel %vm24_vm0, %v22_v11, %v26_v13 }
   0x9   :  { %v236_v19 = vcombine.high %v28_v16, %v29_v17  ;;  %v235_v23 = vcombine.low %v28_v16, %v29_v17 }
   0xb   :  { %259 = vmatpush3.bf16.msra.mxu0 %v281_v5  ;;  %202 = vmatprep.mubr.bf16.mxu0 %v236_v19 }
   0xc   :  { %260 = vmatprep.subr.bf16.mxu0 %v282_v6 }
   0xf   :  { %261 = vmatpush3.bf16.msra.mxu0 %v283_v7 }
  0x10   :  { %262 = vmatprep.subr.bf16.mxu0 %v284_v8 }
  0x13   :  { %263 = vmatpush3.bf16.msra.mxu0 %v285_v9 }
  0x14   :  { %264 = vmatprep.subr.bf16.mxu0 %v286_v10 }
  0x17   :  { %265 = vmatpush3.bf16.msra.mxu0 %v287_v15 }
  0x18   :  { %266 = vmatprep.subr.bf16.mxu0 %v288_v18 }
  0x1b   :  { %267 = vmatpush3.bf16.msra.mxu0 %v289_v20 }
  0x1c   :  { %268 = vmatprep.subr.bf16.mxu0 %v290_v21 }
  0x1f   :  { %269 = vmatpush3.bf16.msra.mxu0 %v291_v22 }
  0x22   :  { %203 = vmatmul.mubr.bf16.vlgmr.msra.gmra.mrb[0].mxu0 %v235_v23 }
  0xf5   :  { %v270_v24 = vpop.f32.mrb[0].mxu0 }
  0xf6   :  { %v271_v25 = vpop.f32.mrb[1].mxu0 }
  0xf7   :  { %v272_v27 = vadd.f32 %v271_v25, %v270_v24  ;;  %v273_v28 = vpop.f32.mrb[2].mxu0 }
  0xf8   :  { %v274_v29 = vpop.f32.mrb[3].mxu0 }
  0xf9   :  { %v227_v30 = vadd.f32 %v272_v27, %v253_v26  ;;  %v275_v31 = vadd.f32 %v274_v29, %v273_v28 }
  0xfb   :  { %229 = vst [vmem:[%s378_s3] sm:$0xff] %v227_v30  ;;  %v228_v32 = vadd.f32 %v275_v31, %v253_v26 }
  0xfd   :  { %230 = vst [vmem:[%s378_s3 + $0x8] sm:$0xff] %v228_v32 }

// kernel: forward.30
= control target key start
LH: loop header
LB: loop body
LE: loop exit
PB: predicated region body
PF: predicated region fallthrough
CT: control target
= control target key end

     0   :  { %v66_v0 = vmov 0.0   ;;  %s94_s0 = inlined_call_operand.vmem [shape: f32[16,128], index: 0, kind: input, shape index: {}]   ;;  %s95_s1 = inlined_call_operand.vmem [shape: f32[1,128], index: 1, kind: output, shape index: {0}]   ;;  %s96_s2 = inlined_call_operand.vmem [shape: f32[1,128], index: 2, kind: output, shape index: {1}]  }
   0x1   :  { %14 = vst [vmem:[#allocation2] sm:$0x1] %v66_v0  ;;  %15 = vst [vmem:[#allocation3] sm:$0x1] %v66_v0  ;;  %v16_v1 = vld [vmem:[%s94_s0] sm:$0xff]  ;;  %v17_v2 = vld [vmem:[%s94_s0 + $0x8] sm:$0xff] }
   0x2   :  { %v19_v3 = vadd.f32 %v17_v2, %v16_v1  ;;  %v29_v4 = vmul.f32 %v16_v1, %v16_v1  ;;  %v30_v5 = vmul.f32 %v17_v2, %v17_v2 }
   0x4   :  { %v20_v6 = vrot.slane %v19_v3, 4  ;;  %v31_v7 = vadd.f32 %v30_v5, %v29_v4 }
   0x6   :  { %v21_v8 = vadd.f32 %v20_v6, %v19_v3  ;;  %v32_v9 = vrot.slane %v31_v7, 4 }
   0x8   :  { %v22_v10 = vrot.slane %v21_v8, 2  ;;  %v33_v11 = vadd.f32 %v32_v9, %v31_v7  ;;  %v18_v16 = vld [vmem:[#allocation2] sm:$0x1]  ;;  %v28_v19 = vld [vmem:[#allocation3] sm:$0x1] }
   0xa   :  { %v23_v12 = vadd.f32 %v22_v10, %v21_v8  ;;  %v34_v13 = vrot.slane %v33_v11, 2 }
   0xc   :  { %v24_v14 = vrot.slane %v23_v12, 1  ;;  %v35_v15 = vadd.f32 %v34_v13, %v33_v11 }
   0xe   :  { %v25_v17 = vadd.f32 %v24_v14, %v23_v12  ;;  %v36_v18 = vrot.slane %v35_v15, 1 }
  0x10   :  { %v26_v20 = vadd.f32 %v25_v17, %v18_v16  ;;  %v37_v21 = vadd.f32 %v36_v18, %v35_v15 }
  0x12   :  { %27 = vst [vmem:[#allocation2] sm:$0x1] %v26_v20  ;;  %v38_v22 = vadd.f32 %v37_v21, %v28_v19 }
  0x14   :  { %39 = vst [vmem:[#allocation3] sm:$0x1] %v38_v22 }
  0x19   :  { %v43_v23 = vld [vmem:[#allocation2] sm:$0x1] }
  0x1a   :  { %v45_v24 = vmul.f32 0.0625, %v43_v23 }
  0x1b   :  { %v46_v25 = vld [vmem:[#allocation3] sm:$0x1] }
  0x1c   :  { %v47_v26 = vmul.f32 0.0625, %v46_v25  ;;  %v48_v27 = vmul.f32 %v45_v24, %v45_v24  ;;  %51 = vst [vmem:[%s95_s1] sm:$0x1] %v45_v24 }
  0x1e   :  { %v49_v28 = vsub.f32 %v47_v26, %v48_v27 }
  0x20   :  { %v50_v29 = vmax.f32 %v49_v28, 0.0 }
  0x22   :  { %v52_v30 = vadd.f32 1e-05, %v50_v29 }
  0x24   :  { %64 = vrsqrt.f32 %v52_v30 }
  0x2e   :  { %v65_v31 = vpop.eup %64 }
  0x2f   :  { %54 = vst [vmem:[%s96_s2] sm:$0x1] %v65_v31 }

// kernel: forward.31
= control target key start
LH: loop header
LB: loop body
LE: loop exit
PB: predicated region body
PF: predicated region fallthrough
CT: control target
= control target key end

     0   :  { %s122_s0 = inlined_call_operand.vmem [shape: f32[16,128], index: 0, kind: input, shape index: {}]   ;;  %s123_s1 = inlined_call_operand.vmem [shape: f32[1,128], index: 1, kind: input, shape index: {}]   ;;  %s124_s2 = inlined_call_operand.vmem [shape: f32[1,128], index: 2, kind: input, shape index: {}]   ;;  %s125_s3 = inlined_call_operand.vmem [shape: f32[1,128], index: 3, kind: input, shape index: {}]   ;;  %s126_s4 = inlined_call_operand.vmem [shape: f32[1,128], index: 4, kind: input, shape index: {}]   ;;  %s127_s5 = inlined_call_operand.vmem [shape: f32[16,128], index: 5, kind: output, shape index: {}]  }
   0x1   :  { %v20_v0 = vld [vmem:[%s122_s0] sm:$0xff]  ;;  %v21_v4 = vld [vmem:[%s122_s0 + $0x8] sm:$0xff] }
   0x2   :  { %v64_v1 = vld [vmem:[%s123_s1] ss:$0 sm:$0xff] }
   0x3   :  { %v65_v2 = vld [vmem:[%s124_s2] ss:$0 sm:$0xff]  ;;  %v29_v3 = vsub.f32 %v20_v0, %v64_v1  ;;  %v30_v6 = vsub.f32 %v21_v4, %v64_v1 }
   0x4   :  { %v66_v5 = vld [vmem:[%s125_s3] ss:$0 sm:$0xff] }
   0x5   :  { %v38_v7 = vmul.f32 %v65_v2, %v29_v3  ;;  %v67_v8 = vld [vmem:[%s126_s4] ss:$0 sm:$0xff]  ;;  %v39_v9 = vmul.f32 %v65_v2, %v30_v6 }
   0x7   :  { %v47_v10 = vmul.f32 %v66_v5, %v38_v7  ;;  %v48_v11 = vmul.f32 %v66_v5, %v39_v9 }
   0x9   :  { %v56_v12 = vadd.f32 %v67_v8, %v47_v10  ;;  %v57_v13 = vadd.f32 %v67_v8, %v48_v11 }
   0xb   :  { %58 = vst [vmem:[%s127_s5] sm:$0xff] %v56_v12  ;;  %59 = vst [vmem:[%s127_s5 + $0x8] sm:$0xff] %v57_v13 }

// kernel: forward.33
= control target key start
LH: loop header
LB: loop body
LE: loop exit
PB: predicated region body
PF: predicated region fallthrough
CT: control target
= control target key end

     0   :  { %v62_v0 = vmov 0.0   ;;  %s87_s0 = inlined_call_operand.vmem [shape: f32[8,128], index: 0, kind: input, shape index: {}]   ;;  %s88_s1 = inlined_call_operand.vmem [shape: f32[1,128], index: 1, kind: output, shape index: {0}]   ;;  %s89_s2 = inlined_call_operand.vmem [shape: f32[1,128], index: 2, kind: output, shape index: {1}]  }
   0x1   :  { %14 = vst [vmem:[#allocation2] sm:$0x1] %v62_v0  ;;  %15 = vst [vmem:[#allocation3] sm:$0x1] %v62_v0  ;;  %v16_v1 = vld [vmem:[%s87_s0] sm:$0xff] }
   0x2   :  { %v18_v2 = vrot.slane %v16_v1, 4  ;;  %v27_v3 = vmul.f32 %v16_v1, %v16_v1 }
   0x4   :  { %v19_v4 = vadd.f32 %v18_v2, %v16_v1  ;;  %v28_v5 = vrot.slane %v27_v3, 4 }
   0x6   :  { %v20_v6 = vrot.slane %v19_v4, 2  ;;  %v29_v7 = vadd.f32 %v28_v5, %v27_v3 }
   0x8   :  { %v21_v8 = vadd.f32 %v20_v6, %v19_v4  ;;  %v30_v9 = vrot.slane %v29_v7, 2  ;;  %v17_v12 = vld [vmem:[#allocation2] sm:$0x1]  ;;  %v26_v15 = vld [vmem:[#allocation3] sm:$0x1] }
   0xa   :  { %v22_v10 = vrot.slane %v21_v8, 1  ;;  %v31_v11 = vadd.f32 %v30_v9, %v29_v7 }
   0xc   :  { %v23_v13 = vadd.f32 %v22_v10, %v21_v8  ;;  %v32_v14 = vrot.slane %v31_v11, 1 }
   0xe   :  { %v24_v16 = vadd.f32 %v23_v13, %v17_v12  ;;  %v33_v17 = vadd.f32 %v32_v14, %v31_v11 }
  0x10   :  { %25 = vst [vmem:[#allocation2] sm:$0x1] %v24_v16  ;;  %v34_v18 = vadd.f32 %v33_v17, %v26_v15 }
  0x12   :  { %35 = vst [vmem:[#allocation3] sm:$0x1] %v34_v18 }
  0x17   :  { %v39_v19 = vld [vmem:[#allocation2] sm:$0x1] }
  0x18   :  { %v41_v20 = vmul.f32 0.25, %v39_v19 }
  0x19   :  { %v42_v21 = vld [vmem:[#allocation3] sm:$0x1] }
  0x1a   :  { %v43_v22 = vmul.f32 0.25, %v42_v21  ;;  %v44_v23 = vmul.f32 %v41_v20, %v41_v20  ;;  %47 = vst [vmem:[%s88_s1] sm:$0x1] %v41_v20 }
  0x1c   :  { %v45_v24 = vsub.f32 %v43_v22, %v44_v23 }
  0x1e   :  { %v46_v25 = vmax.f32 %v45_v24, 0.0 }
  0x20   :  { %v48_v26 = vadd.f32 1e-05, %v46_v25 }
  0x22   :  { %60 = vrsqrt.f32 %v48_v26 }
  0x2c   :  { %v61_v27 = vpop.eup %60 }
  0x2d   :  { %50 = vst [vmem:[%s89_s2] sm:$0x1] %v61_v27 }

// kernel: forward.34
= control target key start
LH: loop header
LB: loop body
LE: loop exit
PB: predicated region body
PF: predicated region fallthrough
CT: control target
= control target key end

     0   :  { %s110_s0 = inlined_call_operand.vmem [shape: f32[8,128], index: 0, kind: input, shape index: {}]   ;;  %s111_s1 = inlined_call_operand.vmem [shape: f32[1,128], index: 1, kind: input, shape index: {}]   ;;  %s112_s2 = inlined_call_operand.vmem [shape: f32[1,128], index: 2, kind: input, shape index: {}]   ;;  %s113_s3 = inlined_call_operand.vmem [shape: f32[1,128], index: 3, kind: input, shape index: {}]   ;;  %s114_s4 = inlined_call_operand.vmem [shape: f32[1,128], index: 4, kind: input, shape index: {}]   ;;  %s115_s5 = inlined_call_operand.vmem [shape: f32[8,128], index: 5, kind: output, shape index: {}]  }
   0x1   :  { %v20_v0 = vld [vmem:[%s110_s0] sm:$0xff] }
   0x2   :  { %v58_v1 = vld [vmem:[%s111_s1] ss:$0 sm:$0xff] }
   0x3   :  { %v59_v2 = vld [vmem:[%s112_s2] ss:$0 sm:$0xff]  ;;  %v28_v3 = vsub.f32 %v20_v0, %v58_v1 }
   0x4   :  { %v60_v4 = vld [vmem:[%s113_s3] ss:$0 sm:$0xff] }
   0x5   :  { %v36_v5 = vmul.f32 %v59_v2, %v28_v3  ;;  %v61_v6 = vld [vmem:[%s114_s4] ss:$0 sm:$0xff] }
   0x7   :  { %v44_v7 = vmul.f32 %v60_v4, %v36_v5 }
   0x9   :  { %v52_v8 = vadd.f32 %v61_v6, %v44_v7 }
   0xb   :  { %53 = vst [vmem:[%s115_s5] sm:$0xff] %v52_v8 }

// kernel: forward.32
= control target key start
LH: loop header
LB: loop body
LE: loop exit
PB: predicated region body
PF: predicated region fallthrough
CT: control target
= control target key end

     0   :  { %s640_s1 = inlined_call_operand.vmem [shape: bf16[512,128], index: 1, kind: input, shape index: {}]   ;;  %s641_s0 = inlined_call_operand.vmem [shape: bf16[8,512], index: 0, kind: input, shape index: {}]   ;;  %s642_s2 = inlined_call_operand.vmem [shape: f32[1,128], index: 2, kind: input, shape index: {}]   ;;  %s643_s3 = inlined_call_operand.vmem [shape: f32[8,128], index: 3, kind: output, shape index: {}]  }
   0x1   :  { %v480_v0 = vld [vmem:[%s640_s1 + $0x40] sm:$0xff]   ;;  %v484_v4 = vld [vmem:[%s640_s1 + $0x48] sm:$0xff]   ;;  %v488_v8 = vld [vmem:[%s640_s1 + $0x50] sm:$0xff]  }
   0x2   :  { %v481_v1 = vld [vmem:[%s640_s1 + $0xc0] sm:$0xff]   ;;  %436 = vmatprep.subr.bf16.mxu0 %v480_v0  ;;  %v485_v5 = vld [vmem:[%s640_s1 + $0xc8] sm:$0xff]   ;;  %v489_v9 = vld [vmem:[%s640_s1 + $0xd0] sm:$0xff]  }
   0x3   :  { %v482_v2 = vld [vmem:[%s640_s1] sm:$0xff]   ;;  %458 = vmatprep.subr.bf16.mxu1 %v481_v1  ;;  %v486_v6 = vld [vmem:[%s640_s1 + $0x8] sm:$0xff]   ;;  %v490_v10 = vld [vmem:[%s640_s1 + $0x10] sm:$0xff]  }
   0x4   :  { %v483_v3 = vld [vmem:[%s640_s1 + $0x80] sm:$0xff]   ;;  %437 = vmatpush3.bf16.msra.mxu0 %v482_v2  ;;  %v487_v7 = vld [vmem:[%s640_s1 + $0x88] sm:$0xff]   ;;  %v491_v11 = vld [vmem:[%s640_s1 + $0x90] sm:$0xff]  }
   0x5   :  { %459 = vmatpush3.bf16.msra.mxu1 %v483_v3  ;;  %438 = vmatprep.subr.bf16.mxu0 %v484_v4  ;;  %v492_v12 = vld [vmem:[%s640_s1 + $0x58] sm:$0xff]   ;;  %v496_v16 = vld [vmem:[%s640_s1 + $0x60] sm:$0xff]   ;;  %v500_v20 = vld [vmem:[%s640_s1 + $0x68] sm:$0xff]  }
   0x6   :  { %460 = vmatprep.subr.bf16.mxu1 %v485_v5  ;;  %v493_v13 = vld [vmem:[%s640_s1 + $0xd8] sm:$0xff]   ;;  %v497_v17 = vld [vmem:[%s640_s1 + $0xe0] sm:$0xff]   ;;  %v501_v21 = vld [vmem:[%s640_s1 + $0xe8] sm:$0xff]  }
   0x7   :  { %v494_v14 = vld [vmem:[%s640_s1 + $0x18] sm:$0xff]   ;;  %v498_v18 = vld [vmem:[%s640_s1 + $0x20] sm:$0xff]   ;;  %v502_v22 = vld [vmem:[%s640_s1 + $0x28] sm:$0xff]  }
   0x8   :  { %439 = vmatpush3.bf16.msra.mxu0 %v486_v6  ;;  %v495_v15 = vld [vmem:[%s640_s1 + $0x98] sm:$0xff]   ;;  %v499_v19 = vld [vmem:[%s640_s1 + $0xa0] sm:$0xff]   ;;  %v503_v23 = vld [vmem:[%s640_s1 + $0xa8] sm:$0xff]  }
   0x9   :  { %461 = vmatpush3.bf16.msra.mxu1 %v487_v7  ;;  %440 = vmatprep.subr.bf16.mxu0 %v488_v8  ;;  %v504_v24 = vld [vmem:[%s640_s1 + $0x70] sm:$0xff]   ;;  %v508_v28 = vld [vmem:[%s640_s1 + $0x78] sm:$0xff]   ;;  %v21_v32 = vld [vmem:[%s641_s0] sm:$0xff] }
   0xa   :  { %462 = vmatprep.subr.bf16.mxu1 %v489_v9  ;;  %v505_v25 = vld [vmem:[%s640_s1 + $0xf0] sm:$0xff]   ;;  %v509_v29 = vld [vmem:[%s640_s1 + $0xf8] sm:$0xff]   ;;  %v22_v33 = vld [vmem:[%s641_s0 + $0x8] sm:$0xff]  ;;  %vm23_vm0 = vcmp.gt.bf16.partialorder %v21_v32, 0  ;;  %v25_v34 = vmul.bf16 1045249613, %v21_v32 }
   0xb   :  { %v506_v26 = vld [vmem:[%s640_s1 + $0x30] sm:$0xff]   ;;  %v510_v30 = vld [vmem:[%s640_s1 + $0x38] sm:$0xff]   ;;  %vm24_vm1 = vcmp.gt.bf16.partialorder %v22_v33, 0  ;;  %v26_v35 = vmul.bf16 1045249613, %v22_v33 }
   0xc   :  { %441 = vmatpush3.bf16.msra.mxu0 %v490_v10  ;;  %v507_v27 = vld [vmem:[%s640_s1 + $0xb0] sm:$0xff]   ;;  %v511_v31 = vld [vmem:[%s640_s1 + $0xb8] sm:$0xff]   ;;  %v27_v36 = vsel %vm23_vm0, %v21_v32, %v25_v34  ;;  %v435_v50 = vld [vmem:[%s642_s2] ss:$0 sm:$0xff] }
   0xd   :  { %463 = vmatpush3.bf16.msra.mxu1 %v491_v11  ;;  %442 = vmatprep.subr.bf16.mxu0 %v492_v12  ;;  %v28_v37 = vsel %vm24_vm1, %v22_v33, %v26_v35  ;;  %v399_v38 = vcombine.low %v27_v36, %v27_v36  ;;  %v400_v39 = vcombine.high %v27_v36, %v27_v36 }
   0xe   :  { %464 = vmatprep.subr.bf16.mxu1 %v493_v13  ;;  %v401_v40 = vcombine.low %v28_v37, %v28_v37  ;;  %v402_v41 = vcombine.high %v28_v37, %v28_v37 }
   0xf   :  { %332 = vmatprep.mubr.bf16.mxu0 %v400_v39 }
  0x10   :  { %443 = vmatpush3.bf16.msra.mxu0 %v494_v14  ;;  %372 = vmatprep.mubr.bf16.mxu1 %v402_v41 }
  0x11   :  { %465 = vmatpush3.bf16.msra.mxu1 %v495_v15  ;;  %444 = vmatprep.subr.bf16.mxu0 %v496_v16 }
  0x12   :  { %466 = vmatprep.subr.bf16.mxu1 %v497_v17 }
  0x14   :  { %445 = vmatpush3.bf16.msra.mxu0 %v498_v18 }
  0x15   :  { %467 = vmatpush3.bf16.msra.mxu1 %v499_v19  ;;  %446 = vmatprep.subr.bf16.mxu0 %v500_v20 }
  0x16   :  { %468 = vmatprep.subr.bf16.mxu1 %v501_v21 }
  0x18   :  { %447 = vmatpush3.bf16.msra.mxu0 %v502_v22 }
  0x19   :  { %469 = vmatpush3.bf16.msra.mxu1 %v503_v23  ;;  %448 = vmatprep.subr.bf16.mxu0 %v504_v24 }
  0x1a   :  { %470 = vmatprep.subr.bf16.mxu1 %v505_v25 }
  0x1c   :  { %449 = vmatpush3.bf16.msra.mxu0 %v506_v26 }
  0x1d   :  { %471 = vmatpush3.bf16.msra.mxu1 %v507_v27  ;;  %450 = vmatprep.subr.bf16.mxu0 %v508_v28 }
  0x1e   :  { %472 = vmatprep.subr.bf16.mxu1 %v509_v29 }
  0x20   :  { %451 = vmatpush3.bf16.msra.mxu0 %v510_v30 }
  0x21   :  { %473 = vmatpush3.bf16.msra.mxu1 %v511_v31 }
  0x23   :  { %333 = vmatmul.mubr.bf16.vlgmr.msra.gmra.mrb[0].mxu0 %v399_v38 }
  0x24   :  { %373 = vmatmul.mubr.bf16.vlgmr.msra.gmra.mrb[0].mxu1 %v401_v40 }
  0xf6   :  { %v452_v42 = vpop.f32.mrb[0].mxu0 }
  0xf7   :  { %v474_v43 = vpop.f32.mrb[0].mxu1  ;;  %v453_v44 = vpop.f32.mrb[1].mxu0 }
  0xf8   :  { %v475_v45 = vpop.f32.mrb[1].mxu1  ;;  %v454_v46 = vadd.f32 %v453_v44, %v452_v42  ;;  %v455_v48 = vpop.f32.mrb[2].mxu0 }
  0xf9   :  { %v476_v47 = vadd.f32 %v475_v45, %v474_v43  ;;  %v477_v49 = vpop.f32.mrb[2].mxu1  ;;  %v456_v51 = vpop.f32.mrb[3].mxu0 }
  0xfa   :  { %v478_v52 = vpop.f32.mrb[3].mxu1 }
  0xfb   :  { %v375_v53 = vadd.f32 %v476_v47, %v454_v46 }
  0xfd   :  { %v393_v54 = vadd.f32 %v435_v50, %v375_v53 }
  0xff   :  { %394 = vst [vmem:[%s643_s3] sm:$0xff] %v393_v54 }

// kernel: forward.36
= control target key start
LH: loop header
LB: loop body
LE: loop exit
PB: predicated region body
PF: predicated region fallthrough
CT: control target
= control target key end

     0   :  { %v196_v0 = vmov 0.0   ;;  %vm197_vm0 = vmmov 0   ;;  %s251_s1 = inlined_call_operand.vmem [shape: bf16[128,128], index: 1, kind: input, shape index: {}]   ;;  %s252_s0 = inlined_call_operand.vmem [shape: bf16[8,128], index: 0, kind: input, shape index: {}]   ;;  %s253_s2 = inlined_call_operand.vmem [shape: f32[1,128], index: 2, kind: input, shape index: {}]   ;;  %s254_s3 = inlined_call_operand.vmem [shape: f32[8,128], index: 3, kind: output, shape index: {}]  }
   0x1   :  { %166 = vmatprep.subr.bf16.mxu0 %v196_v0  ;;  %v188_v1 = vld [vmem:[%s251_s1] sm:$0xff]   ;;  %182 = vmatprep.mubr.msk.bf16.mxu0 %vm197_vm0, %v196_v0  ;;  %v189_v2 = vld [vmem:[%s251_s1 + $0x8] sm:$0xff]   ;;  %v190_v3 = vld [vmem:[%s251_s1 + $0x10] sm:$0xff]  }
   0x2   :  { %167 = vmatpush3.bf16.msra.mxu0 %v188_v1  ;;  %v191_v4 = vld [vmem:[%s251_s1 + $0x18] sm:$0xff]   ;;  %v192_v5 = vld [vmem:[%s251_s1 + $0x20] sm:$0xff]   ;;  %v193_v6 = vld [vmem:[%s251_s1 + $0x28] sm:$0xff]  }
   0x3   :  { %168 = vmatprep.subr.bf16.mxu0 %v196_v0  ;;  %v194_v7 = vld [vmem:[%s251_s1 + $0x30] sm:$0xff]   ;;  %v195_v8 = vld [vmem:[%s251_s1 + $0x38] sm:$0xff]   ;;  %v20_v9 = vld [vmem:[%s252_s0] sm:$0xf] }
   0x4   :  { %v156_v10 = vld [vmem:[%s253_s2] ss:$0 sm:$0xff] }
   0x6   :  { %169 = vmatpush3.bf16.msra.mxu0 %v189_v2 }
   0x7   :  { %170 = vmatprep.subr.bf16.mxu0 %v196_v0 }
   0xa   :  { %171 = vmatpush3.bf16.msra.mxu0 %v190_v3 }
   0xb   :  { %172 = vmatprep.subr.bf16.mxu0 %v196_v0 }
   0xe   :  { %173 = vmatpush3.bf16.msra.mxu0 %v191_v4 }
   0xf   :  { %174 = vmatprep.subr.bf16.mxu0 %v196_v0 }
  0x12   :  { %175 = vmatpush3.bf16.msra.mxu0 %v192_v5 }
  0x13   :  { %176 = vmatprep.subr.bf16.mxu0 %v196_v0 }
  0x16   :  { %177 = vmatpush3.bf16.msra.mxu0 %v193_v6 }
  0x17   :  { %178 = vmatprep.subr.bf16.mxu0 %v196_v0 }
  0x1a   :  { %179 = vmatpush3.bf16.msra.mxu0 %v194_v7 }
  0x1b   :  { %180 = vmatprep.subr.bf16.mxu0 %v196_v0 }
  0x1e   :  { %181 = vmatpush3.bf16.msra.mxu0 %v195_v8 }
  0x21   :  { %183 = vmatmul.mubr.bf16.vlgmr.msra.gmra.mrb[0].mxu0 %v20_v9 }
  0xf4   :  { %v120_v11 = vpop.f32.mrb[0].mxu0 }
  0xf5   :  { %v139_v12 = vadd.f32 %v156_v10, %v120_v11  ;;  %v184_v13 = vpop.f32.mrb[1].mxu0 }
  0xf6   :  { %v123_v14 = vpop.f32.mrb[2].mxu0 }
  0xf7   :  { %vm140_vm1 = vcmp.gt.f32.partialorder %v139_v12, 0.0  ;;  %v141_v15 = vmul.f32 0.2, %v139_v12  ;;  %v185_v16 = vpop.f32.mrb[3].mxu0 }
  0xf9   :  { %v142_v17 = vsel %vm140_vm1, %v139_v12, %v141_v15 }
  0xfa   :  { %143 = vst [vmem:[%s254_s3] sm:$0xff] %v142_v17 }

// kernel: tile.7
= control target key start
LH: loop header
LB: loop body
LE: loop exit
PB: predicated region body
PF: predicated region fallthrough
CT: control target
= control target key end

     0   :  { %s26_s0 = inlined_call_operand.<no memory space> [shape: f32[], index: 0, kind: input, shape index: {}]   ;;  %s27_s1 = inlined_call_operand.vmem [shape: f32[1,256], index: 1, kind: output, shape index: {}]  }
   0x1   :  { %v2_v0 = vstv %s26_s0 }
   0x2   :  { %3 = vst [vmem:[%s27_s1] sm:$0x1] %v2_v0  ;;  %6 = vst [vmem:[%s27_s1 + $0x1] sm:$0x1] %v2_v0 }

// kernel: forward.35
= control target key start
LH: loop header
LB: loop body
LE: loop exit
PB: predicated region body
PF: predicated region fallthrough
CT: control target
= control target key end

     0   :  { %s1212_s1 = inlined_call_operand.vmem [shape: bf16[1024,128], index: 1, kind: input, shape index: {}]   ;;  %s1213_s0 = inlined_call_operand.vmem [shape: bf16[8,1024], index: 0, kind: input, shape index: {}]   ;;  %s1214_s2 = inlined_call_operand.vmem [shape: f32[1,128], index: 2, kind: input, shape index: {}]   ;;  %s1215_s3 = inlined_call_operand.vmem [shape: f32[8,128], index: 3, kind: output, shape index: {}]  }
   0x1   :  { %v918_v0 = vld [vmem:[%s1212_s1 + $0x40] sm:$0xff]   ;;  %v922_v4 = vld [vmem:[%s1212_s1 + $0x48] sm:$0xff]   ;;  %v926_v8 = vld [vmem:[%s1212_s1 + $0x50] sm:$0xff]  }
   0x2   :  { %v919_v1 = vld [vmem:[%s1212_s1 + $0xc0] sm:$0xff]   ;;  %830 = vmatprep.subr.bf16.mxu0 %v918_v0  ;;  %v923_v5 = vld [vmem:[%s1212_s1 + $0xc8] sm:$0xff]   ;;  %v927_v9 = vld [vmem:[%s1212_s1 + $0xd0] sm:$0xff]  }
   0x3   :  { %v920_v2 = vld [vmem:[%s1212_s1] sm:$0xff]   ;;  %852 = vmatprep.subr.bf16.mxu1 %v919_v1  ;;  %v924_v6 = vld [vmem:[%s1212_s1 + $0x8] sm:$0xff]   ;;  %v928_v10 = vld [vmem:[%s1212_s1 + $0x10] sm:$0xff]  }
   0x4   :  { %v921_v3 = vld [vmem:[%s1212_s1 + $0x80] sm:$0xff]   ;;  %831 = vmatpush3.bf16.msra.mxu0 %v920_v2  ;;  %v925_v7 = vld [vmem:[%s1212_s1 + $0x88] sm:$0xff]   ;;  %v929_v11 = vld [vmem:[%s1212_s1 + $0x90] sm:$0xff]  }
   0x5   :  { %853 = vmatpush3.bf16.msra.mxu1 %v921_v3  ;;  %832 = vmatprep.subr.bf16.mxu0 %v922_v4  ;;  %v930_v12 = vld [vmem:[%s1212_s1 + $0x58] sm:$0xff]   ;;  %v934_v16 = vld [vmem:[%s1212_s1 + $0x60] sm:$0xff]   ;;  %v938_v20 = vld [vmem:[%s1212_s1 + $0x68] sm:$0xff]  }
   0x6   :  { %854 = vmatprep.subr.bf16.mxu1 %v923_v5  ;;  %v931_v13 = vld [vmem:[%s1212_s1 + $0xd8] sm:$0xff]   ;;  %v935_v17 = vld [vmem:[%s1212_s1 + $0xe0] sm:$0xff]   ;;  %v939_v21 = vld [vmem:[%s1212_s1 + $0xe8] sm:$0xff]  }
   0x7   :  { %v932_v14 = vld [vmem:[%s1212_s1 + $0x18] sm:$0xff]   ;;  %v936_v18 = vld [vmem:[%s1212_s1 + $0x20] sm:$0xff]   ;;  %v940_v22 = vld [vmem:[%s1212_s1 + $0x28] sm:$0xff]  }
   0x8   :  { %833 = vmatpush3.bf16.msra.mxu0 %v924_v6  ;;  %v933_v15 = vld [vmem:[%s1212_s1 + $0x98] sm:$0xff]   ;;  %v937_v19 = vld [vmem:[%s1212_s1 + $0xa0] sm:$0xff]   ;;  %v941_v23 = vld [vmem:[%s1212_s1 + $0xa8] sm:$0xff]  }
   0x9   :  { %855 = vmatpush3.bf16.msra.mxu1 %v925_v7  ;;  %834 = vmatprep.subr.bf16.mxu0 %v926_v8  ;;  %v942_v24 = vld [vmem:[%s1212_s1 + $0x70] sm:$0xff]   ;;  %v946_v28 = vld [vmem:[%s1212_s1 + $0x78] sm:$0xff]   ;;  %v21_v32 = vld [vmem:[%s1213_s0] sm:$0xff] }
   0xa   :  { %856 = vmatprep.subr.bf16.mxu1 %v927_v9  ;;  %v943_v25 = vld [vmem:[%s1212_s1 + $0xf0] sm:$0xff]   ;;  %v947_v29 = vld [vmem:[%s1212_s1 + $0xf8] sm:$0xff]   ;;  %v22_v33 = vld [vmem:[%s1213_s0 + $0x8] sm:$0xff]  ;;  %vm25_vm0 = vcmp.gt.bf16.partialorder %v21_v32, 0  ;;  %v29_v34 = vmul.bf16 1045249613, %v21_v32 }
   0xb   :  { %v944_v26 = vld [vmem:[%s1212_s1 + $0x30] sm:$0xff]   ;;  %v948_v30 = vld [vmem:[%s1212_s1 + $0x38] sm:$0xff]   ;;  %vm26_vm1 = vcmp.gt.bf16.partialorder %v22_v33, 0  ;;  %v30_v35 = vmul.bf16 1045249613, %v22_v33  ;;  %v950_v36 = vld [vmem:[%s1212_s1 + $0x140] sm:$0xff]  }
   0xc   :  { %835 = vmatpush3.bf16.msra.mxu0 %v928_v10  ;;  %v945_v27 = vld [vmem:[%s1212_s1 + $0xb0] sm:$0xff]   ;;  %v949_v31 = vld [vmem:[%s1212_s1 + $0xb8] sm:$0xff]   ;;  %v33_v37 = vsel %vm25_vm0, %v21_v32, %v29_v34  ;;  %v951_v39 = vld [vmem:[%s1212_s1 + $0x1c0] sm:$0xff]  }
   0xd   :  { %857 = vmatpush3.bf16.msra.mxu1 %v929_v11  ;;  %836 = vmatprep.subr.bf16.mxu0 %v930_v12  ;;  %v34_v38 = vsel %vm26_vm1, %v22_v33, %v30_v35  ;;  %v757_v40 = vcombine.low %v33_v37, %v33_v37  ;;  %v758_v41 = vcombine.high %v33_v37, %v33_v37  ;;  %v952_v44 = vld [vmem:[%s1212_s1 + $0x100] sm:$0xff]   ;;  %v954_v46 = vld [vmem:[%s1212_s1 + $0x148] sm:$0xff]   ;;  %v958_v50 = vld [vmem:[%s1212_s1 + $0x150] sm:$0xff]  }
   0xe   :  { %858 = vmatprep.subr.bf16.mxu1 %v931_v13  ;;  %v759_v42 = vcombine.low %v34_v38, %v34_v38  ;;  %v760_v43 = vcombine.high %v34_v38, %v34_v38  ;;  %v953_v45 = vld [vmem:[%s1212_s1 + $0x180] sm:$0xff]   ;;  %v955_v47 = vld [vmem:[%s1212_s1 + $0x1c8] sm:$0xff]   ;;  %v959_v51 = vld [vmem:[%s1212_s1 + $0x1d0] sm:$0xff]  }
   0xf   :  { %610 = vmatprep.mubr.bf16.mxu0 %v758_v41  ;;  %v956_v48 = vld [vmem:[%s1212_s1 + $0x108] sm:$0xff]   ;;  %v960_v52 = vld [vmem:[%s1212_s1 + $0x110] sm:$0xff]   ;;  %v962_v54 = vld [vmem:[%s1212_s1 + $0x158] sm:$0xff]  }
  0x10   :  { %837 = vmatpush3.bf16.msra.mxu0 %v932_v14  ;;  %650 = vmatprep.mubr.bf16.mxu1 %v760_v43  ;;  %v957_v49 = vld [vmem:[%s1212_s1 + $0x188] sm:$0xff]   ;;  %v961_v53 = vld [vmem:[%s1212_s1 + $0x190] sm:$0xff]   ;;  %v963_v55 = vld [vmem:[%s1212_s1 + $0x1d8] sm:$0xff]  }
  0x11   :  { %859 = vmatpush3.bf16.msra.mxu1 %v933_v15  ;;  %838 = vmatprep.subr.bf16.mxu0 %v934_v16  ;;  %v964_v56 = vld [vmem:[%s1212_s1 + $0x118] sm:$0xff]   ;;  %v966_v58 = vld [vmem:[%s1212_s1 + $0x160] sm:$0xff]   ;;  %v970_v62 = vld [vmem:[%s1212_s1 + $0x168] sm:$0xff]  }
  0x12   :  { %860 = vmatprep.subr.bf16.mxu1 %v935_v17  ;;  %v965_v57 = vld [vmem:[%s1212_s1 + $0x198] sm:$0xff]   ;;  %v967_v59 = vld [vmem:[%s1212_s1 + $0x1e0] sm:$0xff]   ;;  %v971_v63 = vld [vmem:[%s1212_s1 + $0x1e8] sm:$0xff]  }
  0x13   :  { %v968_v60 = vld [vmem:[%s1212_s1 + $0x120] sm:$0xff]   ;;  %v972_v0 = vld [vmem:[%s1212_s1 + $0x128] sm:$0xff]   ;;  %v974_v2 = vld [vmem:[%s1212_s1 + $0x170] sm:$0xff]  }
  0x14   :  { %839 = vmatpush3.bf16.msra.mxu0 %v936_v18  ;;  %v969_v61 = vld [vmem:[%s1212_s1 + $0x1a0] sm:$0xff]   ;;  %v973_v1 = vld [vmem:[%s1212_s1 + $0x1a8] sm:$0xff]   ;;  %v975_v3 = vld [vmem:[%s1212_s1 + $0x1f0] sm:$0xff]  }
  0x15   :  { %861 = vmatpush3.bf16.msra.mxu1 %v937_v19  ;;  %840 = vmatprep.subr.bf16.mxu0 %v938_v20  ;;  %v976_v4 = vld [vmem:[%s1212_s1 + $0x130] sm:$0xff]   ;;  %v978_v6 = vld [vmem:[%s1212_s1 + $0x178] sm:$0xff]  }
  0x16   :  { %862 = vmatprep.subr.bf16.mxu1 %v939_v21  ;;  %v977_v5 = vld [vmem:[%s1212_s1 + $0x1b0] sm:$0xff]   ;;  %v979_v7 = vld [vmem:[%s1212_s1 + $0x1f8] sm:$0xff]  }
  0x17   :  { %v980_v8 = vld [vmem:[%s1212_s1 + $0x138] sm:$0xff]   ;;  %v23_v10 = vld [vmem:[%s1213_s0 + $0x10] sm:$0xff] }
  0x18   :  { %841 = vmatpush3.bf16.msra.mxu0 %v940_v22  ;;  %v981_v9 = vld [vmem:[%s1212_s1 + $0x1b8] sm:$0xff]   ;;  %vm27_vm2 = vcmp.gt.bf16.partialorder %v23_v10, 0  ;;  %v31_v11 = vmul.bf16 1045249613, %v23_v10 }
  0x19   :  { %863 = vmatpush3.bf16.msra.mxu1 %v941_v23  ;;  %842 = vmatprep.subr.bf16.mxu0 %v942_v24  ;;  %v24_v12 = vld [vmem:[%s1213_s0 + $0x18] sm:$0xff] }
  0x1a   :  { %864 = vmatprep.subr.bf16.mxu1 %v943_v25  ;;  %vm28_vm3 = vcmp.gt.bf16.partialorder %v24_v12, 0  ;;  %v32_v13 = vmul.bf16 1045249613, %v24_v12  ;;  %v35_v14 = vsel %vm27_vm2, %v23_v10, %v31_v11 }
  0x1b   :  { %v761_v15 = vcombine.low %v35_v14, %v35_v14  ;;  %v762_v16 = vcombine.high %v35_v14, %v35_v14 }
  0x1c   :  { %843 = vmatpush3.bf16.msra.mxu0 %v944_v26  ;;  %v36_v17 = vsel %vm28_vm3, %v24_v12, %v32_v13 }
  0x1d   :  { %865 = vmatpush3.bf16.msra.mxu1 %v945_v27  ;;  %844 = vmatprep.subr.bf16.mxu0 %v946_v28  ;;  %v763_v18 = vcombine.low %v36_v17, %v36_v17  ;;  %v764_v19 = vcombine.high %v36_v17, %v36_v17 }
  0x1e   :  { %866 = vmatprep.subr.bf16.mxu1 %v947_v29 }
  0x20   :  { %845 = vmatpush3.bf16.msra.mxu0 %v948_v30 }
  0x21   :  { %867 = vmatpush3.bf16.msra.mxu1 %v949_v31  ;;  %874 = vmatprep.subr.bf16.mxu0 %v950_v36 }
  0x22   :  { %896 = vmatprep.subr.bf16.mxu1 %v951_v39 }
  0x23   :  { %611 = vmatmul.mubr.bf16.vlgmr.msra.gmra.mrb[0].mxu0 %v757_v40 }
  0x24   :  { %651 = vmatmul.mubr.bf16.vlgmr.msra.gmra.mrb[0].mxu1 %v759_v42  ;;  %875 = vmatpush3.bf16.msra.mxu0 %v952_v44  ;;  %v829_v42 = vld [vmem:[%s1214_s2] ss:$0 sm:$0xff] }
  0x25   :  { %897 = vmatpush3.bf16.msra.mxu1 %v953_v45  ;;  %876 = vmatprep.subr.bf16.mxu0 %v954_v46 }
  0x26   :  { %898 = vmatprep.subr.bf16.mxu1 %v955_v47  ;;  %690 = vmatprep.mubr.bf16.mxu0 %v762_v16 }
  0x27   :  { %730 = vmatprep.mubr.bf16.mxu1 %v764_v19 }
  0x28   :  { %877 = vmatpush3.bf16.msra.mxu0 %v956_v48 }
  0x29   :  { %899 = vmatpush3.bf16.msra.mxu1 %v957_v49  ;;  %878 = vmatprep.subr.bf16.mxu0 %v958_v50 }
  0x2a   :  { %900 = vmatprep.subr.bf16.mxu1 %v959_v51 }
  0x2c   :  { %879 = vmatpush3.bf16.msra.mxu0 %v960_v52 }
  0x2d   :  { %901 = vmatpush3.bf16.msra.mxu1 %v961_v53  ;;  %880 = vmatprep.subr.bf16.mxu0 %v962_v54 }
  0x2e   :  { %902 = vmatprep.subr.bf16.mxu1 %v963_v55 }
  0x30   :  { %881 = vmatpush3.bf16.msra.mxu0 %v964_v56 }
  0x31   :  { %903 = vmatpush3.bf16.msra.mxu1 %v965_v57  ;;  %882 = vmatprep.subr.bf16.mxu0 %v966_v58 }
  0x32   :  { %904 = vmatprep.subr.bf16.mxu1 %v967_v59 }
  0x34   :  { %883 = vmatpush3.bf16.msra.mxu0 %v968_v60 }
  0x35   :  { %905 = vmatpush3.bf16.msra.mxu1 %v969_v61  ;;  %884 = vmatprep.subr.bf16.mxu0 %v970_v62 }
  0x36   :  { %906 = vmatprep.subr.bf16.mxu1 %v971_v63 }
  0x38   :  { %885 = vmatpush3.bf16.msra.mxu0 %v972_v0 }
  0x39   :  { %907 = vmatpush3.bf16.msra.mxu1 %v973_v1  ;;  %886 = vmatprep.subr.bf16.mxu0 %v974_v2 }
  0x3a   :  { %908 = vmatprep.subr.bf16.mxu1 %v975_v3 }
  0x3c   :  { %887 = vmatpush3.bf16.msra.mxu0 %v976_v4 }
  0x3d   :  { %909 = vmatpush3.bf16.msra.mxu1 %v977_v5  ;;  %888 = vmatprep.subr.bf16.mxu0 %v978_v6 }
  0x3e   :  { %910 = vmatprep.subr.bf16.mxu1 %v979_v7 }
  0x40   :  { %889 = vmatpush3.bf16.msra.mxu0 %v980_v8 }
  0x41   :  { %911 = vmatpush3.bf16.msra.mxu1 %v981_v9 }
  0x43   :  { %691 = vmatmul.mubr.bf16.vlgmr.msra.gmra.mrb[4].mxu0 %v761_v15 }
  0x44   :  { %731 = vmatmul.mubr.bf16.vlgmr.msra.gmra.mrb[4].mxu1 %v763_v18 }
  0xf6   :  { %v846_v20 = vpop.f32.mrb[0].mxu0 }
  0xf7   :  { %v868_v21 = vpop.f32.mrb[0].mxu1  ;;  %v847_v22 = vpop.f32.mrb[1].mxu0 }
  0xf8   :  { %v869_v23 = vpop.f32.mrb[1].mxu1  ;;  %v848_v24 = vadd.f32 %v847_v22, %v846_v20  ;;  %v849_v26 = vpop.f32.mrb[2].mxu0 }
  0xf9   :  { %v870_v25 = vadd.f32 %v869_v23, %v868_v21  ;;  %v871_v27 = vpop.f32.mrb[2].mxu1  ;;  %v850_v28 = vpop.f32.mrb[3].mxu0 }
  0xfa   :  { %v872_v29 = vpop.f32.mrb[3].mxu1 }
  0xfb   :  { %v653_v30 = vadd.f32 %v870_v25, %v848_v24 }
 0x116   :  { %v890_v31 = vpop.f32.mrb[4].mxu0 }
 0x117   :  { %v912_v32 = vpop.f32.mrb[4].mxu1  ;;  %v891_v33 = vpop.f32.mrb[5].mxu0 }
 0x118   :  { %v892_v34 = vadd.f32 %v891_v33, %v890_v31  ;;  %v913_v35 = vpop.f32.mrb[5].mxu1  ;;  %v893_v36 = vpop.f32.mrb[6].mxu0 }
 0x119   :  { %v914_v37 = vadd.f32 %v913_v35, %v912_v32  ;;  %v915_v38 = vpop.f32.mrb[6].mxu1  ;;  %v894_v39 = vpop.f32.mrb[7].mxu0 }
 0x11a   :  { %v693_v40 = vadd.f32 %v892_v34, %v653_v30  ;;  %v916_v41 = vpop.f32.mrb[7].mxu1 }
 0x11c   :  { %v733_v43 = vadd.f32 %v914_v37, %v693_v40 }
 0x11e   :  { %v751_v44 = vadd.f32 %v829_v42, %v733_v43 }
 0x120   :  { %752 = vst [vmem:[%s1215_s3] sm:$0xff] %v751_v44 }

// kernel: forward.37
= control target key start
LH: loop header
LB: loop body
LE: loop exit
PB: predicated region body
PF: predicated region fallthrough
CT: control target
= control target key end

     0   :  { %v885_v48 = vmov 0   ;;  %s1168_s1 = inlined_call_operand.vmem [shape: bf16[640,256], index: 1, kind: input, shape index: {}]   ;;  %s1169_s0 = inlined_call_operand.vmem [shape: bf16[8,640], index: 0, kind: input, shape index: {}]   ;;  %s1170_s2 = inlined_call_operand.vmem [shape: f32[1,256], index: 2, kind: input, shape index: {}]   ;;  %s1171_s3 = inlined_call_operand.vmem [shape: f32[8,256], index: 3, kind: output, shape index: {}]  }
   0x1   :  { %v765_v0 = vld [vmem:[%s1168_s1 + $0x4] ss:$8 sps:$4 sm:$0xff]   ;;  %v769_v2 = vld [vmem:[%s1168_s1] ss:$8 sps:$4 sm:$0xff]   ;;  %v771_v4 = vld [vmem:[%s1168_s1 + $0x14] ss:$8 sps:$4 sm:$0xff]  }
   0x2   :  { %v767_v1 = vld [vmem:[%s1168_s1 + $0x104] ss:$8 sps:$4 sm:$0xff]   ;;  %527 = vmatprep.subr.bf16.mxu0 %v765_v0  ;;  %v770_v3 = vld [vmem:[%s1168_s1 + $0x100] ss:$8 sps:$4 sm:$0xff]   ;;  %v773_v5 = vld [vmem:[%s1168_s1 + $0x114] ss:$8 sps:$4 sm:$0xff]  }
   0x3   :  { %568 = vmatprep.subr.bf16.mxu1 %v767_v1  ;;  %528 = vmatpush1.bf16.msra.mxu0 %v769_v2  ;;  %v775_v6 = vld [vmem:[%s1168_s1 + $0x10] ss:$8 sps:$4 sm:$0xff]   ;;  %v777_v8 = vld [vmem:[%s1168_s1 + $0x24] ss:$8 sps:$4 sm:$0xff]   ;;  %v781_v10 = vld [vmem:[%s1168_s1 + $0x20] ss:$8 sps:$4 sm:$0xff]  }
   0x4   :  { %569 = vmatpush1.bf16.msra.mxu1 %v770_v3  ;;  %529 = vmatprep.subr.bf16.mxu0 %v771_v4  ;;  %v776_v7 = vld [vmem:[%s1168_s1 + $0x110] ss:$8 sps:$4 sm:$0xff]   ;;  %v779_v9 = vld [vmem:[%s1168_s1 + $0x124] ss:$8 sps:$4 sm:$0xff]   ;;  %v782_v11 = vld [vmem:[%s1168_s1 + $0x120] ss:$8 sps:$4 sm:$0xff]  }
   0x5   :  { %570 = vmatprep.subr.bf16.mxu1 %v773_v5  ;;  %v783_v12 = vld [vmem:[%s1168_s1 + $0x34] ss:$8 sps:$4 sm:$0xff]   ;;  %v787_v14 = vld [vmem:[%s1168_s1 + $0x30] ss:$8 sps:$4 sm:$0xff]   ;;  %v789_v16 = vld [vmem:[%s1168_s1 + $0x44] ss:$8 sps:$4 sm:$0xff]  }
   0x6   :  { %v785_v13 = vld [vmem:[%s1168_s1 + $0x134] ss:$8 sps:$4 sm:$0xff]   ;;  %v788_v15 = vld [vmem:[%s1168_s1 + $0x130] ss:$8 sps:$4 sm:$0xff]   ;;  %v791_v17 = vld [vmem:[%s1168_s1 + $0x144] ss:$8 sps:$4 sm:$0xff]  }
   0x7   :  { %530 = vmatpush1.bf16.msra.mxu0 %v775_v6  ;;  %v793_v18 = vld [vmem:[%s1168_s1 + $0x40] ss:$8 sps:$4 sm:$0xff]   ;;  %v795_v20 = vld [vmem:[%s1168_s1 + $0x54] ss:$8 sps:$4 sm:$0xff]   ;;  %v799_v22 = vld [vmem:[%s1168_s1 + $0x50] ss:$8 sps:$4 sm:$0xff]  }
   0x8   :  { %571 = vmatpush1.bf16.msra.mxu1 %v776_v7  ;;  %531 = vmatprep.subr.bf16.mxu0 %v777_v8  ;;  %v794_v19 = vld [vmem:[%s1168_s1 + $0x140] ss:$8 sps:$4 sm:$0xff]   ;;  %v797_v21 = vld [vmem:[%s1168_s1 + $0x154] ss:$8 sps:$4 sm:$0xff]   ;;  %v800_v23 = vld [vmem:[%s1168_s1 + $0x150] ss:$8 sps:$4 sm:$0xff]  }
   0x9   :  { %572 = vmatprep.subr.bf16.mxu1 %v779_v9  ;;  %v801_v24 = vld [vmem:[%s1168_s1 + $0x64] ss:$8 sps:$4 sm:$0xff]   ;;  %v805_v26 = vld [vmem:[%s1168_s1 + $0x60] ss:$8 sps:$4 sm:$0xff]   ;;  %v807_v28 = vld [vmem:[%s1168_s1 + $0x74] ss:$8 sps:$4 sm:$0xff]  }
   0xa   :  { %v803_v25 = vld [vmem:[%s1168_s1 + $0x164] ss:$8 sps:$4 sm:$0xff]   ;;  %v806_v27 = vld [vmem:[%s1168_s1 + $0x160] ss:$8 sps:$4 sm:$0xff]   ;;  %v809_v29 = vld [vmem:[%s1168_s1 + $0x174] ss:$8 sps:$4 sm:$0xff]  }
   0xb   :  { %532 = vmatpush1.bf16.msra.mxu0 %v781_v10  ;;  %v811_v30 = vld [vmem:[%s1168_s1 + $0x70] ss:$8 sps:$4 sm:$0xff]   ;;  %v813_v32 = vld [vmem:[%s1168_s1 + $0x84] ss:$8 sps:$4 sm:$0xff]   ;;  %v817_v34 = vld [vmem:[%s1168_s1 + $0x80] ss:$8 sps:$4 sm:$0xff]  }
   0xc   :  { %573 = vmatpush1.bf16.msra.mxu1 %v782_v11  ;;  %533 = vmatprep.subr.bf16.mxu0 %v783_v12  ;;  %v812_v31 = vld [vmem:[%s1168_s1 + $0x170] ss:$8 sps:$4 sm:$0xff]   ;;  %v815_v33 = vld [vmem:[%s1168_s1 + $0x184] ss:$8 sps:$4 sm:$0xff]   ;;  %v818_v35 = vld [vmem:[%s1168_s1 + $0x180] ss:$8 sps:$4 sm:$0xff]  }
   0xd   :  { %574 = vmatprep.subr.bf16.mxu1 %v785_v13  ;;  %v819_v36 = vld [vmem:[%s1168_s1 + $0x94] ss:$8 sps:$4 sm:$0xff]   ;;  %v823_v38 = vld [vmem:[%s1168_s1 + $0x90] ss:$8 sps:$4 sm:$0xff]   ;;  %v825_v40 = vld [vmem:[%s1168_s1 + $0xa4] ss:$8 sps:$4 sm:$0xff]  }
   0xe   :  { %v821_v37 = vld [vmem:[%s1168_s1 + $0x194] ss:$8 sps:$4 sm:$0xff]   ;;  %v824_v39 = vld [vmem:[%s1168_s1 + $0x190] ss:$8 sps:$4 sm:$0xff]   ;;  %v827_v41 = vld [vmem:[%s1168_s1 + $0x1a4] ss:$8 sps:$4 sm:$0xff]  }
   0xf   :  { %534 = vmatpush1.bf16.msra.mxu0 %v787_v14  ;;  %v829_v42 = vld [vmem:[%s1168_s1 + $0xa0] ss:$8 sps:$4 sm:$0xff]   ;;  %v831_v44 = vld [vmem:[%s1168_s1 + $0xb4] ss:$8 sps:$4 sm:$0xff]   ;;  %v835_v47 = vld [vmem:[%s1168_s1 + $0xb0] ss:$8 sps:$4 sm:$0xff]  }
  0x10   :  { %575 = vmatpush1.bf16.msra.mxu1 %v788_v15  ;;  %535 = vmatprep.subr.bf16.mxu0 %v789_v16  ;;  %v830_v43 = vld [vmem:[%s1168_s1 + $0x1a0] ss:$8 sps:$4 sm:$0xff]   ;;  %v833_v45 = vld [vmem:[%s1168_s1 + $0x1b4] ss:$8 sps:$4 sm:$0xff]   ;;  %v836_v51 = vld [vmem:[%s1168_s1 + $0x1b0] ss:$8 sps:$4 sm:$0xff]  }
  0x11   :  { %576 = vmatprep.subr.bf16.mxu1 %v791_v17  ;;  %v21_v46 = vld [vmem:[%s1169_s0] sm:$0xff]  ;;  %v22_v50 = vld [vmem:[%s1169_s0 + $0x8] sm:$0xff]  ;;  %v843_v59 = vld [vmem:[%s1168_s1 + $0xd4] ss:$8 sps:$4 sm:$0xff]  }
  0x12   :  { %v24_v49 = vmax.bf16 %v885_v48, %v21_v46  ;;  %v837_v52 = vld [vmem:[%s1168_s1 + $0xc4] ss:$8 sps:$4 sm:$0xff]   ;;  %v25_v53 = vmax.bf16 %v885_v48, %v22_v50  ;;  %v841_v57 = vld [vmem:[%s1168_s1 + $0xc0] ss:$8 sps:$4 sm:$0xff]   ;;  %v845_v60 = vld [vmem:[%s1168_s1 + $0x1d4] ss:$8 sps:$4 sm:$0xff]  }
  0x13   :  { %536 = vmatpush1.bf16.msra.mxu0 %v793_v18  ;;  %v839_v54 = vld [vmem:[%s1168_s1 + $0x1c4] ss:$8 sps:$4 sm:$0xff]   ;;  %v842_v58 = vld [vmem:[%s1168_s1 + $0x1c0] ss:$8 sps:$4 sm:$0xff]   ;;  %v847_v61 = vld [vmem:[%s1168_s1 + $0xd0] ss:$8 sps:$4 sm:$0xff]  }
  0x14   :  { %577 = vmatpush1.bf16.msra.mxu1 %v794_v19  ;;  %537 = vmatprep.subr.bf16.mxu0 %v795_v20  ;;  %v680_v55 = vcombine.high %v24_v49, %v24_v49  ;;  %v682_v56 = vcombine.high %v25_v53, %v25_v53  ;;  %v848_v62 = vld [vmem:[%s1168_s1 + $0x1d0] ss:$8 sps:$4 sm:$0xff]   ;;  %v849_v63 = vld [vmem:[%s1168_s1 + $0xe4] ss:$8 sps:$4 sm:$0xff]   ;;  %v853_v1 = vld [vmem:[%s1168_s1 + $0xe0] ss:$8 sps:$4 sm:$0xff]   ;;  %v679_v8 = vcombine.low %v24_v49, %v24_v49 }
  0x15   :  { %578 = vmatprep.subr.bf16.mxu1 %v797_v21  ;;  %v851_v0 = vld [vmem:[%s1168_s1 + $0x1e4] ss:$8 sps:$4 sm:$0xff]   ;;  %v854_v2 = vld [vmem:[%s1168_s1 + $0x1e0] ss:$8 sps:$4 sm:$0xff]   ;;  %v855_v3 = vld [vmem:[%s1168_s1 + $0xf4] ss:$8 sps:$4 sm:$0xff]   ;;  %v681_v9 = vcombine.low %v25_v53, %v25_v53 }
  0x16   :  { %559 = vmatprep.mubr.bf16.mxu0 %v680_v55  ;;  %600 = vmatprep.mubr.bf16.mxu1 %v682_v56  ;;  %v857_v4 = vld [vmem:[%s1168_s1 + $0x1f4] ss:$8 sps:$4 sm:$0xff]   ;;  %v859_v5 = vld [vmem:[%s1168_s1 + $0xf0] ss:$8 sps:$4 sm:$0xff]   ;;  %v863_v7 = vld [vmem:[%s1168_s1 + $0x204] ss:$8 sps:$4 sm:$0xff]  }
  0x17   :  { %538 = vmatpush1.bf16.msra.mxu0 %v799_v22  ;;  %v860_v6 = vld [vmem:[%s1168_s1 + $0x1f0] ss:$8 sps:$4 sm:$0xff]   ;;  %v861_v10 = vld [vmem:[%s1168_s1 + $0x200] ss:$8 sps:$4 sm:$0xff]   ;;  %v866_v11 = vld [vmem:[%s1168_s1 + $0x214] ss:$8 sps:$4 sm:$0xff]  }
  0x18   :  { %579 = vmatpush1.bf16.msra.mxu1 %v800_v23  ;;  %539 = vmatprep.subr.bf16.mxu0 %v801_v24  ;;  %v864_v12 = vld [vmem:[%s1168_s1 + $0x210] ss:$8 sps:$4 sm:$0xff]   ;;  %v869_v13 = vld [vmem:[%s1168_s1 + $0x224] ss:$8 sps:$4 sm:$0xff]   ;;  %v867_v14 = vld [vmem:[%s1168_s1 + $0x220] ss:$8 sps:$4 sm:$0xff]  }
  0x19   :  { %580 = vmatprep.subr.bf16.mxu1 %v803_v25  ;;  %v872_v15 = vld [vmem:[%s1168_s1 + $0x234] ss:$8 sps:$4 sm:$0xff]   ;;  %v870_v16 = vld [vmem:[%s1168_s1 + $0x230] ss:$8 sps:$4 sm:$0xff]   ;;  %v875_v17 = vld [vmem:[%s1168_s1 + $0x244] ss:$8 sps:$4 sm:$0xff]  }
  0x1a   :  { %v873_v18 = vld [vmem:[%s1168_s1 + $0x240] ss:$8 sps:$4 sm:$0xff]   ;;  %v878_v19 = vld [vmem:[%s1168_s1 + $0x254] ss:$8 sps:$4 sm:$0xff]   ;;  %v876_v20 = vld [vmem:[%s1168_s1 + $0x250] ss:$8 sps:$4 sm:$0xff]  }
  0x1b   :  { %540 = vmatpush1.bf16.msra.mxu0 %v805_v26  ;;  %v881_v21 = vld [vmem:[%s1168_s1 + $0x264] ss:$8 sps:$4 sm:$0xff]   ;;  %v23_v22 = vld [vmem:[%s1169_s0 + $0x10] sm:$0xf]  ;;  %v879_v23 = vld [vmem:[%s1168_s1 + $0x260] ss:$8 sps:$4 sm:$0xff]  }
  0x1c   :  { %581 = vmatpush1.bf16.msra.mxu1 %v806_v27  ;;  %541 = vmatprep.subr.bf16.mxu0 %v807_v28  ;;  %v884_v24 = vld [vmem:[%s1168_s1 + $0x274] ss:$8 sps:$4 sm:$0xff]   ;;  %v26_v25 = vmax.bf16 %v885_v48, %v23_v22  ;;  %v882_v26 = vld [vmem:[%s1168_s1 + $0x270] ss:$8 sps:$4 sm:$0xff]  }
  0x1d   :  { %582 = vmatprep.subr.bf16.mxu1 %v809_v29 }
  0x1e   :  { %v683_v27 = vcombine.low %v26_v25, %v26_v25 }
  0x1f   :  { %542 = vmatpush1.bf16.msra.mxu0 %v811_v30 }
  0x20   :  { %583 = vmatpush1.bf16.msra.mxu1 %v812_v31  ;;  %543 = vmatprep.subr.bf16.mxu0 %v813_v32 }
  0x21   :  { %584 = vmatprep.subr.bf16.mxu1 %v815_v33 }
  0x23   :  { %544 = vmatpush1.bf16.msra.mxu0 %v817_v34 }
  0x24   :  { %585 = vmatpush1.bf16.msra.mxu1 %v818_v35  ;;  %545 = vmatprep.subr.bf16.mxu0 %v819_v36 }
  0x25   :  { %586 = vmatprep.subr.bf16.mxu1 %v821_v37 }
  0x27   :  { %546 = vmatpush1.bf16.msra.mxu0 %v823_v38  ;;  %v661_v38 = vlaneseq }
  0x28   :  { %587 = vmatpush1.bf16.msra.mxu1 %v824_v39  ;;  %547 = vmatprep.subr.bf16.mxu0 %v825_v40 }
  0x29   :  { %588 = vmatprep.subr.bf16.mxu1 %v827_v41  ;;  %v662_v39 = vshrl.u32 %v661_v38, 7  ;;  %v659_v41 = vld [vmem:[%s1170_s2] sm:$0x3] }
  0x2b   :  { %548 = vmatpush1.bf16.msra.mxu0 %v829_v42  ;;  %v663_v40 = vsub.s32 0, %v662_v39  ;;  %v667_v42 = vsub.s32 1, %v662_v39 }
  0x2c   :  { %589 = vmatpush1.bf16.msra.mxu1 %v830_v43  ;;  %549 = vmatprep.subr.bf16.mxu0 %v831_v44 }
  0x2d   :  { %590 = vmatprep.subr.bf16.mxu1 %v833_v45  ;;  %v664_v43 = vrot.slane %v659_v41, %v663_v40  ;;  %v668_v45 = vrot.slane %v659_v41, %v667_v42 }
  0x2f   :  { %550 = vmatpush1.bf16.msra.mxu0 %v835_v47 }
  0x30   :  { %591 = vmatpush1.bf16.msra.mxu1 %v836_v51  ;;  %551 = vmatprep.subr.bf16.mxu0 %v837_v52 }
  0x31   :  { %592 = vmatprep.subr.bf16.mxu1 %v839_v54 }
  0x33   :  { %552 = vmatpush1.bf16.msra.mxu0 %v841_v57 }
  0x34   :  { %593 = vmatpush1.bf16.msra.mxu1 %v842_v58  ;;  %553 = vmatprep.subr.bf16.mxu0 %v843_v59 }
  0x35   :  { %594 = vmatprep.subr.bf16.mxu1 %v845_v60 }
  0x37   :  { %554 = vmatpush1.bf16.msra.mxu0 %v847_v61 }
  0x38   :  { %595 = vmatpush1.bf16.msra.mxu1 %v848_v62  ;;  %555 = vmatprep.subr.bf16.mxu0 %v849_v63 }
  0x39   :  { %596 = vmatprep.subr.bf16.mxu1 %v851_v0 }
  0x3b   :  { %556 = vmatpush1.bf16.msra.mxu0 %v853_v1 }
  0x3c   :  { %597 = vmatpush1.bf16.msra.mxu1 %v854_v2  ;;  %557 = vmatprep.subr.bf16.mxu0 %v855_v3 }
  0x3d   :  { %598 = vmatprep.subr.bf16.mxu1 %v857_v4 }
  0x3f   :  { %558 = vmatpush1.bf16.msra.mxu0 %v859_v5 }
  0x40   :  { %599 = vmatpush1.bf16.msra.mxu1 %v860_v6  ;;  %609 = vmatprep.subr.bf16.mxu0 %v863_v7 }
  0x42   :  { %560 = vmatmul.mubr.bf16.vlgmr.msra.gmra.mrb[0].mxu0 %v679_v8 }
  0x43   :  { %601 = vmatmul.mubr.bf16.vlgmr.msra.gmra.mrb[0].mxu1 %v681_v9  ;;  %610 = vmatpush1.bf16.msra.mxu0 %v861_v10 }
  0x44   :  { %641 = vmatprep.mubr.bf16.mxu0 %v885_v48  ;;  %611 = vmatprep.subr.bf16.mxu0 %v866_v11 }
  0x47   :  { %612 = vmatpush1.bf16.msra.mxu0 %v864_v12 }
  0x48   :  { %613 = vmatprep.subr.bf16.mxu0 %v869_v13 }
  0x4b   :  { %614 = vmatpush1.bf16.msra.mxu0 %v867_v14 }
  0x4c   :  { %615 = vmatprep.subr.bf16.mxu0 %v872_v15 }
  0x4f   :  { %616 = vmatpush1.bf16.msra.mxu0 %v870_v16 }
  0x50   :  { %617 = vmatprep.subr.bf16.mxu0 %v875_v17 }
  0x53   :  { %618 = vmatpush1.bf16.msra.mxu0 %v873_v18 }
  0x54   :  { %619 = vmatprep.subr.bf16.mxu0 %v878_v19 }
  0x57   :  { %620 = vmatpush1.bf16.msra.mxu0 %v876_v20 }
  0x58   :  { %621 = vmatprep.subr.bf16.mxu0 %v881_v21 }
  0x5b   :  { %622 = vmatpush1.bf16.msra.mxu0 %v879_v23 }
  0x5c   :  { %623 = vmatprep.subr.bf16.mxu0 %v884_v24 }
  0x5f   :  { %624 = vmatpush1.bf16.msra.mxu0 %v882_v26 }
  0x62   :  { %642 = vmatmul.mubr.bf16.vlgmr.msra.gmra.mrb[4].mxu0 %v683_v27 }
 0x115   :  { %v561_v28 = vpop.f32.mrb[0].mxu0 }
 0x116   :  { %v602_v29 = vpop.f32.mrb[0].mxu1  ;;  %v563_v31 = vpop.f32.mrb[1].mxu0 }
 0x117   :  { %v603_v30 = vadd.f32 %v602_v29, %v561_v28  ;;  %v604_v32 = vpop.f32.mrb[1].mxu1  ;;  %v565_v34 = vpop.f32.mrb[2].mxu0 }
 0x118   :  { %v605_v33 = vadd.f32 %v604_v32, %v563_v31  ;;  %v606_v35 = vpop.f32.mrb[2].mxu1  ;;  %v566_v36 = vpop.f32.mrb[3].mxu0 }
 0x119   :  { %v607_v37 = vpop.f32.mrb[3].mxu1 }
 0x135   :  { %v643_v44 = vpop.f32.mrb[4].mxu0 }
 0x136   :  { %v644_v46 = vadd.f32 %v643_v44, %v603_v30  ;;  %v645_v47 = vpop.f32.mrb[5].mxu0 }
 0x137   :  { %v646_v48 = vadd.f32 %v645_v47, %v605_v33  ;;  %v647_v49 = vpop.f32.mrb[6].mxu0 }
 0x138   :  { %v671_v50 = vadd.f32 %v664_v43, %v644_v46  ;;  %v648_v51 = vpop.f32.mrb[7].mxu0 }
 0x139   :  { %v672_v52 = vadd.f32 %v668_v45, %v646_v48 }
 0x13a   :  { %673 = vst [vmem:[%s1171_s3] sm:$0xff] %v671_v50 }
 0x13b   :  { %674 = vst [vmem:[%s1171_s3 + $0x8] sm:$0xff] %v672_v52 }

// kernel: tile.6
= control target key start
LH: loop header
LB: loop body
LE: loop exit
PB: predicated region body
PF: predicated region fallthrough
CT: control target
= control target key end

     0   :  { %s20_s0 = inlined_call_operand.<no memory space> [shape: f32[], index: 0, kind: input, shape index: {}]   ;;  %s21_s1 = inlined_call_operand.vmem [shape: f32[1,128], index: 1, kind: output, shape index: {}]  }
   0x1   :  { %v2_v0 = vstv %s20_s0 }
   0x2   :  { %3 = vst [vmem:[%s21_s1] sm:$0x1] %v2_v0 }

// kernel: forward.40
= control target key start
LH: loop header
LB: loop body
LE: loop exit
PB: predicated region body
PF: predicated region fallthrough
CT: control target
= control target key end

     0   :  { %v1132_v34 = vmov 0   ;;  %vm1134_vm0 = vmmov 0   ;;  %s1397_s1 = inlined_call_operand.vmem [shape: bf16[1152,128], index: 1, kind: input, shape index: {}]   ;;  %s1398_s0 = inlined_call_operand.vmem [shape: bf16[8,1152], index: 0, kind: input, shape index: {}]   ;;  %s1399_s2 = inlined_call_operand.vmem [shape: f32[1,128], index: 2, kind: input, shape index: {}]   ;;  %s1400_s3 = inlined_call_operand.vmem [shape: f32[8,128], index: 3, kind: output, shape index: {}]  }
   0x1   :  { %v1060_v0 = vld [vmem:[%s1397_s1 + $0x40] sm:$0xff]   ;;  %v1064_v4 = vld [vmem:[%s1397_s1 + $0x48] sm:$0xff]   ;;  %v1068_v8 = vld [vmem:[%s1397_s1 + $0x50] sm:$0xff]  }
   0x2   :  { %v1061_v1 = vld [vmem:[%s1397_s1 + $0xc0] sm:$0xff]   ;;  %940 = vmatprep.subr.bf16.mxu0 %v1060_v0  ;;  %v1065_v5 = vld [vmem:[%s1397_s1 + $0xc8] sm:$0xff]   ;;  %v1069_v9 = vld [vmem:[%s1397_s1 + $0xd0] sm:$0xff]  }
   0x3   :  { %v1062_v2 = vld [vmem:[%s1397_s1] sm:$0xff]   ;;  %962 = vmatprep.subr.bf16.mxu1 %v1061_v1  ;;  %v1066_v6 = vld [vmem:[%s1397_s1 + $0x8] sm:$0xff]   ;;  %v1070_v10 = vld [vmem:[%s1397_s1 + $0x10] sm:$0xff]  }
   0x4   :  { %v1063_v3 = vld [vmem:[%s1397_s1 + $0x80] sm:$0xff]   ;;  %941 = vmatpush3.bf16.msra.mxu0 %v1062_v2  ;;  %v1067_v7 = vld [vmem:[%s1397_s1 + $0x88] sm:$0xff]   ;;  %v1071_v11 = vld [vmem:[%s1397_s1 + $0x90] sm:$0xff]  }
   0x5   :  { %963 = vmatpush3.bf16.msra.mxu1 %v1063_v3  ;;  %942 = vmatprep.subr.bf16.mxu0 %v1064_v4  ;;  %v1072_v12 = vld [vmem:[%s1397_s1 + $0x58] sm:$0xff]   ;;  %v1076_v16 = vld [vmem:[%s1397_s1 + $0x60] sm:$0xff]   ;;  %v1080_v20 = vld [vmem:[%s1397_s1 + $0x68] sm:$0xff]  }
   0x6   :  { %964 = vmatprep.subr.bf16.mxu1 %v1065_v5  ;;  %v1073_v13 = vld [vmem:[%s1397_s1 + $0xd8] sm:$0xff]   ;;  %v1077_v17 = vld [vmem:[%s1397_s1 + $0xe0] sm:$0xff]   ;;  %v1081_v21 = vld [vmem:[%s1397_s1 + $0xe8] sm:$0xff]  }
   0x7   :  { %v1074_v14 = vld [vmem:[%s1397_s1 + $0x18] sm:$0xff]   ;;  %v1078_v18 = vld [vmem:[%s1397_s1 + $0x20] sm:$0xff]   ;;  %v1082_v22 = vld [vmem:[%s1397_s1 + $0x28] sm:$0xff]  }
   0x8   :  { %943 = vmatpush3.bf16.msra.mxu0 %v1066_v6  ;;  %v1075_v15 = vld [vmem:[%s1397_s1 + $0x98] sm:$0xff]   ;;  %v1079_v19 = vld [vmem:[%s1397_s1 + $0xa0] sm:$0xff]   ;;  %v1083_v23 = vld [vmem:[%s1397_s1 + $0xa8] sm:$0xff]  }
   0x9   :  { %965 = vmatpush3.bf16.msra.mxu1 %v1067_v7  ;;  %944 = vmatprep.subr.bf16.mxu0 %v1068_v8  ;;  %v1084_v24 = vld [vmem:[%s1397_s1 + $0x70] sm:$0xff]   ;;  %v1088_v28 = vld [vmem:[%s1397_s1 + $0x78] sm:$0xff]   ;;  %v20_v32 = vld [vmem:[%s1398_s0] sm:$0xff] }
   0xa   :  { %966 = vmatprep.subr.bf16.mxu1 %v1069_v9  ;;  %v1085_v25 = vld [vmem:[%s1397_s1 + $0xf0] sm:$0xff]   ;;  %v1089_v29 = vld [vmem:[%s1397_s1 + $0xf8] sm:$0xff]   ;;  %v21_v33 = vld [vmem:[%s1398_s0 + $0x8] sm:$0xff]  ;;  %v25_v35 = vmax.bf16 %v1132_v34, %v20_v32 }
   0xb   :  { %v1086_v26 = vld [vmem:[%s1397_s1 + $0x30] sm:$0xff]   ;;  %v1090_v30 = vld [vmem:[%s1397_s1 + $0x38] sm:$0xff]   ;;  %v26_v36 = vmax.bf16 %v1132_v34, %v21_v33  ;;  %v1092_v37 = vld [vmem:[%s1397_s1 + $0x140] sm:$0xff]  }
   0xc   :  { %945 = vmatpush3.bf16.msra.mxu0 %v1070_v10  ;;  %v1087_v27 = vld [vmem:[%s1397_s1 + $0xb0] sm:$0xff]   ;;  %v1091_v31 = vld [vmem:[%s1397_s1 + $0xb8] sm:$0xff]   ;;  %v1093_v38 = vld [vmem:[%s1397_s1 + $0x100] sm:$0xff]   ;;  %v859_v39 = vcombine.high %v25_v35, %v25_v35  ;;  %v858_v41 = vcombine.low %v25_v35, %v25_v35 }
   0xd   :  { %967 = vmatpush3.bf16.msra.mxu1 %v1071_v11  ;;  %946 = vmatprep.subr.bf16.mxu0 %v1072_v12  ;;  %v861_v40 = vcombine.high %v26_v36, %v26_v36  ;;  %v860_v42 = vcombine.low %v26_v36, %v26_v36  ;;  %v1094_v43 = vld [vmem:[%s1397_s1 + $0x1c0] sm:$0xff]   ;;  %v1096_v45 = vld [vmem:[%s1397_s1 + $0x148] sm:$0xff]   ;;  %v1100_v49 = vld [vmem:[%s1397_s1 + $0x150] sm:$0xff]  }
   0xe   :  { %968 = vmatprep.subr.bf16.mxu1 %v1073_v13  ;;  %v1095_v44 = vld [vmem:[%s1397_s1 + $0x180] sm:$0xff]   ;;  %671 = vmatprep.mubr.bf16.mxu0 %v859_v39  ;;  %v1097_v46 = vld [vmem:[%s1397_s1 + $0x108] sm:$0xff]   ;;  %v1101_v50 = vld [vmem:[%s1397_s1 + $0x110] sm:$0xff]  }
   0xf   :  { %711 = vmatprep.mubr.bf16.mxu1 %v861_v40  ;;  %v1098_v47 = vld [vmem:[%s1397_s1 + $0x1c8] sm:$0xff]   ;;  %v1102_v51 = vld [vmem:[%s1397_s1 + $0x1d0] sm:$0xff]   ;;  %v1104_v53 = vld [vmem:[%s1397_s1 + $0x158] sm:$0xff]  }
  0x10   :  { %947 = vmatpush3.bf16.msra.mxu0 %v1074_v14  ;;  %v1099_v48 = vld [vmem:[%s1397_s1 + $0x188] sm:$0xff]   ;;  %v1103_v52 = vld [vmem:[%s1397_s1 + $0x190] sm:$0xff]   ;;  %v1105_v54 = vld [vmem:[%s1397_s1 + $0x118] sm:$0xff]  }
  0x11   :  { %969 = vmatpush3.bf16.msra.mxu1 %v1075_v15  ;;  %948 = vmatprep.subr.bf16.mxu0 %v1076_v16  ;;  %v1106_v55 = vld [vmem:[%s1397_s1 + $0x1d8] sm:$0xff]   ;;  %v1108_v57 = vld [vmem:[%s1397_s1 + $0x160] sm:$0xff]   ;;  %v1112_v61 = vld [vmem:[%s1397_s1 + $0x168] sm:$0xff]  }
  0x12   :  { %970 = vmatprep.subr.bf16.mxu1 %v1077_v17  ;;  %v1107_v56 = vld [vmem:[%s1397_s1 + $0x198] sm:$0xff]   ;;  %v1109_v58 = vld [vmem:[%s1397_s1 + $0x120] sm:$0xff]   ;;  %v1113_v62 = vld [vmem:[%s1397_s1 + $0x128] sm:$0xff]  }
  0x13   :  { %v1110_v59 = vld [vmem:[%s1397_s1 + $0x1e0] sm:$0xff]   ;;  %v1114_v63 = vld [vmem:[%s1397_s1 + $0x1e8] sm:$0xff]   ;;  %v1116_v1 = vld [vmem:[%s1397_s1 + $0x170] sm:$0xff]  }
  0x14   :  { %949 = vmatpush3.bf16.msra.mxu0 %v1078_v18  ;;  %v1111_v60 = vld [vmem:[%s1397_s1 + $0x1a0] sm:$0xff]   ;;  %v1115_v0 = vld [vmem:[%s1397_s1 + $0x1a8] sm:$0xff]   ;;  %v1117_v2 = vld [vmem:[%s1397_s1 + $0x130] sm:$0xff]   ;;  %v1133_v18 = vmov 0.0  }
  0x15   :  { %971 = vmatpush3.bf16.msra.mxu1 %v1079_v19  ;;  %950 = vmatprep.subr.bf16.mxu0 %v1080_v20  ;;  %v1118_v3 = vld [vmem:[%s1397_s1 + $0x1f0] sm:$0xff]   ;;  %v1120_v5 = vld [vmem:[%s1397_s1 + $0x178] sm:$0xff]   ;;  %v1124_v15 = vld [vmem:[%s1397_s1 + $0x200] sm:$0xff]  }
  0x16   :  { %972 = vmatprep.subr.bf16.mxu1 %v1081_v21  ;;  %v1119_v4 = vld [vmem:[%s1397_s1 + $0x1b0] sm:$0xff]   ;;  %v1121_v6 = vld [vmem:[%s1397_s1 + $0x138] sm:$0xff]   ;;  %v1125_v19 = vld [vmem:[%s1397_s1 + $0x208] sm:$0xff]  }
  0x17   :  { %v1122_v7 = vld [vmem:[%s1397_s1 + $0x1f8] sm:$0xff]   ;;  %v22_v8 = vld [vmem:[%s1398_s0 + $0x10] sm:$0xff]  ;;  %v24_v20 = vld [vmem:[%s1398_s0 + $0x20] sm:$0xf] }
  0x18   :  { %951 = vmatpush3.bf16.msra.mxu0 %v1082_v22  ;;  %v27_v9 = vmax.bf16 %v1132_v34, %v22_v8  ;;  %v1123_v10 = vld [vmem:[%s1397_s1 + $0x1b8] sm:$0xff]   ;;  %v29_v21 = vmax.bf16 %v1132_v34, %v24_v20  ;;  %v1126_v22 = vld [vmem:[%s1397_s1 + $0x210] sm:$0xff]  }
  0x19   :  { %973 = vmatpush3.bf16.msra.mxu1 %v1083_v23  ;;  %952 = vmatprep.subr.bf16.mxu0 %v1084_v24  ;;  %v23_v11 = vld [vmem:[%s1398_s0 + $0x18] sm:$0xff]  ;;  %v1128_v24 = vld [vmem:[%s1397_s1 + $0x220] sm:$0xff]  }
  0x1a   :  { %974 = vmatprep.subr.bf16.mxu1 %v1085_v25  ;;  %v863_v12 = vcombine.high %v27_v9, %v27_v9  ;;  %v862_v13 = vcombine.low %v27_v9, %v27_v9  ;;  %v28_v14 = vmax.bf16 %v1132_v34, %v23_v11  ;;  %v1127_v23 = vld [vmem:[%s1397_s1 + $0x218] sm:$0xff]   ;;  %v1129_v25 = vld [vmem:[%s1397_s1 + $0x228] sm:$0xff]  }
  0x1c   :  { %953 = vmatpush3.bf16.msra.mxu0 %v1086_v26  ;;  %v865_v16 = vcombine.high %v28_v14, %v28_v14  ;;  %v864_v17 = vcombine.low %v28_v14, %v28_v14  ;;  %v1130_v26 = vld [vmem:[%s1397_s1 + $0x230] sm:$0xff]  }
  0x1d   :  { %975 = vmatpush3.bf16.msra.mxu1 %v1087_v27  ;;  %954 = vmatprep.subr.bf16.mxu0 %v1088_v28  ;;  %v1131_v27 = vld [vmem:[%s1397_s1 + $0x238] sm:$0xff]   ;;  %v866_v28 = vcombine.low %v29_v21, %v29_v21 }
  0x1e   :  { %976 = vmatprep.subr.bf16.mxu1 %v1089_v29 }
  0x20   :  { %955 = vmatpush3.bf16.msra.mxu0 %v1090_v30 }
  0x21   :  { %977 = vmatpush3.bf16.msra.mxu1 %v1091_v31  ;;  %984 = vmatprep.subr.bf16.mxu0 %v1092_v37 }
  0x22   :  { %1006 = vmatprep.subr.bf16.mxu1 %v1094_v43 }
  0x23   :  { %672 = vmatmul.mubr.bf16.vlgmr.msra.gmra.mrb[0].mxu0 %v858_v41 }
  0x24   :  { %712 = vmatmul.mubr.bf16.vlgmr.msra.gmra.mrb[0].mxu1 %v860_v42  ;;  %985 = vmatpush3.bf16.msra.mxu0 %v1093_v38 }
  0x25   :  { %1007 = vmatpush3.bf16.msra.mxu1 %v1095_v44  ;;  %986 = vmatprep.subr.bf16.mxu0 %v1096_v45 }
  0x26   :  { %1008 = vmatprep.subr.bf16.mxu1 %v1098_v47  ;;  %751 = vmatprep.mubr.bf16.mxu0 %v863_v12 }
  0x27   :  { %791 = vmatprep.mubr.bf16.mxu1 %v865_v16 }
  0x28   :  { %987 = vmatpush3.bf16.msra.mxu0 %v1097_v46 }
  0x29   :  { %1009 = vmatpush3.bf16.msra.mxu1 %v1099_v48  ;;  %988 = vmatprep.subr.bf16.mxu0 %v1100_v49 }
  0x2a   :  { %1010 = vmatprep.subr.bf16.mxu1 %v1102_v51 }
  0x2c   :  { %989 = vmatpush3.bf16.msra.mxu0 %v1101_v50 }
  0x2d   :  { %1011 = vmatpush3.bf16.msra.mxu1 %v1103_v52  ;;  %990 = vmatprep.subr.bf16.mxu0 %v1104_v53  ;;  %v939_v53 = vld [vmem:[%s1399_s2] ss:$0 sm:$0xff] }
  0x2e   :  { %1012 = vmatprep.subr.bf16.mxu1 %v1106_v55 }
  0x30   :  { %991 = vmatpush3.bf16.msra.mxu0 %v1105_v54 }
  0x31   :  { %1013 = vmatpush3.bf16.msra.mxu1 %v1107_v56  ;;  %992 = vmatprep.subr.bf16.mxu0 %v1108_v57 }
  0x32   :  { %1014 = vmatprep.subr.bf16.mxu1 %v1110_v59 }
  0x34   :  { %993 = vmatpush3.bf16.msra.mxu0 %v1109_v58 }
  0x35   :  { %1015 = vmatpush3.bf16.msra.mxu1 %v1111_v60  ;;  %994 = vmatprep.subr.bf16.mxu0 %v1112_v61 }
  0x36   :  { %1016 = vmatprep.subr.bf16.mxu1 %v1114_v63 }
  0x38   :  { %995 = vmatpush3.bf16.msra.mxu0 %v1113_v62 }
  0x39   :  { %1017 = vmatpush3.bf16.msra.mxu1 %v1115_v0  ;;  %996 = vmatprep.subr.bf16.mxu0 %v1116_v1 }
  0x3a   :  { %1018 = vmatprep.subr.bf16.mxu1 %v1118_v3 }
  0x3c   :  { %997 = vmatpush3.bf16.msra.mxu0 %v1117_v2 }
  0x3d   :  { %1019 = vmatpush3.bf16.msra.mxu1 %v1119_v4  ;;  %998 = vmatprep.subr.bf16.mxu0 %v1120_v5 }
  0x3e   :  { %1020 = vmatprep.subr.bf16.mxu1 %v1122_v7 }
  0x40   :  { %999 = vmatpush3.bf16.msra.mxu0 %v1121_v6 }
  0x41   :  { %1021 = vmatpush3.bf16.msra.mxu1 %v1123_v10  ;;  %1037 = vmatprep.subr.bf16.mxu0 %v1133_v18 }
  0x43   :  { %752 = vmatmul.mubr.bf16.vlgmr.msra.gmra.mrb[4].mxu0 %v862_v13 }
  0x44   :  { %1038 = vmatpush3.bf16.msra.mxu0 %v1124_v15  ;;  %792 = vmatmul.mubr.bf16.vlgmr.msra.gmra.mrb[4].mxu1 %v864_v17 }
  0x45   :  { %1039 = vmatprep.subr.bf16.mxu0 %v1133_v18  ;;  %1053 = vmatprep.mubr.msk.bf16.mxu0 %vm1134_vm0, %v1133_v18 }
  0x48   :  { %1040 = vmatpush3.bf16.msra.mxu0 %v1125_v19 }
  0x49   :  { %1041 = vmatprep.subr.bf16.mxu0 %v1133_v18 }
  0x4c   :  { %1042 = vmatpush3.bf16.msra.mxu0 %v1126_v22 }
  0x4d   :  { %1043 = vmatprep.subr.bf16.mxu0 %v1133_v18 }
  0x50   :  { %1044 = vmatpush3.bf16.msra.mxu0 %v1127_v23 }
  0x51   :  { %1045 = vmatprep.subr.bf16.mxu0 %v1133_v18 }
  0x54   :  { %1046 = vmatpush3.bf16.msra.mxu0 %v1128_v24 }
  0x55   :  { %1047 = vmatprep.subr.bf16.mxu0 %v1133_v18 }
  0x58   :  { %1048 = vmatpush3.bf16.msra.mxu0 %v1129_v25 }
  0x59   :  { %1049 = vmatprep.subr.bf16.mxu0 %v1133_v18 }
  0x5c   :  { %1050 = vmatpush3.bf16.msra.mxu0 %v1130_v26 }
  0x5d   :  { %1051 = vmatprep.subr.bf16.mxu0 %v1133_v18 }
  0x60   :  { %1052 = vmatpush3.bf16.msra.mxu0 %v1131_v27 }
  0x63   :  { %1054 = vmatmul.mubr.bf16.vlgmr.msra.gmra.mrb[8].mxu0 %v866_v28 }
  0xf6   :  { %v956_v29 = vpop.f32.mrb[0].mxu0 }
  0xf7   :  { %v978_v30 = vpop.f32.mrb[0].mxu1  ;;  %v957_v31 = vpop.f32.mrb[1].mxu0 }
  0xf8   :  { %v979_v32 = vpop.f32.mrb[1].mxu1  ;;  %v958_v33 = vadd.f32 %v957_v31, %v956_v29  ;;  %v959_v35 = vpop.f32.mrb[2].mxu0 }
  0xf9   :  { %v980_v34 = vadd.f32 %v979_v32, %v978_v30  ;;  %v981_v36 = vpop.f32.mrb[2].mxu1  ;;  %v960_v37 = vpop.f32.mrb[3].mxu0 }
  0xfa   :  { %v982_v38 = vpop.f32.mrb[3].mxu1 }
  0xfb   :  { %v714_v39 = vadd.f32 %v980_v34, %v958_v33 }
 0x116   :  { %v1000_v40 = vpop.f32.mrb[4].mxu0 }
 0x117   :  { %v1001_v41 = vpop.f32.mrb[5].mxu0  ;;  %v1022_v42 = vpop.f32.mrb[4].mxu1 }
 0x118   :  { %v1002_v43 = vadd.f32 %v1001_v41, %v1000_v40  ;;  %v1003_v44 = vpop.f32.mrb[6].mxu0  ;;  %v1023_v45 = vpop.f32.mrb[5].mxu1 }
 0x119   :  { %v1004_v46 = vpop.f32.mrb[7].mxu0  ;;  %v1024_v47 = vadd.f32 %v1023_v45, %v1022_v42  ;;  %v1025_v48 = vpop.f32.mrb[6].mxu1 }
 0x11a   :  { %v754_v49 = vadd.f32 %v1002_v43, %v714_v39  ;;  %v1026_v50 = vpop.f32.mrb[7].mxu1 }
 0x11c   :  { %v794_v51 = vadd.f32 %v1024_v47, %v754_v49 }
 0x136   :  { %v833_v52 = vpop.f32.mrb[8].mxu0 }
 0x137   :  { %v834_v54 = vadd.f32 %v833_v52, %v794_v51  ;;  %v1055_v55 = vpop.f32.mrb[9].mxu0 }
 0x138   :  { %v836_v56 = vpop.f32.mrb[10].mxu0 }
 0x139   :  { %v852_v57 = vadd.f32 %v939_v53, %v834_v54  ;;  %v1056_v58 = vpop.f32.mrb[11].mxu0 }
 0x13b   :  { %853 = vst [vmem:[%s1400_s3] sm:$0xff] %v852_v57 }

// kernel: forward.43
= control target key start
LH: loop header
LB: loop body
LE: loop exit
PB: predicated region body
PF: predicated region fallthrough
CT: control target
= control target key end

     0   :  { %v690_v35 = vmov 0   ;;  %v691_v40 = vmov 0.0   ;;  %vm692_vm0 = vmmov 0   ;;  %s860_s1 = inlined_call_operand.vmem [shape: bf16[640,128], index: 1, kind: input, shape index: {}]   ;;  %s861_s0 = inlined_call_operand.vmem [shape: bf16[16,640], index: 0, kind: input, shape index: {}]   ;;  %s862_s2 = inlined_call_operand.vmem [shape: f32[1,128], index: 2, kind: input, shape index: {}]   ;;  %s863_s3 = inlined_call_operand.vmem [shape: f32[16,128], index: 3, kind: output, shape index: {}]  }
   0x1   :  { %v650_v0 = vld [vmem:[%s860_s1 + $0x40] sm:$0xff]   ;;  %v654_v4 = vld [vmem:[%s860_s1 + $0x48] sm:$0xff]   ;;  %v658_v8 = vld [vmem:[%s860_s1 + $0x50] sm:$0xff]  }
   0x2   :  { %v651_v1 = vld [vmem:[%s860_s1 + $0xc0] sm:$0xff]   ;;  %574 = vmatprep.subr.bf16.mxu0 %v650_v0  ;;  %v655_v5 = vld [vmem:[%s860_s1 + $0xc8] sm:$0xff]   ;;  %v659_v9 = vld [vmem:[%s860_s1 + $0xd0] sm:$0xff]  }
   0x3   :  { %v652_v2 = vld [vmem:[%s860_s1] sm:$0xff]   ;;  %596 = vmatprep.subr.bf16.mxu1 %v651_v1  ;;  %v656_v6 = vld [vmem:[%s860_s1 + $0x8] sm:$0xff]   ;;  %v660_v10 = vld [vmem:[%s860_s1 + $0x10] sm:$0xff]  }
   0x4   :  { %v653_v3 = vld [vmem:[%s860_s1 + $0x80] sm:$0xff]   ;;  %575 = vmatpush3.bf16.msra.mxu0 %v652_v2  ;;  %v657_v7 = vld [vmem:[%s860_s1 + $0x88] sm:$0xff]   ;;  %v661_v11 = vld [vmem:[%s860_s1 + $0x90] sm:$0xff]  }
   0x5   :  { %597 = vmatpush3.bf16.msra.mxu1 %v653_v3  ;;  %576 = vmatprep.subr.bf16.mxu0 %v654_v4  ;;  %v662_v12 = vld [vmem:[%s860_s1 + $0x58] sm:$0xff]   ;;  %v666_v16 = vld [vmem:[%s860_s1 + $0x60] sm:$0xff]   ;;  %v670_v20 = vld [vmem:[%s860_s1 + $0x68] sm:$0xff]  }
   0x6   :  { %598 = vmatprep.subr.bf16.mxu1 %v655_v5  ;;  %v663_v13 = vld [vmem:[%s860_s1 + $0xd8] sm:$0xff]   ;;  %v667_v17 = vld [vmem:[%s860_s1 + $0xe0] sm:$0xff]   ;;  %v671_v21 = vld [vmem:[%s860_s1 + $0xe8] sm:$0xff]  }
   0x7   :  { %v664_v14 = vld [vmem:[%s860_s1 + $0x18] sm:$0xff]   ;;  %v668_v18 = vld [vmem:[%s860_s1 + $0x20] sm:$0xff]   ;;  %v672_v22 = vld [vmem:[%s860_s1 + $0x28] sm:$0xff]  }
   0x8   :  { %577 = vmatpush3.bf16.msra.mxu0 %v656_v6  ;;  %v665_v15 = vld [vmem:[%s860_s1 + $0x98] sm:$0xff]   ;;  %v669_v19 = vld [vmem:[%s860_s1 + $0xa0] sm:$0xff]   ;;  %v673_v23 = vld [vmem:[%s860_s1 + $0xa8] sm:$0xff]  }
   0x9   :  { %599 = vmatpush3.bf16.msra.mxu1 %v657_v7  ;;  %578 = vmatprep.subr.bf16.mxu0 %v658_v8  ;;  %v674_v24 = vld [vmem:[%s860_s1 + $0x70] sm:$0xff]   ;;  %v678_v28 = vld [vmem:[%s860_s1 + $0x78] sm:$0xff]   ;;  %v21_v32 = vld [vmem:[%s861_s0] sm:$0xff] }
   0xa   :  { %600 = vmatprep.subr.bf16.mxu1 %v659_v9  ;;  %v675_v25 = vld [vmem:[%s860_s1 + $0xf0] sm:$0xff]   ;;  %v679_v29 = vld [vmem:[%s860_s1 + $0xf8] sm:$0xff]   ;;  %v22_v34 = vld [vmem:[%s861_s0 + $0x8] sm:$0xff]  ;;  %v27_v36 = vmax.bf16 %v690_v35, %v21_v32 }
   0xb   :  { %v676_v26 = vld [vmem:[%s860_s1 + $0x30] sm:$0xff]   ;;  %v680_v30 = vld [vmem:[%s860_s1 + $0x38] sm:$0xff]   ;;  %v28_v39 = vmax.bf16 %v690_v35, %v22_v34  ;;  %v682_v44 = vld [vmem:[%s860_s1 + $0x100] sm:$0xff]  }
   0xc   :  { %579 = vmatpush3.bf16.msra.mxu0 %v660_v10  ;;  %v677_v27 = vld [vmem:[%s860_s1 + $0xb0] sm:$0xff]   ;;  %v681_v31 = vld [vmem:[%s860_s1 + $0xb8] sm:$0xff]   ;;  %v683_v47 = vld [vmem:[%s860_s1 + $0x108] sm:$0xff]  }
   0xd   :  { %601 = vmatpush3.bf16.msra.mxu1 %v661_v11  ;;  %580 = vmatprep.subr.bf16.mxu0 %v662_v12  ;;  %v24_v33 = vld [vmem:[%s861_s0 + $0x14] sm:$0xff]  ;;  %v25_v38 = vld [vmem:[%s861_s0 + $0x1c] sm:$0xff]  ;;  %v687_v51 = vld [vmem:[%s860_s1 + $0x128] sm:$0xff]  }
   0xe   :  { %602 = vmatprep.subr.bf16.mxu1 %v663_v13  ;;  %v30_v37 = vmax.bf16 %v690_v35, %v24_v33  ;;  %v31_v41 = vmax.bf16 %v690_v35, %v25_v38  ;;  %v684_v48 = vld [vmem:[%s860_s1 + $0x110] sm:$0xff]   ;;  %v685_v49 = vld [vmem:[%s860_s1 + $0x118] sm:$0xff]   ;;  %v686_v50 = vld [vmem:[%s860_s1 + $0x120] sm:$0xff]  }
   0xf   :  { %v688_v52 = vld [vmem:[%s860_s1 + $0x130] sm:$0xff]   ;;  %v26_v54 = vld [vmem:[%s861_s0 + $0x24] sm:$0xf]  ;;  %v689_v57 = vld [vmem:[%s860_s1 + $0x138] sm:$0xff]  }
  0x10   :  { %581 = vmatpush3.bf16.msra.mxu0 %v664_v14  ;;  %v529_v42 = vcombine.high %v27_v36, %v30_v37  ;;  %v528_v43 = vcombine.low %v27_v36, %v30_v37  ;;  %v531_v45 = vcombine.high %v28_v39, %v31_v41  ;;  %v530_v46 = vcombine.low %v28_v39, %v31_v41  ;;  %v23_v53 = vld [vmem:[%s861_s0 + $0x10] sm:$0xf]  ;;  %v573_v10 = vld [vmem:[%s862_s2] ss:$0 sm:$0xff] }
  0x11   :  { %603 = vmatpush3.bf16.msra.mxu1 %v665_v15  ;;  %582 = vmatprep.subr.bf16.mxu0 %v666_v16  ;;  %v29_v55 = vmax.bf16 %v690_v35, %v23_v53  ;;  %v32_v56 = vmax.bf16 %v690_v35, %v26_v54 }
  0x12   :  { %604 = vmatprep.subr.bf16.mxu1 %v667_v17  ;;  %413 = vmatprep.mubr.bf16.mxu0 %v529_v42 }
  0x13   :  { %454 = vmatprep.mubr.bf16.mxu1 %v531_v45  ;;  %v532_v58 = vcombine.low %v29_v55, %v32_v56 }
  0x14   :  { %583 = vmatpush3.bf16.msra.mxu0 %v668_v18 }
  0x15   :  { %605 = vmatpush3.bf16.msra.mxu1 %v669_v19  ;;  %584 = vmatprep.subr.bf16.mxu0 %v670_v20 }
  0x16   :  { %606 = vmatprep.subr.bf16.mxu1 %v671_v21 }
  0x18   :  { %585 = vmatpush3.bf16.msra.mxu0 %v672_v22 }
  0x19   :  { %607 = vmatpush3.bf16.msra.mxu1 %v673_v23  ;;  %586 = vmatprep.subr.bf16.mxu0 %v674_v24 }
  0x1a   :  { %608 = vmatprep.subr.bf16.mxu1 %v675_v25 }
  0x1c   :  { %587 = vmatpush3.bf16.msra.mxu0 %v676_v26 }
  0x1d   :  { %609 = vmatpush3.bf16.msra.mxu1 %v677_v27  ;;  %588 = vmatprep.subr.bf16.mxu0 %v678_v28 }
  0x1e   :  { %610 = vmatprep.subr.bf16.mxu1 %v679_v29 }
  0x20   :  { %589 = vmatpush3.bf16.msra.mxu0 %v680_v30 }
  0x21   :  { %611 = vmatpush3.bf16.msra.mxu1 %v681_v31  ;;  %627 = vmatprep.subr.bf16.mxu0 %v691_v40 }
  0x23   :  { %414 = vmatmul.mubr.bf16.vlgmr.msra.gmra.mrb[0].mxu0 %v528_v43 }
  0x24   :  { %455 = vmatmul.mubr.bf16.vlgmr.msra.gmra.mrb[0].mxu1 %v530_v46  ;;  %628 = vmatpush3.bf16.msra.mxu0 %v682_v44 }
  0x25   :  { %629 = vmatprep.subr.bf16.mxu0 %v691_v40  ;;  %643 = vmatprep.mubr.msk.bf16.mxu0 %vm692_vm0, %v691_v40 }
  0x28   :  { %630 = vmatpush3.bf16.msra.mxu0 %v683_v47 }
  0x29   :  { %631 = vmatprep.subr.bf16.mxu0 %v691_v40 }
  0x2c   :  { %632 = vmatpush3.bf16.msra.mxu0 %v684_v48 }
  0x2d   :  { %633 = vmatprep.subr.bf16.mxu0 %v691_v40 }
  0x30   :  { %634 = vmatpush3.bf16.msra.mxu0 %v685_v49 }
  0x31   :  { %635 = vmatprep.subr.bf16.mxu0 %v691_v40 }
  0x34   :  { %636 = vmatpush3.bf16.msra.mxu0 %v686_v50 }
  0x35   :  { %637 = vmatprep.subr.bf16.mxu0 %v691_v40 }
  0x38   :  { %638 = vmatpush3.bf16.msra.mxu0 %v687_v51 }
  0x39   :  { %639 = vmatprep.subr.bf16.mxu0 %v691_v40 }
  0x3c   :  { %640 = vmatpush3.bf16.msra.mxu0 %v688_v52 }
  0x3d   :  { %641 = vmatprep.subr.bf16.mxu0 %v691_v40 }
  0x40   :  { %642 = vmatpush3.bf16.msra.mxu0 %v689_v57 }
  0x43   :  { %644 = vmatmul.mubr.bf16.vlgmr.msra.gmra.mrb[4].mxu0 %v532_v58 }
  0xf6   :  { %v590_v59 = vpop.f32.mrb[0].mxu0 }
  0xf7   :  { %v612_v60 = vpop.f32.mrb[0].mxu1  ;;  %v591_v61 = vpop.f32.mrb[1].mxu0 }
  0xf8   :  { %v592_v62 = vadd.f32 %v591_v61, %v590_v59  ;;  %v613_v63 = vpop.f32.mrb[1].mxu1  ;;  %v593_v0 = vpop.f32.mrb[2].mxu0 }
  0xf9   :  { %v614_v1 = vadd.f32 %v613_v63, %v612_v60  ;;  %v615_v2 = vpop.f32.mrb[2].mxu1  ;;  %v594_v3 = vpop.f32.mrb[3].mxu0 }
  0xfa   :  { %v595_v4 = vadd.f32 %v594_v3, %v593_v0  ;;  %v616_v5 = vpop.f32.mrb[3].mxu1 }
  0xfb   :  { %v617_v6 = vadd.f32 %v616_v5, %v615_v2  ;;  %v457_v7 = vadd.f32 %v614_v1, %v592_v62 }
  0xfd   :  { %v460_v8 = vadd.f32 %v617_v6, %v595_v4 }
 0x116   :  { %v497_v9 = vpop.f32.mrb[4].mxu0 }
 0x117   :  { %v498_v11 = vadd.f32 %v497_v9, %v457_v7  ;;  %v645_v12 = vpop.f32.mrb[5].mxu0 }
 0x118   :  { %v500_v13 = vpop.f32.mrb[6].mxu0 }
 0x119   :  { %v520_v14 = vadd.f32 %v573_v10, %v498_v11  ;;  %v501_v15 = vadd.f32 %v500_v13, %v460_v8  ;;  %v646_v16 = vpop.f32.mrb[7].mxu0 }
 0x11b   :  { %522 = vst [vmem:[%s863_s3] sm:$0xff] %v520_v14  ;;  %v521_v17 = vadd.f32 %v573_v10, %v501_v15 }
 0x11d   :  { %523 = vst [vmem:[%s863_s3 + $0x8] sm:$0xff] %v521_v17 }

// kernel: forward.46
= control target key start
LH: loop header
LB: loop body
LE: loop exit
PB: predicated region body
PF: predicated region fallthrough
CT: control target
= control target key end

     0   :  { %v645_v25 = vmov 0   ;;  %s813_s1 = inlined_call_operand.vmem [shape: bf16[384,128], index: 1, kind: input, shape index: {}]   ;;  %s814_s0 = inlined_call_operand.vmem [shape: bf16[64,384], index: 0, kind: input, shape index: {}]   ;;  %s815_s2 = inlined_call_operand.vmem [shape: f32[1,128], index: 2, kind: input, shape index: {}]   ;;  %s816_s3 = inlined_call_operand.vmem [shape: f32[64,128], index: 3, kind: output, shape index: {}]  }
   0x1   :  { %v621_v0 = vld [vmem:[%s813_s1 + $0x40] sm:$0xff]   ;;  %v624_v3 = vld [vmem:[%s813_s1 + $0x48] sm:$0xff]   ;;  %v627_v6 = vld [vmem:[%s813_s1 + $0x50] sm:$0xff]  }
   0x2   :  { %v622_v1 = vld [vmem:[%s813_s1] sm:$0xff]   ;;  %544 = vmatprep.subr.bf16.mxu0 %v621_v0  ;;  %v625_v4 = vld [vmem:[%s813_s1 + $0x8] sm:$0xff]   ;;  %v628_v7 = vld [vmem:[%s813_s1 + $0x10] sm:$0xff]  }
   0x3   :  { %v623_v2 = vld [vmem:[%s813_s1 + $0x80] sm:$0xff]   ;;  %545 = vmatpush3.bf16.msra.mxu0 %v622_v1  ;;  %v626_v5 = vld [vmem:[%s813_s1 + $0x88] sm:$0xff]   ;;  %v629_v8 = vld [vmem:[%s813_s1 + $0x90] sm:$0xff]  }
   0x4   :  { %596 = vmatprep.subr.bf16.mxu1 %v623_v2  ;;  %546 = vmatprep.subr.bf16.mxu0 %v624_v3  ;;  %v630_v9 = vld [vmem:[%s813_s1 + $0x58] sm:$0xff]   ;;  %v633_v12 = vld [vmem:[%s813_s1 + $0x60] sm:$0xff]   ;;  %v636_v15 = vld [vmem:[%s813_s1 + $0x68] sm:$0xff]  }
   0x5   :  { %597 = vmatpush3.bf16.msra.mxu1 %v623_v2  ;;  %v631_v10 = vld [vmem:[%s813_s1 + $0x18] sm:$0xff]   ;;  %v635_v13 = vld [vmem:[%s813_s1 + $0xa0] sm:$0xff]   ;;  %v638_v16 = vld [vmem:[%s813_s1 + $0xa8] sm:$0xff]  }
   0x6   :  { %598 = vmatprep.subr.bf16.mxu1 %v626_v5  ;;  %v632_v11 = vld [vmem:[%s813_s1 + $0x98] sm:$0xff]   ;;  %v634_v14 = vld [vmem:[%s813_s1 + $0x20] sm:$0xff]   ;;  %v637_v17 = vld [vmem:[%s813_s1 + $0x28] sm:$0xff]  }
   0x7   :  { %547 = vmatpush3.bf16.msra.mxu0 %v625_v4  ;;  %v639_v18 = vld [vmem:[%s813_s1 + $0x70] sm:$0xff]   ;;  %v642_v21 = vld [vmem:[%s813_s1 + $0x78] sm:$0xff]   ;;  %v27_v22 = vld [vmem:[%s814_s0] sm:$0xff] }
   0x8   :  { %548 = vmatprep.subr.bf16.mxu0 %v627_v6  ;;  %v640_v19 = vld [vmem:[%s813_s1 + $0x30] sm:$0xff]   ;;  %v28_v24 = vld [vmem:[%s814_s0 + $0x8] sm:$0xf]  ;;  %v43_v26 = vmax.bf16 %v645_v25, %v27_v22  ;;  %v32_v30 = vld [vmem:[%s814_s0 + $0x20] sm:$0xf] }
   0x9   :  { %599 = vmatpush3.bf16.msra.mxu1 %v626_v5  ;;  %v641_v20 = vld [vmem:[%s813_s1 + $0xb0] sm:$0xff]   ;;  %v44_v29 = vmax.bf16 %v645_v25, %v28_v24  ;;  %v34_v31 = vld [vmem:[%s814_s0 + $0x2c] sm:$0xf]  ;;  %v644_v32 = vld [vmem:[%s813_s1 + $0xb8] sm:$0xff]   ;;  %v48_v43 = vmax.bf16 %v645_v25, %v32_v30 }
   0xa   :  { %600 = vmatprep.subr.bf16.mxu1 %v629_v8  ;;  %v29_v23 = vld [vmem:[%s814_s0 + $0xc] sm:$0xff]  ;;  %v30_v28 = vld [vmem:[%s814_s0 + $0x14] sm:$0xf]  ;;  %v31_v34 = vld [vmem:[%s814_s0 + $0x18] sm:$0xff]  ;;  %v50_v44 = vmax.bf16 %v645_v25, %v34_v31 }
   0xb   :  { %549 = vmatpush3.bf16.msra.mxu0 %v628_v7  ;;  %v45_v27 = vmax.bf16 %v645_v25, %v29_v23  ;;  %v46_v33 = vmax.bf16 %v645_v25, %v30_v28  ;;  %v33_v35 = vld [vmem:[%s814_s0 + $0x24] sm:$0xff]  ;;  %v643_v36 = vld [vmem:[%s813_s1 + $0x38] sm:$0xff]   ;;  %v47_v38 = vmax.bf16 %v645_v25, %v31_v34  ;;  %v35_v50 = vld [vmem:[%s814_s0 + $0x30] sm:$0xff] }
   0xc   :  { %550 = vmatprep.subr.bf16.mxu0 %v630_v9  ;;  %v49_v39 = vmax.bf16 %v645_v25, %v33_v35  ;;  %v36_v40 = vld [vmem:[%s814_s0 + $0x38] sm:$0xf]  ;;  %v38_v41 = vld [vmem:[%s814_s0 + $0x44] sm:$0xf]  ;;  %v512_v49 = vcombine.low %v48_v43, %v50_v44  ;;  %v37_v51 = vld [vmem:[%s814_s0 + $0x3c] sm:$0xff]  ;;  %v51_v55 = vmax.bf16 %v645_v25, %v35_v50 }
   0xd   :  { %601 = vmatpush3.bf16.msra.mxu1 %v629_v8  ;;  %v508_v37 = vcombine.high %v43_v26, %v45_v27  ;;  %v509_v42 = vcombine.low %v44_v29, %v46_v33  ;;  %v52_v45 = vmax.bf16 %v645_v25, %v36_v40  ;;  %v507_v46 = vcombine.low %v43_v26, %v45_v27  ;;  %v40_v53 = vld [vmem:[%s814_s0 + $0x50] sm:$0xf]  ;;  %v42_v54 = vld [vmem:[%s814_s0 + $0x5c] sm:$0xf]  ;;  %v39_v62 = vld [vmem:[%s814_s0 + $0x48] sm:$0xff] }
   0xe   :  { %602 = vmatprep.subr.bf16.mxu1 %v632_v11  ;;  %v54_v47 = vmax.bf16 %v645_v25, %v38_v41  ;;  %v511_v48 = vcombine.high %v47_v38, %v49_v39  ;;  %v53_v56 = vmax.bf16 %v645_v25, %v37_v51  ;;  %v56_v57 = vmax.bf16 %v645_v25, %v40_v53  ;;  %v41_v63 = vld [vmem:[%s814_s0 + $0x54] sm:$0xff] }
   0xf   :  { %551 = vmatpush3.bf16.msra.mxu0 %v631_v10  ;;  %355 = vmatprep.mubr.bf16.mxu0 %v508_v37  ;;  %v58_v58 = vmax.bf16 %v645_v25, %v42_v54  ;;  %v510_v59 = vcombine.low %v47_v38, %v49_v39  ;;  %v55_v0 = vmax.bf16 %v645_v25, %v39_v62 }
  0x10   :  { %552 = vmatprep.subr.bf16.mxu0 %v633_v12  ;;  %612 = vmatprep.mubr.bf16.mxu1 %v509_v42  ;;  %v515_v52 = vcombine.low %v52_v45, %v54_v47  ;;  %v514_v60 = vcombine.high %v51_v55, %v53_v56  ;;  %v57_v1 = vmax.bf16 %v645_v25, %v41_v63  ;;  %v543_v12 = vld [vmem:[%s815_s2] ss:$0 sm:$0xff] }
  0x11   :  { %603 = vmatpush3.bf16.msra.mxu1 %v632_v11  ;;  %v518_v61 = vcombine.low %v56_v57, %v58_v58  ;;  %v513_v2 = vcombine.low %v51_v55, %v53_v56 }
  0x12   :  { %604 = vmatprep.subr.bf16.mxu1 %v635_v13  ;;  %v517_v3 = vcombine.high %v55_v0, %v57_v1  ;;  %v516_v4 = vcombine.low %v55_v0, %v57_v1 }
  0x13   :  { %553 = vmatpush3.bf16.msra.mxu0 %v634_v14 }
  0x14   :  { %554 = vmatprep.subr.bf16.mxu0 %v636_v15 }
  0x15   :  { %605 = vmatpush3.bf16.msra.mxu1 %v635_v13 }
  0x16   :  { %606 = vmatprep.subr.bf16.mxu1 %v638_v16 }
  0x17   :  { %555 = vmatpush3.bf16.msra.mxu0 %v637_v17 }
  0x18   :  { %556 = vmatprep.subr.bf16.mxu0 %v639_v18 }
  0x19   :  { %607 = vmatpush3.bf16.msra.mxu1 %v638_v16 }
  0x1a   :  { %608 = vmatprep.subr.bf16.mxu1 %v641_v20 }
  0x1b   :  { %557 = vmatpush3.bf16.msra.mxu0 %v640_v19 }
  0x1c   :  { %558 = vmatprep.subr.bf16.mxu0 %v642_v21 }
  0x1d   :  { %609 = vmatpush3.bf16.msra.mxu1 %v641_v20 }
  0x1e   :  { %610 = vmatprep.subr.bf16.mxu1 %v644_v32 }
  0x1f   :  { %559 = vmatpush3.bf16.msra.mxu0 %v643_v36 }
  0x21   :  { %611 = vmatpush3.bf16.msra.mxu1 %v644_v32 }
  0x22   :  { %356 = vmatmul.mubr.bf16.vlgmr.msra.gmra.mrb[0].mxu0 %v507_v46 }
  0x23   :  { %363 = vmatprep.mubr.bf16.mxu0 %v511_v48 }
  0x24   :  { %613 = vmatmul.mubr.bf16.vlgmr.msra.gmra.mrb[0].mxu1 %v512_v49 }
  0x25   :  { %616 = vmatprep.mubr.bf16.mxu1 %v515_v52 }
  0x2a   :  { %364 = vmatmul.mubr.bf16.gmra.mrb[4].mxu0 %v510_v59 }
  0x2b   :  { %371 = vmatprep.mubr.bf16.mxu0 %v514_v60 }
  0x2c   :  { %617 = vmatmul.mubr.bf16.gmra.mrb[4].mxu1 %v518_v61 }
  0x32   :  { %372 = vmatmul.mubr.bf16.gmra.mrb[8].mxu0 %v513_v2 }
  0x33   :  { %379 = vmatprep.mubr.bf16.mxu0 %v517_v3 }
  0x3a   :  { %380 = vmatmul.mubr.bf16.gmra.mrb[12].mxu0 %v516_v4 }
  0xf5   :  { %v560_v5 = vpop.f32.mrb[0].mxu0 }
  0xf6   :  { %v561_v6 = vpop.f32.mrb[1].mxu0 }
  0xf7   :  { %v562_v7 = vadd.f32 %v561_v6, %v560_v5  ;;  %v563_v8 = vpop.f32.mrb[2].mxu0  ;;  %v614_v9 = vpop.f32.mrb[0].mxu1 }
  0xf8   :  { %v564_v10 = vpop.f32.mrb[3].mxu0  ;;  %v422_v11 = vpop.f32.mrb[1].mxu1 }
  0xf9   :  { %v565_v13 = vadd.f32 %v564_v10, %v563_v8  ;;  %v423_v14 = vadd.f32 %v562_v7, %v422_v11  ;;  %v615_v15 = vpop.f32.mrb[2].mxu1 }
  0xfa   :  { %v425_v16 = vpop.f32.mrb[3].mxu1 }
  0xfb   :  { %v487_v17 = vadd.f32 %v543_v12, %v423_v14  ;;  %v426_v18 = vadd.f32 %v565_v13, %v425_v16 }
  0xfd   :  { %495 = vst [vmem:[%s816_s3] sm:$0xff] %v487_v17  ;;  %v488_v19 = vadd.f32 %v543_v12, %v426_v18  ;;  %v566_v20 = vpop.f32.mrb[4].mxu0 }
  0xfe   :  { %v567_v21 = vpop.f32.mrb[5].mxu0 }
  0xff   :  { %496 = vst [vmem:[%s816_s3 + $0x8] sm:$0xff] %v488_v19  ;;  %v568_v22 = vadd.f32 %v567_v21, %v566_v20  ;;  %v569_v23 = vpop.f32.mrb[6].mxu0  ;;  %v618_v24 = vpop.f32.mrb[4].mxu1 }
 0x100   :  { %v570_v25 = vpop.f32.mrb[7].mxu0  ;;  %v438_v26 = vpop.f32.mrb[5].mxu1 }
 0x101   :  { %v431_v27 = vadd.f32 %v614_v9, %v568_v22  ;;  %v571_v28 = vadd.f32 %v570_v25, %v569_v23  ;;  %v619_v29 = vpop.f32.mrb[6].mxu1 }
 0x102   :  { %v441_v30 = vpop.f32.mrb[7].mxu1 }
 0x103   :  { %v489_v31 = vadd.f32 %v543_v12, %v431_v27  ;;  %v434_v32 = vadd.f32 %v615_v15, %v571_v28 }
 0x105   :  { %497 = vst [vmem:[%s816_s3 + $0x10] sm:$0xff] %v489_v31  ;;  %v490_v33 = vadd.f32 %v543_v12, %v434_v32  ;;  %v572_v34 = vpop.f32.mrb[8].mxu0 }
 0x106   :  { %v573_v35 = vpop.f32.mrb[9].mxu0 }
 0x107   :  { %498 = vst [vmem:[%s816_s3 + $0x18] sm:$0xff] %v490_v33  ;;  %v574_v36 = vadd.f32 %v573_v35, %v572_v34  ;;  %v575_v37 = vpop.f32.mrb[10].mxu0 }
 0x108   :  { %v576_v38 = vpop.f32.mrb[11].mxu0 }
 0x109   :  { %v577_v39 = vadd.f32 %v576_v38, %v575_v37  ;;  %v439_v40 = vadd.f32 %v574_v36, %v438_v26 }
 0x10b   :  { %v491_v41 = vadd.f32 %v543_v12, %v439_v40  ;;  %v442_v42 = vadd.f32 %v577_v39, %v441_v30 }
 0x10d   :  { %499 = vst [vmem:[%s816_s3 + $0x20] sm:$0xff] %v491_v41  ;;  %v492_v43 = vadd.f32 %v543_v12, %v442_v42  ;;  %v578_v44 = vpop.f32.mrb[12].mxu0 }
 0x10e   :  { %v579_v45 = vpop.f32.mrb[13].mxu0 }
 0x10f   :  { %500 = vst [vmem:[%s816_s3 + $0x28] sm:$0xff] %v492_v43  ;;  %v580_v46 = vadd.f32 %v579_v45, %v578_v44  ;;  %v581_v47 = vpop.f32.mrb[14].mxu0 }
 0x110   :  { %v582_v48 = vpop.f32.mrb[15].mxu0 }
 0x111   :  { %v447_v49 = vadd.f32 %v618_v24, %v580_v46  ;;  %v583_v50 = vadd.f32 %v582_v48, %v581_v47 }
 0x113   :  { %v493_v51 = vadd.f32 %v543_v12, %v447_v49  ;;  %v450_v52 = vadd.f32 %v619_v29, %v583_v50 }
 0x115   :  { %501 = vst [vmem:[%s816_s3 + $0x30] sm:$0xff] %v493_v51  ;;  %v494_v53 = vadd.f32 %v543_v12, %v450_v52 }
 0x117   :  { %502 = vst [vmem:[%s816_s3 + $0x38] sm:$0xff] %v494_v53 }

// kernel: forward.47
= control target key start
LH: loop header
LB: loop body
LE: loop exit
PB: predicated region body
PF: predicated region fallthrough
CT: control target
= control target key end

     0   :  { %v186_v0 = vmov 0.0   ;;  %s304_s0 = inlined_call_operand.vmem [shape: f32[256,128], index: 0, kind: input, shape index: {}]   ;;  %s305_s1 = inlined_call_operand.vmem [shape: f32[1,128], index: 1, kind: output, shape index: {0}]   ;;  %s306_s2 = inlined_call_operand.vmem [shape: f32[1,128], index: 2, kind: output, shape index: {1}]  }
   0x1   :  { %14 = vst [vmem:[#allocation2] sm:$0x1] %v186_v0  ;;  %15 = vst [vmem:[#allocation3] sm:$0x1] %v186_v0  ;;  %v16_v1 = vld [vmem:[%s304_s0] sm:$0xff]  ;;  %v17_v2 = vld [vmem:[%s304_s0 + $0x8] sm:$0xff] }
   0x2   :  { %v18_v3 = vld [vmem:[%s304_s0 + $0x10] sm:$0xff]  ;;  %v19_v4 = vld [vmem:[%s304_s0 + $0x18] sm:$0xff]  ;;  %v49_v5 = vadd.f32 %v17_v2, %v16_v1  ;;  %v89_v6 = vmul.f32 %v16_v1, %v16_v1  ;;  %v90_v7 = vmul.f32 %v17_v2, %v17_v2  ;;  %v20_v9 = vld [vmem:[%s304_s0 + $0x20] sm:$0xff] }
   0x3   :  { %v91_v8 = vmul.f32 %v18_v3, %v18_v3  ;;  %v92_v11 = vmul.f32 %v19_v4, %v19_v4  ;;  %v21_v13 = vld [vmem:[%s304_s0 + $0x28] sm:$0xff]  ;;  %v93_v15 = vmul.f32 %v20_v9, %v20_v9  ;;  %v22_v17 = vld [vmem:[%s304_s0 + $0x30] sm:$0xff]  ;;  %v23_v21 = vld [vmem:[%s304_s0 + $0x38] sm:$0xff] }
   0x4   :  { %v50_v10 = vadd.f32 %v49_v5, %v18_v3  ;;  %v121_v12 = vadd.f32 %v90_v7, %v89_v6  ;;  %v94_v19 = vmul.f32 %v21_v13, %v21_v13  ;;  %v95_v23 = vmul.f32 %v22_v17, %v22_v17  ;;  %v24_v25 = vld [vmem:[%s304_s0 + $0x40] sm:$0xff]  ;;  %v25_v29 = vld [vmem:[%s304_s0 + $0x48] sm:$0xff]  ;;  %v26_v33 = vld [vmem:[%s304_s0 + $0x50] sm:$0xff] }
   0x5   :  { %v96_v27 = vmul.f32 %v23_v21, %v23_v21  ;;  %v97_v31 = vmul.f32 %v24_v25, %v24_v25  ;;  %v98_v35 = vmul.f32 %v25_v29, %v25_v29  ;;  %v27_v37 = vld [vmem:[%s304_s0 + $0x58] sm:$0xff]  ;;  %v99_v39 = vmul.f32 %v26_v33, %v26_v33  ;;  %v28_v41 = vld [vmem:[%s304_s0 + $0x60] sm:$0xff]  ;;  %v29_v45 = vld [vmem:[%s304_s0 + $0x68] sm:$0xff] }
   0x6   :  { %v51_v14 = vadd.f32 %v50_v10, %v19_v4  ;;  %v122_v16 = vadd.f32 %v121_v12, %v91_v8  ;;  %v100_v43 = vmul.f32 %v27_v37, %v27_v37  ;;  %v101_v47 = vmul.f32 %v28_v41, %v28_v41  ;;  %v30_v49 = vld [vmem:[%s304_s0 + $0x70] sm:$0xff]  ;;  %v31_v53 = vld [vmem:[%s304_s0 + $0x78] sm:$0xff]  ;;  %v32_v57 = vld [vmem:[%s304_s0 + $0x80] sm:$0xff] }
   0x7   :  { %v102_v51 = vmul.f32 %v29_v45, %v29_v45  ;;  %v103_v55 = vmul.f32 %v30_v49, %v30_v49  ;;  %v104_v59 = vmul.f32 %v31_v53, %v31_v53  ;;  %v33_v61 = vld [vmem:[%s304_s0 + $0x88] sm:$0xff]  ;;  %v105_v63 = vmul.f32 %v32_v57, %v32_v57  ;;  %v34_v1 = vld [vmem:[%s304_s0 + $0x90] sm:$0xff]  ;;  %v35_v5 = vld [vmem:[%s304_s0 + $0x98] sm:$0xff] }
   0x8   :  { %v52_v18 = vadd.f32 %v51_v14, %v20_v9  ;;  %v123_v20 = vadd.f32 %v122_v16, %v92_v11  ;;  %v106_v3 = vmul.f32 %v33_v61, %v33_v61  ;;  %v107_v7 = vmul.f32 %v34_v1, %v34_v1  ;;  %v36_v9 = vld [vmem:[%s304_s0 + $0xa0] sm:$0xff] }
   0x9   :  { %v108_v11 = vmul.f32 %v35_v5, %v35_v5 }
   0xa   :  { %v53_v22 = vadd.f32 %v52_v18, %v21_v13  ;;  %v124_v24 = vadd.f32 %v123_v20, %v93_v15  ;;  %v37_v13 = vld [vmem:[%s304_s0 + $0xa8] sm:$0xff]  ;;  %v109_v15 = vmul.f32 %v36_v9, %v36_v9 }
   0xc   :  { %v54_v26 = vadd.f32 %v53_v22, %v22_v17  ;;  %v125_v28 = vadd.f32 %v124_v24, %v94_v19  ;;  %v38_v17 = vld [vmem:[%s304_s0 + $0xb0] sm:$0xff]  ;;  %v110_v19 = vmul.f32 %v37_v13, %v37_v13 }
   0xe   :  { %v55_v30 = vadd.f32 %v54_v26, %v23_v21  ;;  %v126_v32 = vadd.f32 %v125_v28, %v95_v23  ;;  %v39_v21 = vld [vmem:[%s304_s0 + $0xb8] sm:$0xff]  ;;  %v111_v23 = vmul.f32 %v38_v17, %v38_v17 }
  0x10   :  { %v56_v34 = vadd.f32 %v55_v30, %v24_v25  ;;  %v127_v36 = vadd.f32 %v126_v32, %v96_v27  ;;  %v40_v25 = vld [vmem:[%s304_s0 + $0xc0] sm:$0xff]  ;;  %v112_v27 = vmul.f32 %v39_v21, %v39_v21 }
  0x12   :  { %v57_v38 = vadd.f32 %v56_v34, %v25_v29  ;;  %v128_v40 = vadd.f32 %v127_v36, %v97_v31  ;;  %v41_v29 = vld [vmem:[%s304_s0 + $0xc8] sm:$0xff]  ;;  %v113_v31 = vmul.f32 %v40_v25, %v40_v25 }
  0x14   :  { %v58_v42 = vadd.f32 %v57_v38, %v26_v33  ;;  %v129_v44 = vadd.f32 %v128_v40, %v98_v35  ;;  %v42_v33 = vld [vmem:[%s304_s0 + $0xd0] sm:$0xff]  ;;  %v114_v35 = vmul.f32 %v41_v29, %v41_v29 }
  0x16   :  { %v59_v46 = vadd.f32 %v58_v42, %v27_v37  ;;  %v130_v48 = vadd.f32 %v129_v44, %v99_v39  ;;  %v43_v37 = vld [vmem:[%s304_s0 + $0xd8] sm:$0xff]  ;;  %v115_v39 = vmul.f32 %v42_v33, %v42_v33 }
  0x18   :  { %v60_v50 = vadd.f32 %v59_v46, %v28_v41  ;;  %v131_v52 = vadd.f32 %v130_v48, %v100_v43  ;;  %v44_v41 = vld [vmem:[%s304_s0 + $0xe0] sm:$0xff]  ;;  %v116_v43 = vmul.f32 %v43_v37, %v43_v37 }
  0x1a   :  { %v61_v54 = vadd.f32 %v60_v50, %v29_v45  ;;  %v132_v56 = vadd.f32 %v131_v52, %v101_v47  ;;  %v45_v45 = vld [vmem:[%s304_s0 + $0xe8] sm:$0xff]  ;;  %v117_v47 = vmul.f32 %v44_v41, %v44_v41 }
  0x1c   :  { %v62_v58 = vadd.f32 %v61_v54, %v30_v49  ;;  %v133_v60 = vadd.f32 %v132_v56, %v102_v51  ;;  %v46_v49 = vld [vmem:[%s304_s0 + $0xf0] sm:$0xff]  ;;  %v118_v51 = vmul.f32 %v45_v45, %v45_v45 }
  0x1e   :  { %v63_v62 = vadd.f32 %v62_v58, %v31_v53  ;;  %v134_v0 = vadd.f32 %v133_v60, %v103_v55  ;;  %v47_v53 = vld [vmem:[%s304_s0 + $0xf8] sm:$0xff]  ;;  %v119_v55 = vmul.f32 %v46_v49, %v46_v49 }
  0x1f   :  { %v120_v58 = vmul.f32 %v47_v53, %v47_v53 }
  0x20   :  { %v64_v2 = vadd.f32 %v63_v62, %v32_v57  ;;  %v135_v4 = vadd.f32 %v134_v0, %v104_v59 }
  0x22   :  { %v65_v6 = vadd.f32 %v64_v2, %v33_v61  ;;  %v136_v8 = vadd.f32 %v135_v4, %v105_v63 }
  0x24   :  { %v66_v10 = vadd.f32 %v65_v6, %v34_v1  ;;  %v137_v12 = vadd.f32 %v136_v8, %v106_v3 }
  0x26   :  { %v67_v14 = vadd.f32 %v66_v10, %v35_v5  ;;  %v138_v16 = vadd.f32 %v137_v12, %v107_v7  ;;  %v48_v7 = vld [vmem:[#allocation2] sm:$0x1]  ;;  %v88_v12 = vld [vmem:[#allocation3] sm:$0x1] }
  0x28   :  { %v68_v18 = vadd.f32 %v67_v14, %v36_v9  ;;  %v139_v20 = vadd.f32 %v138_v16, %v108_v11 }
  0x2a   :  { %v69_v22 = vadd.f32 %v68_v18, %v37_v13  ;;  %v140_v24 = vadd.f32 %v139_v20, %v109_v15 }
  0x2c   :  { %v70_v26 = vadd.f32 %v69_v22, %v38_v17  ;;  %v141_v28 = vadd.f32 %v140_v24, %v110_v19 }
  0x2e   :  { %v71_v30 = vadd.f32 %v70_v26, %v39_v21  ;;  %v142_v32 = vadd.f32 %v141_v28, %v111_v23 }
  0x30   :  { %v72_v34 = vadd.f32 %v71_v30, %v40_v25  ;;  %v143_v36 = vadd.f32 %v142_v32, %v112_v27 }
  0x32   :  { %v73_v38 = vadd.f32 %v72_v34, %v41_v29  ;;  %v144_v40 = vadd.f32 %v143_v36, %v113_v31 }
  0x34   :  { %v74_v42 = vadd.f32 %v73_v38, %v42_v33  ;;  %v145_v44 = vadd.f32 %v144_v40, %v114_v35 }
  0x36   :  { %v75_v46 = vadd.f32 %v74_v42, %v43_v37  ;;  %v146_v48 = vadd.f32 %v145_v44, %v115_v39 }
  0x38   :  { %v76_v50 = vadd.f32 %v75_v46, %v44_v41  ;;  %v147_v52 = vadd.f32 %v146_v48, %v116_v43 }
  0x3a   :  { %v77_v54 = vadd.f32 %v76_v50, %v45_v45  ;;  %v148_v56 = vadd.f32 %v147_v52, %v117_v47 }
  0x3c   :  { %v78_v57 = vadd.f32 %v77_v54, %v46_v49  ;;  %v149_v59 = vadd.f32 %v148_v56, %v118_v51 }
  0x3e   :  { %v79_v60 = vadd.f32 %v78_v57, %v47_v53  ;;  %v150_v61 = vadd.f32 %v149_v59, %v119_v55 }
  0x40   :  { %v80_v62 = vrot.slane %v79_v60, 4  ;;  %v151_v63 = vadd.f32 %v150_v61, %v120_v58 }
  0x42   :  { %v81_v0 = vadd.f32 %v80_v62, %v79_v60  ;;  %v152_v1 = vrot.slane %v151_v63, 4 }
  0x44   :  { %v82_v2 = vrot.slane %v81_v0, 2  ;;  %v153_v3 = vadd.f32 %v152_v1, %v151_v63 }
  0x46   :  { %v83_v4 = vadd.f32 %v82_v2, %v81_v0  ;;  %v154_v5 = vrot.slane %v153_v3, 2 }
  0x48   :  { %v84_v6 = vrot.slane %v83_v4, 1  ;;  %v155_v8 = vadd.f32 %v154_v5, %v153_v3 }
  0x4a   :  { %v85_v9 = vadd.f32 %v84_v6, %v83_v4  ;;  %v156_v10 = vrot.slane %v155_v8, 1 }
  0x4c   :  { %v86_v11 = vadd.f32 %v85_v9, %v48_v7  ;;  %v157_v13 = vadd.f32 %v156_v10, %v155_v8 }
  0x4e   :  { %87 = vst [vmem:[#allocation2] sm:$0x1] %v86_v11  ;;  %v158_v14 = vadd.f32 %v157_v13, %v88_v12 }
  0x50   :  { %159 = vst [vmem:[#allocation3] sm:$0x1] %v158_v14 }
  0x55   :  { %v163_v15 = vld [vmem:[#allocation2] sm:$0x1] }
  0x56   :  { %v165_v16 = vmul.f32 0.00390625, %v163_v15 }
  0x57   :  { %v166_v17 = vld [vmem:[#allocation3] sm:$0x1] }
  0x58   :  { %v168_v18 = vmul.f32 %v165_v16, %v165_v16  ;;  %171 = vst [vmem:[%s305_s1] sm:$0x1] %v165_v16  ;;  %v167_v19 = vmul.f32 0.00390625, %v166_v17 }
  0x5a   :  { %v169_v20 = vsub.f32 %v167_v19, %v168_v18 }
  0x5c   :  { %v170_v21 = vmax.f32 %v169_v20, 0.0 }
  0x5e   :  { %v172_v22 = vadd.f32 1e-05, %v170_v21 }
  0x60   :  { %184 = vrsqrt.f32 %v172_v22 }
  0x6a   :  { %v185_v23 = vpop.eup %184 }
  0x6b   :  { %174 = vst [vmem:[%s306_s2] sm:$0x1] %v185_v23 }

// kernel: forward.48
= control target key start
LH: loop header
LB: loop body
LE: loop exit
PB: predicated region body
PF: predicated region fallthrough
CT: control target
= control target key end

     0   :  { %s618_s0 = inlined_call_operand.vmem [shape: f32[256,128], index: 0, kind: input, shape index: {}]   ;;  %s619_s1 = inlined_call_operand.vmem [shape: f32[1,128], index: 1, kind: input, shape index: {}]   ;;  %s620_s2 = inlined_call_operand.vmem [shape: f32[1,128], index: 2, kind: input, shape index: {}]   ;;  %s621_s3 = inlined_call_operand.vmem [shape: f32[1,128], index: 3, kind: input, shape index: {}]   ;;  %s622_s4 = inlined_call_operand.vmem [shape: f32[1,128], index: 4, kind: input, shape index: {}]   ;;  %s623_s5 = inlined_call_operand.vmem [shape: f32[256,128], index: 5, kind: output, shape index: {}]  }
   0x1   :  { %v20_v0 = vld [vmem:[%s618_s0] sm:$0xff]  ;;  %v21_v5 = vld [vmem:[%s618_s0 + $0x8] sm:$0xff]  ;;  %v22_v7 = vld [vmem:[%s618_s0 + $0x10] sm:$0xff] }
   0x2   :  { %v284_v1 = vld [vmem:[%s619_s1] ss:$0 sm:$0xff]  ;;  %v23_v8 = vld [vmem:[%s618_s0 + $0x18] sm:$0xff]  ;;  %v25_v14 = vld [vmem:[%s618_s0 + $0x28] sm:$0xff] }
   0x3   :  { %v289_v2 = vld [vmem:[%s620_s2] ss:$0 sm:$0xff]  ;;  %v59_v3 = vsub.f32 %v20_v0, %v284_v1  ;;  %v60_v6 = vsub.f32 %v21_v5, %v284_v1  ;;  %v61_v11 = vsub.f32 %v22_v7, %v284_v1  ;;  %v62_v12 = vsub.f32 %v23_v8, %v284_v1  ;;  %v26_v15 = vld [vmem:[%s618_s0 + $0x30] sm:$0xff]  ;;  %v27_v16 = vld [vmem:[%s618_s0 + $0x38] sm:$0xff] }
   0x4   :  { %v295_v4 = vld [vmem:[%s621_s3] ss:$0 sm:$0xff]  ;;  %v64_v19 = vsub.f32 %v25_v14, %v284_v1  ;;  %v65_v20 = vsub.f32 %v26_v15, %v284_v1  ;;  %v66_v21 = vsub.f32 %v27_v16, %v284_v1  ;;  %v29_v35 = vld [vmem:[%s618_s0 + $0x48] sm:$0xff]  ;;  %v30_v40 = vld [vmem:[%s618_s0 + $0x50] sm:$0xff] }
   0x5   :  { %v24_v9 = vld [vmem:[%s618_s0 + $0x20] sm:$0xff]  ;;  %v98_v10 = vmul.f32 %v289_v2, %v59_v3  ;;  %v99_v18 = vmul.f32 %v289_v2, %v60_v6  ;;  %v100_v23 = vmul.f32 %v289_v2, %v61_v11  ;;  %v101_v24 = vmul.f32 %v289_v2, %v62_v12  ;;  %v31_v41 = vld [vmem:[%s618_s0 + $0x58] sm:$0xff]  ;;  %v33_v47 = vld [vmem:[%s618_s0 + $0x68] sm:$0xff] }
   0x6   :  { %v63_v13 = vsub.f32 %v24_v9, %v284_v1  ;;  %v326_v17 = vld [vmem:[%s622_s4] ss:$0 sm:$0xff]  ;;  %v103_v27 = vmul.f32 %v289_v2, %v64_v19  ;;  %v104_v28 = vmul.f32 %v289_v2, %v65_v20  ;;  %v105_v29 = vmul.f32 %v289_v2, %v66_v21  ;;  %v34_v48 = vld [vmem:[%s618_s0 + $0x70] sm:$0xff]  ;;  %v35_v49 = vld [vmem:[%s618_s0 + $0x78] sm:$0xff] }
   0x7   :  { %v137_v22 = vmul.f32 %v295_v4, %v98_v10  ;;  %v138_v26 = vmul.f32 %v295_v4, %v99_v18  ;;  %v28_v30 = vld [vmem:[%s618_s0 + $0x40] sm:$0xff]  ;;  %v139_v32 = vmul.f32 %v295_v4, %v100_v23  ;;  %v140_v33 = vmul.f32 %v295_v4, %v101_v24  ;;  %v37_v14 = vld [vmem:[%s618_s0 + $0x88] sm:$0xff]  ;;  %v38_v20 = vld [vmem:[%s618_s0 + $0x90] sm:$0xff] }
   0x8   :  { %v102_v25 = vmul.f32 %v289_v2, %v63_v13  ;;  %v142_v37 = vmul.f32 %v295_v4, %v103_v27  ;;  %v143_v38 = vmul.f32 %v295_v4, %v104_v28  ;;  %v144_v39 = vmul.f32 %v295_v4, %v105_v29  ;;  %v32_v42 = vld [vmem:[%s618_s0 + $0x60] sm:$0xff]  ;;  %v39_v21 = vld [vmem:[%s618_s0 + $0x98] sm:$0xff]  ;;  %v41_v27 = vld [vmem:[%s618_s0 + $0xa8] sm:$0xff] }
   0x9   :  { %v176_v31 = vadd.f32 %v326_v17, %v137_v22  ;;  %v177_v36 = vadd.f32 %v326_v17, %v138_v26  ;;  %v178_v43 = vadd.f32 %v326_v17, %v139_v32  ;;  %v179_v44 = vadd.f32 %v326_v17, %v140_v33  ;;  %v36_v9 = vld [vmem:[%s618_s0 + $0x80] sm:$0xff]  ;;  %v42_v28 = vld [vmem:[%s618_s0 + $0xb0] sm:$0xff]  ;;  %v43_v29 = vld [vmem:[%s618_s0 + $0xb8] sm:$0xff] }
   0xa   :  { %v141_v34 = vmul.f32 %v295_v4, %v102_v25  ;;  %v67_v46 = vsub.f32 %v28_v30, %v284_v1  ;;  %v181_v50 = vadd.f32 %v326_v17, %v142_v37  ;;  %v182_v51 = vadd.f32 %v326_v17, %v143_v38  ;;  %v40_v22 = vld [vmem:[%s618_s0 + $0xa0] sm:$0xff] }
   0xb   :  { %208 = vst [vmem:[%s623_s5] sm:$0xff] %v176_v31  ;;  %209 = vst [vmem:[%s623_s5 + $0x8] sm:$0xff] %v177_v36  ;;  %v183_v52 = vadd.f32 %v326_v17, %v144_v39  ;;  %v68_v53 = vsub.f32 %v29_v35, %v284_v1  ;;  %v69_v55 = vsub.f32 %v30_v40, %v284_v1 }
   0xc   :  { %v180_v45 = vadd.f32 %v326_v17, %v141_v34  ;;  %210 = vst [vmem:[%s623_s5 + $0x10] sm:$0xff] %v178_v43  ;;  %211 = vst [vmem:[%s623_s5 + $0x18] sm:$0xff] %v179_v44  ;;  %v106_v54 = vmul.f32 %v289_v2, %v67_v46  ;;  %v70_v56 = vsub.f32 %v31_v41, %v284_v1 }
   0xd   :  { %v71_v57 = vsub.f32 %v32_v42, %v284_v1  ;;  %213 = vst [vmem:[%s623_s5 + $0x28] sm:$0xff] %v181_v50  ;;  %214 = vst [vmem:[%s623_s5 + $0x30] sm:$0xff] %v182_v51  ;;  %v107_v58 = vmul.f32 %v289_v2, %v68_v53  ;;  %v72_v59 = vsub.f32 %v33_v47, %v284_v1  ;;  %v44_v50 = vld [vmem:[%s618_s0 + $0xc0] sm:$0xff] }
   0xe   :  { %212 = vst [vmem:[%s623_s5 + $0x20] sm:$0xff] %v180_v45  ;;  %215 = vst [vmem:[%s623_s5 + $0x38] sm:$0xff] %v183_v52  ;;  %v73_v60 = vsub.f32 %v34_v48, %v284_v1  ;;  %v74_v61 = vsub.f32 %v35_v49, %v284_v1  ;;  %v145_v62 = vmul.f32 %v295_v4, %v106_v54 }
   0xf   :  { %v108_v63 = vmul.f32 %v289_v2, %v69_v55  ;;  %v109_v0 = vmul.f32 %v289_v2, %v70_v56  ;;  %v110_v3 = vmul.f32 %v289_v2, %v71_v57  ;;  %v146_v5 = vmul.f32 %v295_v4, %v107_v58  ;;  %v45_v55 = vld [vmem:[%s618_s0 + $0xc8] sm:$0xff] }
  0x10   :  { %v111_v6 = vmul.f32 %v289_v2, %v72_v59  ;;  %v112_v7 = vmul.f32 %v289_v2, %v73_v60  ;;  %v113_v8 = vmul.f32 %v289_v2, %v74_v61  ;;  %v184_v10 = vadd.f32 %v326_v17, %v145_v62  ;;  %v46_v60 = vld [vmem:[%s618_s0 + $0xd0] sm:$0xff]  ;;  %v47_v61 = vld [vmem:[%s618_s0 + $0xd8] sm:$0xff]  ;;  %v48_v62 = vld [vmem:[%s618_s0 + $0xe0] sm:$0xff] }
  0x11   :  { %v147_v11 = vmul.f32 %v295_v4, %v108_v63  ;;  %v148_v12 = vmul.f32 %v295_v4, %v109_v0  ;;  %v149_v13 = vmul.f32 %v295_v4, %v110_v3  ;;  %v185_v15 = vadd.f32 %v326_v17, %v146_v5 }
  0x12   :  { %v150_v16 = vmul.f32 %v295_v4, %v111_v6  ;;  %v151_v18 = vmul.f32 %v295_v4, %v112_v7  ;;  %v152_v19 = vmul.f32 %v295_v4, %v113_v8  ;;  %216 = vst [vmem:[%s623_s5 + $0x40] sm:$0xff] %v184_v10  ;;  %v75_v26 = vsub.f32 %v36_v9, %v284_v1  ;;  %v49_v6 = vld [vmem:[%s618_s0 + $0xe8] sm:$0xff]  ;;  %v50_v7 = vld [vmem:[%s618_s0 + $0xf0] sm:$0xff]  ;;  %v51_v8 = vld [vmem:[%s618_s0 + $0xf8] sm:$0xff] }
  0x13   :  { %v186_v23 = vadd.f32 %v326_v17, %v147_v11  ;;  %v187_v24 = vadd.f32 %v326_v17, %v148_v12  ;;  %v188_v25 = vadd.f32 %v326_v17, %v149_v13  ;;  %217 = vst [vmem:[%s623_s5 + $0x48] sm:$0xff] %v185_v15  ;;  %v76_v33 = vsub.f32 %v37_v14, %v284_v1 }
  0x14   :  { %v189_v30 = vadd.f32 %v326_v17, %v150_v16  ;;  %v190_v31 = vadd.f32 %v326_v17, %v151_v18  ;;  %v191_v32 = vadd.f32 %v326_v17, %v152_v19  ;;  %v114_v34 = vmul.f32 %v289_v2, %v75_v26 }
  0x15   :  { %218 = vst [vmem:[%s623_s5 + $0x50] sm:$0xff] %v186_v23  ;;  %219 = vst [vmem:[%s623_s5 + $0x58] sm:$0xff] %v187_v24  ;;  %v77_v35 = vsub.f32 %v38_v20, %v284_v1  ;;  %v78_v36 = vsub.f32 %v39_v21, %v284_v1  ;;  %v79_v37 = vsub.f32 %v40_v22, %v284_v1 }
  0x16   :  { %220 = vst [vmem:[%s623_s5 + $0x60] sm:$0xff] %v188_v25  ;;  %221 = vst [vmem:[%s623_s5 + $0x68] sm:$0xff] %v189_v30  ;;  %v115_v38 = vmul.f32 %v289_v2, %v76_v33  ;;  %v80_v39 = vsub.f32 %v41_v27, %v284_v1  ;;  %v81_v40 = vsub.f32 %v42_v28, %v284_v1 }
  0x17   :  { %222 = vst [vmem:[%s623_s5 + $0x70] sm:$0xff] %v190_v31  ;;  %223 = vst [vmem:[%s623_s5 + $0x78] sm:$0xff] %v191_v32  ;;  %v82_v41 = vsub.f32 %v43_v29, %v284_v1  ;;  %v153_v42 = vmul.f32 %v295_v4, %v114_v34  ;;  %v116_v43 = vmul.f32 %v289_v2, %v77_v35 }
  0x18   :  { %v117_v44 = vmul.f32 %v289_v2, %v78_v36  ;;  %v118_v45 = vmul.f32 %v289_v2, %v79_v37  ;;  %v154_v46 = vmul.f32 %v295_v4, %v115_v38  ;;  %v119_v47 = vmul.f32 %v289_v2, %v80_v39 }
  0x19   :  { %v120_v48 = vmul.f32 %v289_v2, %v81_v40  ;;  %v121_v49 = vmul.f32 %v289_v2, %v82_v41  ;;  %v192_v51 = vadd.f32 %v326_v17, %v153_v42  ;;  %v155_v52 = vmul.f32 %v295_v4, %v116_v43 }
  0x1a   :  { %v156_v53 = vmul.f32 %v295_v4, %v117_v44  ;;  %v157_v54 = vmul.f32 %v295_v4, %v118_v45  ;;  %v193_v56 = vadd.f32 %v326_v17, %v154_v46  ;;  %v158_v57 = vmul.f32 %v295_v4, %v119_v47 }
  0x1b   :  { %v159_v58 = vmul.f32 %v295_v4, %v120_v48  ;;  %v160_v59 = vmul.f32 %v295_v4, %v121_v49  ;;  %224 = vst [vmem:[%s623_s5 + $0x80] sm:$0xff] %v192_v51  ;;  %v194_v63 = vadd.f32 %v326_v17, %v155_v52  ;;  %v83_v5 = vsub.f32 %v44_v50, %v284_v1 }
  0x1c   :  { %v195_v0 = vadd.f32 %v326_v17, %v156_v53  ;;  %v196_v3 = vadd.f32 %v326_v17, %v157_v54  ;;  %225 = vst [vmem:[%s623_s5 + $0x88] sm:$0xff] %v193_v56  ;;  %v197_v9 = vadd.f32 %v326_v17, %v158_v57  ;;  %v84_v12 = vsub.f32 %v45_v55, %v284_v1 }
  0x1d   :  { %v198_v10 = vadd.f32 %v326_v17, %v159_v58  ;;  %v199_v11 = vadd.f32 %v326_v17, %v160_v59  ;;  %226 = vst [vmem:[%s623_s5 + $0x90] sm:$0xff] %v194_v63  ;;  %v122_v13 = vmul.f32 %v289_v2, %v83_v5  ;;  %v85_v14 = vsub.f32 %v46_v60, %v284_v1 }
  0x1e   :  { %227 = vst [vmem:[%s623_s5 + $0x98] sm:$0xff] %v195_v0  ;;  %228 = vst [vmem:[%s623_s5 + $0xa0] sm:$0xff] %v196_v3  ;;  %v86_v15 = vsub.f32 %v47_v61, %v284_v1  ;;  %v87_v16 = vsub.f32 %v48_v62, %v284_v1  ;;  %v123_v18 = vmul.f32 %v289_v2, %v84_v12 }
  0x1f   :  { %229 = vst [vmem:[%s623_s5 + $0xa8] sm:$0xff] %v197_v9  ;;  %230 = vst [vmem:[%s623_s5 + $0xb0] sm:$0xff] %v198_v10  ;;  %v88_v19 = vsub.f32 %v49_v6, %v284_v1  ;;  %v89_v20 = vsub.f32 %v50_v7, %v284_v1  ;;  %v90_v21 = vsub.f32 %v51_v8, %v284_v1 }
  0x20   :  { %231 = vst [vmem:[%s623_s5 + $0xb8] sm:$0xff] %v199_v11  ;;  %v161_v22 = vmul.f32 %v295_v4, %v122_v13  ;;  %v124_v23 = vmul.f32 %v289_v2, %v85_v14  ;;  %v125_v24 = vmul.f32 %v289_v2, %v86_v15  ;;  %v126_v25 = vmul.f32 %v289_v2, %v87_v16 }
  0x21   :  { %v162_v26 = vmul.f32 %v295_v4, %v123_v18  ;;  %v127_v27 = vmul.f32 %v289_v2, %v88_v19  ;;  %v128_v28 = vmul.f32 %v289_v2, %v89_v20  ;;  %v129_v29 = vmul.f32 %v289_v2, %v90_v21 }
  0x22   :  { %v200_v30 = vadd.f32 %v326_v17, %v161_v22  ;;  %v163_v1 = vmul.f32 %v295_v4, %v124_v23  ;;  %v164_v31 = vmul.f32 %v295_v4, %v125_v24  ;;  %v165_v32 = vmul.f32 %v295_v4, %v126_v25 }
  0x23   :  { %v201_v33 = vadd.f32 %v326_v17, %v162_v26  ;;  %v166_v34 = vmul.f32 %v295_v4, %v127_v27  ;;  %v167_v35 = vmul.f32 %v295_v4, %v128_v28  ;;  %v168_v36 = vmul.f32 %v295_v4, %v129_v29 }
  0x24   :  { %232 = vst [vmem:[%s623_s5 + $0xc0] sm:$0xff] %v200_v30  ;;  %v202_v2 = vadd.f32 %v326_v17, %v163_v1  ;;  %v203_v37 = vadd.f32 %v326_v17, %v164_v31  ;;  %v204_v38 = vadd.f32 %v326_v17, %v165_v32 }
  0x25   :  { %233 = vst [vmem:[%s623_s5 + $0xc8] sm:$0xff] %v201_v33  ;;  %v205_v39 = vadd.f32 %v326_v17, %v166_v34  ;;  %v206_v40 = vadd.f32 %v326_v17, %v167_v35  ;;  %v207_v4 = vadd.f32 %v326_v17, %v168_v36 }
  0x26   :  { %234 = vst [vmem:[%s623_s5 + $0xd0] sm:$0xff] %v202_v2  ;;  %235 = vst [vmem:[%s623_s5 + $0xd8] sm:$0xff] %v203_v37 }
  0x27   :  { %236 = vst [vmem:[%s623_s5 + $0xe0] sm:$0xff] %v204_v38  ;;  %237 = vst [vmem:[%s623_s5 + $0xe8] sm:$0xff] %v205_v39 }
  0x28   :  { %238 = vst [vmem:[%s623_s5 + $0xf0] sm:$0xff] %v206_v40  ;;  %239 = vst [vmem:[%s623_s5 + $0xf8] sm:$0xff] %v207_v4 }

// kernel: tile.10
= control target key start
LH: loop header
LB: loop body
LE: loop exit
PB: predicated region body
PF: predicated region fallthrough
CT: control target
= control target key end

     0   :  { %s22_s0 = inlined_call_operand.vmem [shape: f32[3], index: 0, kind: input, shape index: {}]   ;;  %s23_s1 = inlined_call_operand.vmem [shape: f32[4,3], index: 1, kind: output, shape index: {}]  }
   0x1   :  { %v4_v0 = vld [vmem:[%s22_s0] ss:$0 sm:$0xff] }
   0x2   :  { %5 = vst [vmem:[%s23_s1] sm:$0xf] %v4_v0 }

// kernel: tile.11
= control target key start
LH: loop header
LB: loop body
LE: loop exit
PB: predicated region body
PF: predicated region fallthrough
CT: control target
= control target key end

     0   :  { %vm7_vm0 = vcmask 23552   ;;  %s37_s8 = smov 3   ;;  %s38_s9 = smov 6   ;;  %vm13_vm1 = vcmask 97352   ;;  %vm19_vm2 = vcmask 72752   ;;  %vm25_vm3 = vcmask 48152   ;;  %s55_s0 = inlined_call_operand.vmem [shape: f32[4,3], index: 0, kind: input, shape index: {}]   ;;  %s56_s1 = inlined_call_operand.vmem [shape: f32[1,12], index: 1, kind: output, shape index: {}]  }
   0x1   :  { %v4_v0 = vld [vmem:[%s55_s0] sm:$0xf]  ;;  %s36_s0 = smov 9  }
   0x2   :  { %5 = vst [vmem:[#allocation1] sm:$0xf] %v4_v0 }
   0x9   :  { %v10_v1 = vld [vmem:[#allocation1 + $0x3] sm:$0x1]   ;;  %v22_v2 = vld [vmem:[#allocation1 + $0x1] sm:$0x1]   ;;  %v6_v3 = vld [vmem:[#allocation1] sm:$0x1]  }
   0xa   :  { %11 = vrot.lane.b32.xlu0 %v10_v1, %s36_s0  ;;  %23 = vrot.lane.b32.xlu1 %v22_v2, %s37_s8  ;;  %v16_v4 = vld [vmem:[#allocation1 + $0x2] sm:$0x1]   ;;  %8 = vst.msk [vmem:[#allocation0] sm:$0x1] %vm7_vm0, %v6_v3  }
   0xe   :  { %17 = vrot.lane.b32.xlu0 %v16_v4, %s38_s9 }
  0x7c   :  { %v12_v5 = vpop.permute.xlu0 %11   ;;  %v24_v6 = vpop.permute.xlu1 %23  }
  0x7d   :  { %14 = vst.msk [vmem:[#allocation0] sm:$0x1] %vm13_vm1, %v12_v5  }
  0x80   :  { %v18_v7 = vpop.permute.xlu0 %17  }
  0x81   :  { %20 = vst.msk [vmem:[#allocation0] sm:$0x1] %vm19_vm2, %v18_v7  }
  0x82   :  { %26 = vst.msk [vmem:[#allocation0] sm:$0x1] %vm25_vm3, %v24_v6  }
  0x89   :  { %v30_v8 = vld [vmem:[#allocation0] sm:$0x1] }
  0x8a   :  { %32 = vst [vmem:[%s56_s1] sm:$0x1] %v30_v8 }

// kernel: forward.49
= control target key start
LH: loop header
LB: loop body
LE: loop exit
PB: predicated region body
PF: predicated region fallthrough
CT: control target
= control target key end

     0   :  { %v1060_v14 = vmov 0   ;;  %s1390_s1 = inlined_call_operand.vmem [shape: bf16[256,128], index: 1, kind: input, shape index: {}]   ;;  %s1391_s0 = inlined_call_operand.vmem [shape: bf16[256,256], index: 0, kind: input, shape index: {}]   ;;  %s1392_s2 = inlined_call_operand.vmem [shape: f32[1,128], index: 2, kind: input, shape index: {}]   ;;  %s1393_s3 = inlined_call_operand.vmem [shape: f32[256,128], index: 3, kind: output, shape index: {}]  }
   0x1   :  { %v980_v0 = vld [vmem:[%s1390_s1 + $0x40] sm:$0xff]   ;;  %v982_v2 = vld [vmem:[%s1390_s1 + $0x48] sm:$0xff]   ;;  %v984_v4 = vld [vmem:[%s1390_s1 + $0x50] sm:$0xff]  }
   0x2   :  { %v981_v1 = vld [vmem:[%s1390_s1] sm:$0xff]   ;;  %851 = vmatprep.subr.bf16.mxu0 %v980_v0  ;;  %963 = vmatprep.subr.bf16.mxu1 %v980_v0  ;;  %v983_v3 = vld [vmem:[%s1390_s1 + $0x8] sm:$0xff]   ;;  %v985_v5 = vld [vmem:[%s1390_s1 + $0x10] sm:$0xff]  }
   0x3   :  { %852 = vmatpush3.bf16.msra.mxu0 %v981_v1  ;;  %971 = vmatpush3.bf16.msra.mxu1 %v981_v1  ;;  %v986_v6 = vld [vmem:[%s1390_s1 + $0x58] sm:$0xff]   ;;  %v988_v8 = vld [vmem:[%s1390_s1 + $0x60] sm:$0xff]   ;;  %v990_v10 = vld [vmem:[%s1390_s1 + $0x68] sm:$0xff]  }
   0x4   :  { %853 = vmatprep.subr.bf16.mxu0 %v982_v2  ;;  %964 = vmatprep.subr.bf16.mxu1 %v982_v2  ;;  %v987_v7 = vld [vmem:[%s1390_s1 + $0x18] sm:$0xff]   ;;  %v989_v9 = vld [vmem:[%s1390_s1 + $0x20] sm:$0xff]   ;;  %v52_v12 = vld [vmem:[%s1391_s0 + $0x8] sm:$0xff] }
   0x5   :  { %v51_v11 = vld [vmem:[%s1391_s0] sm:$0xff]  ;;  %v84_v16 = vmax.bf16 %v1060_v14, %v52_v12  ;;  %v68_v17 = vld [vmem:[%s1391_s0 + $0x88] sm:$0xff]  ;;  %v992_v22 = vld [vmem:[%s1390_s1 + $0x70] sm:$0xff]  }
   0x6   :  { %v67_v13 = vld [vmem:[%s1391_s0 + $0x80] sm:$0xff]  ;;  %v83_v15 = vmax.bf16 %v1060_v14, %v51_v11  ;;  %v100_v19 = vmax.bf16 %v1060_v14, %v68_v17  ;;  %v991_v20 = vld [vmem:[%s1390_s1 + $0x28] sm:$0xff]   ;;  %v993_v24 = vld [vmem:[%s1390_s1 + $0x30] sm:$0xff]  }
   0x7   :  { %854 = vmatpush3.bf16.msra.mxu0 %v983_v3  ;;  %972 = vmatpush3.bf16.msra.mxu1 %v983_v3  ;;  %v99_v18 = vmax.bf16 %v1060_v14, %v67_v13  ;;  %v994_v25 = vld [vmem:[%s1390_s1 + $0x78] sm:$0xff]   ;;  %v53_v26 = vld [vmem:[%s1391_s0 + $0x10] sm:$0xff]  ;;  %v55_v39 = vld [vmem:[%s1391_s0 + $0x20] sm:$0xff] }
   0x8   :  { %855 = vmatprep.subr.bf16.mxu0 %v984_v4  ;;  %965 = vmatprep.subr.bf16.mxu1 %v984_v4  ;;  %v803_v21 = vcombine.high %v83_v15, %v84_v16  ;;  %v54_v27 = vld [vmem:[%s1391_s0 + $0x18] sm:$0xff]  ;;  %v69_v28 = vld [vmem:[%s1391_s0 + $0x90] sm:$0xff]  ;;  %v85_v30 = vmax.bf16 %v1060_v14, %v53_v26  ;;  %v802_v35 = vcombine.low %v83_v15, %v84_v16  ;;  %v56_v40 = vld [vmem:[%s1391_s0 + $0x28] sm:$0xff] }
   0x9   :  { %v819_v23 = vcombine.high %v99_v18, %v100_v19  ;;  %v70_v29 = vld [vmem:[%s1391_s0 + $0x98] sm:$0xff]  ;;  %v86_v32 = vmax.bf16 %v1060_v14, %v54_v27  ;;  %v101_v33 = vmax.bf16 %v1060_v14, %v69_v28  ;;  %v818_v36 = vcombine.low %v99_v18, %v100_v19  ;;  %v71_v41 = vld [vmem:[%s1391_s0 + $0xa0] sm:$0xff]  ;;  %v72_v42 = vld [vmem:[%s1391_s0 + $0xa8] sm:$0xff] }
   0xa   :  { %467 = vmatprep.mubr.bf16.mxu0 %v803_v21  ;;  %v995_v31 = vld [vmem:[%s1390_s1 + $0x38] sm:$0xff]   ;;  %v102_v34 = vmax.bf16 %v1060_v14, %v70_v29  ;;  %v87_v43 = vmax.bf16 %v1060_v14, %v55_v39  ;;  %v88_v44 = vmax.bf16 %v1060_v14, %v56_v40  ;;  %v103_v45 = vmax.bf16 %v1060_v14, %v71_v41  ;;  %v57_v51 = vld [vmem:[%s1391_s0 + $0x30] sm:$0xff]  ;;  %v59_v63 = vld [vmem:[%s1391_s0 + $0x40] sm:$0xff] }
   0xb   :  { %856 = vmatpush3.bf16.msra.mxu0 %v985_v5  ;;  %973 = vmatpush3.bf16.msra.mxu1 %v985_v5  ;;  %v805_v37 = vcombine.high %v85_v30, %v86_v32  ;;  %v104_v46 = vmax.bf16 %v1060_v14, %v72_v42  ;;  %v804_v47 = vcombine.low %v85_v30, %v86_v32  ;;  %v58_v52 = vld [vmem:[%s1391_s0 + $0x38] sm:$0xff]  ;;  %v73_v53 = vld [vmem:[%s1391_s0 + $0xb0] sm:$0xff]  ;;  %v60_v0 = vld [vmem:[%s1391_s0 + $0x48] sm:$0xff] }
   0xc   :  { %857 = vmatprep.subr.bf16.mxu0 %v986_v6  ;;  %966 = vmatprep.subr.bf16.mxu1 %v986_v6  ;;  %v821_v38 = vcombine.high %v101_v33, %v102_v34  ;;  %v820_v48 = vcombine.low %v101_v33, %v102_v34  ;;  %v807_v49 = vcombine.high %v87_v43, %v88_v44  ;;  %v74_v54 = vld [vmem:[%s1391_s0 + $0xb8] sm:$0xff]  ;;  %v75_v1 = vld [vmem:[%s1391_s0 + $0xc0] sm:$0xff]  ;;  %v76_v2 = vld [vmem:[%s1391_s0 + $0xc8] sm:$0xff] }
   0xd   :  { %531 = vmatprep.mubr.bf16.mxu1 %v819_v23  ;;  %v823_v50 = vcombine.high %v103_v45, %v104_v46  ;;  %v89_v55 = vmax.bf16 %v1060_v14, %v57_v51  ;;  %v90_v56 = vmax.bf16 %v1060_v14, %v58_v52  ;;  %v105_v57 = vmax.bf16 %v1060_v14, %v73_v53  ;;  %v61_v11 = vld [vmem:[%s1391_s0 + $0x50] sm:$0xff]  ;;  %v62_v12 = vld [vmem:[%s1391_s0 + $0x58] sm:$0xff]  ;;  %v79_v26 = vld [vmem:[%s1391_s0 + $0xe0] sm:$0xff] }
   0xe   :  { %v106_v58 = vmax.bf16 %v1060_v14, %v74_v54  ;;  %v806_v59 = vcombine.low %v87_v43, %v88_v44  ;;  %v822_v60 = vcombine.low %v103_v45, %v104_v46  ;;  %v91_v3 = vmax.bf16 %v1060_v14, %v59_v63  ;;  %v77_v13 = vld [vmem:[%s1391_s0 + $0xd0] sm:$0xff]  ;;  %v78_v15 = vld [vmem:[%s1391_s0 + $0xd8] sm:$0xff]  ;;  %v80_v27 = vld [vmem:[%s1391_s0 + $0xe8] sm:$0xff] }
   0xf   :  { %858 = vmatpush3.bf16.msra.mxu0 %v987_v7  ;;  %974 = vmatpush3.bf16.msra.mxu1 %v987_v7  ;;  %v809_v61 = vcombine.high %v89_v55, %v90_v56  ;;  %v92_v4 = vmax.bf16 %v1060_v14, %v60_v0  ;;  %v107_v5 = vmax.bf16 %v1060_v14, %v75_v1  ;;  %v82_v39 = vld [vmem:[%s1391_s0 + $0xf8] sm:$0xff]  ;;  %v1260_v53 = vld [vmem:[%s1392_s2] ss:$0 sm:$0xff] }
  0x10   :  { %859 = vmatprep.subr.bf16.mxu0 %v988_v8  ;;  %967 = vmatprep.subr.bf16.mxu1 %v988_v8  ;;  %v825_v62 = vcombine.high %v105_v57, %v106_v58  ;;  %v108_v6 = vmax.bf16 %v1060_v14, %v76_v2  ;;  %v808_v7 = vcombine.low %v89_v55, %v90_v56 }
  0x11   :  { %v824_v8 = vcombine.low %v105_v57, %v106_v58  ;;  %v93_v16 = vmax.bf16 %v1060_v14, %v61_v11  ;;  %v94_v17 = vmax.bf16 %v1060_v14, %v62_v12  ;;  %v109_v18 = vmax.bf16 %v1060_v14, %v77_v13 }
  0x12   :  { %v110_v19 = vmax.bf16 %v1060_v14, %v78_v15  ;;  %v826_v21 = vcombine.low %v107_v5, %v108_v6  ;;  %v111_v30 = vmax.bf16 %v1060_v14, %v79_v26  ;;  %v114_v43 = vmax.bf16 %v1060_v14, %v82_v39 }
  0x13   :  { %860 = vmatpush3.bf16.msra.mxu0 %v989_v9  ;;  %975 = vmatpush3.bf16.msra.mxu1 %v989_v9  ;;  %v811_v9 = vcombine.high %v91_v3, %v92_v4  ;;  %v812_v32 = vcombine.low %v93_v16, %v94_v17 }
  0x14   :  { %861 = vmatprep.subr.bf16.mxu0 %v990_v10  ;;  %968 = vmatprep.subr.bf16.mxu1 %v990_v10  ;;  %v827_v10 = vcombine.high %v107_v5, %v108_v6  ;;  %v829_v23 = vcombine.high %v109_v18, %v110_v19  ;;  %v828_v33 = vcombine.low %v109_v18, %v110_v19 }
  0x17   :  { %862 = vmatpush3.bf16.msra.mxu0 %v991_v20  ;;  %976 = vmatpush3.bf16.msra.mxu1 %v991_v20  ;;  %v810_v20 = vcombine.low %v91_v3, %v92_v4 }
  0x18   :  { %863 = vmatprep.subr.bf16.mxu0 %v992_v22  ;;  %969 = vmatprep.subr.bf16.mxu1 %v992_v22  ;;  %v813_v22 = vcombine.high %v93_v16, %v94_v17 }
  0x1b   :  { %864 = vmatpush3.bf16.msra.mxu0 %v993_v24  ;;  %977 = vmatpush3.bf16.msra.mxu1 %v993_v24  ;;  %v63_v24 = vld [vmem:[%s1391_s0 + $0x60] sm:$0xff] }
  0x1c   :  { %865 = vmatprep.subr.bf16.mxu0 %v994_v25  ;;  %970 = vmatprep.subr.bf16.mxu1 %v994_v25  ;;  %v64_v25 = vld [vmem:[%s1391_s0 + $0x68] sm:$0xff]  ;;  %v95_v28 = vmax.bf16 %v1060_v14, %v63_v24 }
  0x1d   :  { %v96_v29 = vmax.bf16 %v1060_v14, %v64_v25 }
  0x1f   :  { %866 = vmatpush3.bf16.msra.mxu0 %v995_v31  ;;  %978 = vmatpush3.bf16.msra.mxu1 %v995_v31  ;;  %v112_v31 = vmax.bf16 %v1060_v14, %v80_v27  ;;  %v815_v34 = vcombine.high %v95_v28, %v96_v29  ;;  %v814_v44 = vcombine.low %v95_v28, %v96_v29 }
  0x21   :  { %v830_v45 = vcombine.low %v111_v30, %v112_v31 }
  0x22   :  { %468 = vmatmul.mubr.bf16.vlgmr.msra.gmra.mrb[0].mxu0 %v802_v35  ;;  %532 = vmatmul.mubr.bf16.vlgmr.msra.gmra.mrb[0].mxu1 %v818_v36  ;;  %v831_v35 = vcombine.high %v111_v30, %v112_v31  ;;  %v65_v36 = vld [vmem:[%s1391_s0 + $0x70] sm:$0xff] }
  0x23   :  { %475 = vmatprep.mubr.bf16.mxu0 %v805_v37  ;;  %539 = vmatprep.mubr.bf16.mxu1 %v821_v38  ;;  %v66_v37 = vld [vmem:[%s1391_s0 + $0x78] sm:$0xff]  ;;  %v81_v38 = vld [vmem:[%s1391_s0 + $0xf0] sm:$0xff]  ;;  %v97_v40 = vmax.bf16 %v1060_v14, %v65_v36 }
  0x24   :  { %v98_v41 = vmax.bf16 %v1060_v14, %v66_v37  ;;  %v113_v42 = vmax.bf16 %v1060_v14, %v81_v38 }
  0x26   :  { %v817_v46 = vcombine.high %v97_v40, %v98_v41 }
  0x2a   :  { %476 = vmatmul.mubr.bf16.gmra.mrb[4].mxu0 %v804_v47  ;;  %540 = vmatmul.mubr.bf16.gmra.mrb[4].mxu1 %v820_v48  ;;  %v833_v47 = vcombine.high %v113_v42, %v114_v43  ;;  %v816_v48 = vcombine.low %v97_v40, %v98_v41 }
  0x2b   :  { %483 = vmatprep.mubr.bf16.mxu0 %v807_v49  ;;  %547 = vmatprep.mubr.bf16.mxu1 %v823_v50  ;;  %v832_v49 = vcombine.low %v113_v42, %v114_v43 }
  0x32   :  { %484 = vmatmul.mubr.bf16.gmra.mrb[8].mxu0 %v806_v59  ;;  %548 = vmatmul.mubr.bf16.gmra.mrb[8].mxu1 %v822_v60 }
  0x33   :  { %491 = vmatprep.mubr.bf16.mxu0 %v809_v61  ;;  %555 = vmatprep.mubr.bf16.mxu1 %v825_v62 }
  0x3a   :  { %492 = vmatmul.mubr.bf16.gmra.mrb[12].mxu0 %v808_v7  ;;  %556 = vmatmul.mubr.bf16.gmra.mrb[12].mxu1 %v824_v8 }
  0x3b   :  { %499 = vmatprep.mubr.bf16.mxu0 %v811_v9  ;;  %563 = vmatprep.mubr.bf16.mxu1 %v827_v10 }
  0x42   :  { %500 = vmatmul.mubr.bf16.gmra.mrb[16].mxu0 %v810_v20  ;;  %564 = vmatmul.mubr.bf16.gmra.mrb[16].mxu1 %v826_v21 }
  0x43   :  { %507 = vmatprep.mubr.bf16.mxu0 %v813_v22  ;;  %571 = vmatprep.mubr.bf16.mxu1 %v829_v23 }
  0x4a   :  { %508 = vmatmul.mubr.bf16.gmra.mrb[20].mxu0 %v812_v32  ;;  %572 = vmatmul.mubr.bf16.gmra.mrb[20].mxu1 %v828_v33 }
  0x4b   :  { %515 = vmatprep.mubr.bf16.mxu0 %v815_v34  ;;  %579 = vmatprep.mubr.bf16.mxu1 %v831_v35 }
  0x52   :  { %516 = vmatmul.mubr.bf16.gmra.mrb[24].mxu0 %v814_v44  ;;  %580 = vmatmul.mubr.bf16.gmra.mrb[24].mxu1 %v830_v45 }
  0x53   :  { %523 = vmatprep.mubr.bf16.mxu0 %v817_v46  ;;  %587 = vmatprep.mubr.bf16.mxu1 %v833_v47 }
  0x5a   :  { %524 = vmatmul.mubr.bf16.gmra.mrb[28].mxu0 %v816_v48  ;;  %588 = vmatmul.mubr.bf16.gmra.mrb[28].mxu1 %v832_v49 }
  0xf5   :  { %v867_v50 = vpop.f32.mrb[0].mxu0  ;;  %v915_v51 = vpop.f32.mrb[0].mxu1 }
  0xf6   :  { %v868_v52 = vpop.f32.mrb[1].mxu0  ;;  %v916_v14 = vpop.f32.mrb[1].mxu1 }
  0xf7   :  { %v869_v54 = vadd.f32 %v868_v52, %v867_v50  ;;  %v917_v55 = vadd.f32 %v916_v14, %v915_v51  ;;  %v870_v56 = vpop.f32.mrb[2].mxu0  ;;  %v918_v57 = vpop.f32.mrb[2].mxu1 }
  0xf8   :  { %v871_v58 = vpop.f32.mrb[3].mxu0  ;;  %v919_v59 = vpop.f32.mrb[3].mxu1 }
  0xf9   :  { %v702_v60 = vadd.f32 %v869_v54, %v1260_v53  ;;  %v718_v61 = vadd.f32 %v917_v55, %v1260_v53  ;;  %v872_v62 = vadd.f32 %v871_v58, %v870_v56  ;;  %v920_v63 = vadd.f32 %v919_v59, %v918_v57 }
  0xfb   :  { %996 = vtanh.f32 %v702_v60  ;;  %v703_v0 = vadd.f32 %v872_v62, %v1260_v53  ;;  %v719_v1 = vadd.f32 %v920_v63, %v1260_v53 }
  0xfc   :  { %998 = vtanh.f32 %v718_v61 }
  0xfd   :  { %1000 = vtanh.f32 %v703_v0  ;;  %v873_v2 = vpop.f32.mrb[4].mxu0  ;;  %v921_v3 = vpop.f32.mrb[4].mxu1 }
  0xfe   :  { %1002 = vtanh.f32 %v719_v1  ;;  %v874_v4 = vpop.f32.mrb[5].mxu0  ;;  %v922_v5 = vpop.f32.mrb[5].mxu1 }
  0xff   :  { %v875_v6 = vadd.f32 %v874_v4, %v873_v2  ;;  %v923_v7 = vadd.f32 %v922_v5, %v921_v3  ;;  %v876_v8 = vpop.f32.mrb[6].mxu0  ;;  %v924_v9 = vpop.f32.mrb[6].mxu1 }
 0x100   :  { %v877_v10 = vpop.f32.mrb[7].mxu0  ;;  %v925_v11 = vpop.f32.mrb[7].mxu1 }
 0x101   :  { %v704_v12 = vadd.f32 %v875_v6, %v1260_v53  ;;  %v720_v13 = vadd.f32 %v923_v7, %v1260_v53  ;;  %v878_v15 = vadd.f32 %v877_v10, %v876_v8  ;;  %v926_v16 = vadd.f32 %v925_v11, %v924_v9 }
 0x103   :  { %1004 = vtanh.f32 %v704_v12  ;;  %v705_v17 = vadd.f32 %v878_v15, %v1260_v53  ;;  %v721_v18 = vadd.f32 %v926_v16, %v1260_v53 }
 0x104   :  { %1006 = vtanh.f32 %v720_v13 }
 0x105   :  { %v997_v19 = vpop.eup %996  ;;  %1008 = vtanh.f32 %v705_v17  ;;  %v879_v20 = vpop.f32.mrb[8].mxu0 }
 0x106   :  { %v927_v21 = vpop.f32.mrb[8].mxu1  ;;  %v999_v22 = vpop.eup %998  ;;  %766 = vst [vmem:[%s1393_s3] sm:$0xff] %v997_v19  ;;  %1010 = vtanh.f32 %v721_v18 }
 0x107   :  { %v880_v23 = vpop.f32.mrb[9].mxu0  ;;  %v928_v24 = vpop.f32.mrb[9].mxu1  ;;  %782 = vst [vmem:[%s1393_s3 + $0x80] sm:$0xff] %v999_v22 }
 0x108   :  { %v1001_v25 = vpop.eup %1000  ;;  %v881_v26 = vadd.f32 %v880_v23, %v879_v20  ;;  %v929_v27 = vadd.f32 %v928_v24, %v927_v21  ;;  %v882_v28 = vpop.f32.mrb[10].mxu0 }
 0x109   :  { %v930_v29 = vpop.f32.mrb[10].mxu1  ;;  %v1003_v30 = vpop.eup %1002  ;;  %767 = vst [vmem:[%s1393_s3 + $0x8] sm:$0xff] %v1001_v25 }
 0x10a   :  { %v883_v31 = vpop.f32.mrb[11].mxu0  ;;  %v931_v32 = vpop.f32.mrb[11].mxu1  ;;  %783 = vst [vmem:[%s1393_s3 + $0x88] sm:$0xff] %v1003_v30  ;;  %v706_v33 = vadd.f32 %v881_v26, %v1260_v53  ;;  %v722_v34 = vadd.f32 %v929_v27, %v1260_v53 }
 0x10b   :  { %v884_v35 = vadd.f32 %v883_v31, %v882_v28  ;;  %v932_v36 = vadd.f32 %v931_v32, %v930_v29 }
 0x10c   :  { %1012 = vtanh.f32 %v706_v33 }
 0x10d   :  { %v707_v37 = vadd.f32 %v884_v35, %v1260_v53  ;;  %v723_v38 = vadd.f32 %v932_v36, %v1260_v53  ;;  %1014 = vtanh.f32 %v722_v34  ;;  %v1005_v39 = vpop.eup %1004  ;;  %v885_v40 = vpop.f32.mrb[12].mxu0 }
 0x10e   :  { %v933_v41 = vpop.f32.mrb[12].mxu1  ;;  %v1007_v42 = vpop.eup %1006  ;;  %768 = vst [vmem:[%s1393_s3 + $0x10] sm:$0xff] %v1005_v39 }
 0x10f   :  { %1016 = vtanh.f32 %v707_v37  ;;  %v886_v43 = vpop.f32.mrb[13].mxu0  ;;  %v934_v44 = vpop.f32.mrb[13].mxu1  ;;  %784 = vst [vmem:[%s1393_s3 + $0x90] sm:$0xff] %v1007_v42 }
 0x110   :  { %1018 = vtanh.f32 %v723_v38  ;;  %v1009_v45 = vpop.eup %1008  ;;  %v887_v46 = vadd.f32 %v886_v43, %v885_v40  ;;  %v935_v47 = vadd.f32 %v934_v44, %v933_v41  ;;  %v888_v48 = vpop.f32.mrb[14].mxu0 }
 0x111   :  { %v936_v49 = vpop.f32.mrb[14].mxu1  ;;  %v1011_v50 = vpop.eup %1010  ;;  %769 = vst [vmem:[%s1393_s3 + $0x18] sm:$0xff] %v1009_v45 }
 0x112   :  { %v889_v51 = vpop.f32.mrb[15].mxu0  ;;  %v937_v52 = vpop.f32.mrb[15].mxu1  ;;  %785 = vst [vmem:[%s1393_s3 + $0x98] sm:$0xff] %v1011_v50  ;;  %v708_v14 = vadd.f32 %v887_v46, %v1260_v53  ;;  %v724_v54 = vadd.f32 %v935_v47, %v1260_v53 }
 0x113   :  { %v890_v55 = vadd.f32 %v889_v51, %v888_v48  ;;  %v938_v56 = vadd.f32 %v937_v52, %v936_v49 }
 0x114   :  { %1020 = vtanh.f32 %v708_v14 }
 0x115   :  { %v709_v57 = vadd.f32 %v890_v55, %v1260_v53  ;;  %v725_v58 = vadd.f32 %v938_v56, %v1260_v53  ;;  %1022 = vtanh.f32 %v724_v54  ;;  %v891_v60 = vpop.f32.mrb[16].mxu0  ;;  %v939_v61 = vpop.f32.mrb[16].mxu1 }
 0x116   :  { %v1013_v59 = vpop.eup %1012  ;;  %v892_v63 = vpop.f32.mrb[17].mxu0 }
 0x117   :  { %1024 = vtanh.f32 %v709_v57  ;;  %v1015_v62 = vpop.eup %1014  ;;  %770 = vst [vmem:[%s1393_s3 + $0x20] sm:$0xff] %v1013_v59  ;;  %v940_v0 = vpop.f32.mrb[17].mxu1  ;;  %v893_v2 = vadd.f32 %v892_v63, %v891_v60 }
 0x118   :  { %1026 = vtanh.f32 %v725_v58  ;;  %786 = vst [vmem:[%s1393_s3 + $0xa0] sm:$0xff] %v1015_v62  ;;  %v941_v3 = vadd.f32 %v940_v0, %v939_v61  ;;  %v894_v4 = vpop.f32.mrb[18].mxu0  ;;  %v942_v5 = vpop.f32.mrb[18].mxu1 }
 0x119   :  { %v1017_v1 = vpop.eup %1016  ;;  %v895_v7 = vpop.f32.mrb[19].mxu0  ;;  %v710_v9 = vadd.f32 %v893_v2, %v1260_v53 }
 0x11a   :  { %v1019_v6 = vpop.eup %1018  ;;  %771 = vst [vmem:[%s1393_s3 + $0x28] sm:$0xff] %v1017_v1  ;;  %v943_v8 = vpop.f32.mrb[19].mxu1  ;;  %v726_v10 = vadd.f32 %v941_v3, %v1260_v53  ;;  %v896_v11 = vadd.f32 %v895_v7, %v894_v4 }
 0x11b   :  { %787 = vst [vmem:[%s1393_s3 + $0xa8] sm:$0xff] %v1019_v6  ;;  %v944_v12 = vadd.f32 %v943_v8, %v942_v5  ;;  %1028 = vtanh.f32 %v710_v9 }
 0x11c   :  { %v711_v13 = vadd.f32 %v896_v11, %v1260_v53  ;;  %1030 = vtanh.f32 %v726_v10 }
 0x11d   :  { %v727_v15 = vadd.f32 %v944_v12, %v1260_v53  ;;  %v897_v17 = vpop.f32.mrb[20].mxu0  ;;  %v945_v18 = vpop.f32.mrb[20].mxu1 }
 0x11e   :  { %v1021_v16 = vpop.eup %1020  ;;  %1032 = vtanh.f32 %v711_v13  ;;  %v898_v20 = vpop.f32.mrb[21].mxu0 }
 0x11f   :  { %v1023_v19 = vpop.eup %1022  ;;  %772 = vst [vmem:[%s1393_s3 + $0x30] sm:$0xff] %v1021_v16  ;;  %1034 = vtanh.f32 %v727_v15  ;;  %v946_v21 = vpop.f32.mrb[21].mxu1  ;;  %v899_v23 = vadd.f32 %v898_v20, %v897_v17 }
 0x120   :  { %788 = vst [vmem:[%s1393_s3 + $0xb0] sm:$0xff] %v1023_v19  ;;  %v947_v24 = vadd.f32 %v946_v21, %v945_v18  ;;  %v900_v25 = vpop.f32.mrb[22].mxu0  ;;  %v948_v26 = vpop.f32.mrb[22].mxu1 }
 0x121   :  { %v1025_v22 = vpop.eup %1024  ;;  %v901_v28 = vpop.f32.mrb[23].mxu0  ;;  %v712_v30 = vadd.f32 %v899_v23, %v1260_v53 }
 0x122   :  { %v1027_v27 = vpop.eup %1026  ;;  %773 = vst [vmem:[%s1393_s3 + $0x38] sm:$0xff] %v1025_v22  ;;  %v949_v29 = vpop.f32.mrb[23].mxu1  ;;  %v728_v31 = vadd.f32 %v947_v24, %v1260_v53  ;;  %v902_v32 = vadd.f32 %v901_v28, %v900_v25 }
 0x123   :  { %789 = vst [vmem:[%s1393_s3 + $0xb8] sm:$0xff] %v1027_v27  ;;  %v950_v33 = vadd.f32 %v949_v29, %v948_v26  ;;  %1036 = vtanh.f32 %v712_v30 }
 0x124   :  { %v713_v34 = vadd.f32 %v902_v32, %v1260_v53  ;;  %1038 = vtanh.f32 %v728_v31 }
 0x125   :  { %v729_v35 = vadd.f32 %v950_v33, %v1260_v53  ;;  %v1029_v36 = vpop.eup %1028  ;;  %v903_v37 = vpop.f32.mrb[24].mxu0 }
 0x126   :  { %1040 = vtanh.f32 %v713_v34  ;;  %v951_v38 = vpop.f32.mrb[24].mxu1  ;;  %v1031_v39 = vpop.eup %1030  ;;  %774 = vst [vmem:[%s1393_s3 + $0x40] sm:$0xff] %v1029_v36 }
 0x127   :  { %1042 = vtanh.f32 %v729_v35  ;;  %v904_v40 = vpop.f32.mrb[25].mxu0  ;;  %v952_v41 = vpop.f32.mrb[25].mxu1  ;;  %790 = vst [vmem:[%s1393_s3 + $0xc0] sm:$0xff] %v1031_v39 }
 0x128   :  { %v1033_v42 = vpop.eup %1032  ;;  %v905_v43 = vadd.f32 %v904_v40, %v903_v37  ;;  %v953_v44 = vadd.f32 %v952_v41, %v951_v38  ;;  %v906_v45 = vpop.f32.mrb[26].mxu0 }
 0x129   :  { %v954_v46 = vpop.f32.mrb[26].mxu1  ;;  %v1035_v47 = vpop.eup %1034  ;;  %775 = vst [vmem:[%s1393_s3 + $0x48] sm:$0xff] %v1033_v42 }
 0x12a   :  { %v907_v48 = vpop.f32.mrb[27].mxu0  ;;  %v955_v49 = vpop.f32.mrb[27].mxu1  ;;  %791 = vst [vmem:[%s1393_s3 + $0xc8] sm:$0xff] %v1035_v47  ;;  %v714_v50 = vadd.f32 %v905_v43, %v1260_v53  ;;  %v730_v51 = vadd.f32 %v953_v44, %v1260_v53 }
 0x12b   :  { %v908_v52 = vadd.f32 %v907_v48, %v906_v45  ;;  %v956_v14 = vadd.f32 %v955_v49, %v954_v46 }
 0x12c   :  { %1044 = vtanh.f32 %v714_v50 }
 0x12d   :  { %v715_v54 = vadd.f32 %v908_v52, %v1260_v53  ;;  %v731_v55 = vadd.f32 %v956_v14, %v1260_v53  ;;  %1046 = vtanh.f32 %v730_v51  ;;  %v1037_v56 = vpop.eup %1036  ;;  %v909_v57 = vpop.f32.mrb[28].mxu0 }
 0x12e   :  { %v957_v58 = vpop.f32.mrb[28].mxu1  ;;  %v1039_v59 = vpop.eup %1038  ;;  %776 = vst [vmem:[%s1393_s3 + $0x50] sm:$0xff] %v1037_v56 }
 0x12f   :  { %1048 = vtanh.f32 %v715_v54  ;;  %v910_v60 = vpop.f32.mrb[29].mxu0  ;;  %v958_v61 = vpop.f32.mrb[29].mxu1  ;;  %792 = vst [vmem:[%s1393_s3 + $0xd0] sm:$0xff] %v1039_v59 }
 0x130   :  { %1050 = vtanh.f32 %v731_v55  ;;  %v1041_v62 = vpop.eup %1040  ;;  %v911_v63 = vadd.f32 %v910_v60, %v909_v57  ;;  %v959_v0 = vadd.f32 %v958_v61, %v957_v58  ;;  %v912_v1 = vpop.f32.mrb[30].mxu0 }
 0x131   :  { %v960_v2 = vpop.f32.mrb[30].mxu1  ;;  %v1043_v3 = vpop.eup %1042  ;;  %777 = vst [vmem:[%s1393_s3 + $0x58] sm:$0xff] %v1041_v62 }
 0x132   :  { %v913_v4 = vpop.f32.mrb[31].mxu0  ;;  %v961_v5 = vpop.f32.mrb[31].mxu1  ;;  %793 = vst [vmem:[%s1393_s3 + $0xd8] sm:$0xff] %v1043_v3  ;;  %v716_v6 = vadd.f32 %v911_v63, %v1260_v53  ;;  %v732_v7 = vadd.f32 %v959_v0, %v1260_v53 }
 0x133   :  { %v914_v8 = vadd.f32 %v913_v4, %v912_v1  ;;  %v962_v9 = vadd.f32 %v961_v5, %v960_v2 }
 0x134   :  { %1052 = vtanh.f32 %v716_v6 }
 0x135   :  { %v717_v10 = vadd.f32 %v914_v8, %v1260_v53  ;;  %v733_v11 = vadd.f32 %v962_v9, %v1260_v53  ;;  %1054 = vtanh.f32 %v732_v7 }
 0x136   :  { %v1045_v12 = vpop.eup %1044 }
 0x137   :  { %1056 = vtanh.f32 %v717_v10  ;;  %v1047_v13 = vpop.eup %1046  ;;  %778 = vst [vmem:[%s1393_s3 + $0x60] sm:$0xff] %v1045_v12 }
 0x138   :  { %1058 = vtanh.f32 %v733_v11  ;;  %794 = vst [vmem:[%s1393_s3 + $0xe0] sm:$0xff] %v1047_v13 }
 0x139   :  { %v1049_v15 = vpop.eup %1048 }
 0x13a   :  { %v1051_v16 = vpop.eup %1050  ;;  %779 = vst [vmem:[%s1393_s3 + $0x68] sm:$0xff] %v1049_v15 }
 0x13b   :  { %795 = vst [vmem:[%s1393_s3 + $0xe8] sm:$0xff] %v1051_v16 }
 0x13e   :  { %v1053_v53 = vpop.eup %1052 }
 0x13f   :  { %v1055_v17 = vpop.eup %1054  ;;  %780 = vst [vmem:[%s1393_s3 + $0x70] sm:$0xff] %v1053_v53 }
 0x140   :  { %796 = vst [vmem:[%s1393_s3 + $0xf0] sm:$0xff] %v1055_v17 }
 0x141   :  { %v1057_v18 = vpop.eup %1056 }
 0x142   :  { %v1059_v19 = vpop.eup %1058  ;;  %781 = vst [vmem:[%s1393_s3 + $0x78] sm:$0xff] %v1057_v18 }
 0x143   :  { %797 = vst [vmem:[%s1393_s3 + $0xf8] sm:$0xff] %v1059_v19 }

</bundles_post_ra>
